<compile_context>
chip_gen: v7x
topology: tpu7x:2x2x1
jax: 0.10.0
libtpu: 0.0.40
codegen_flags: <defaults>
</compile_context>

<pallas_src>
import functools

import jax
import jax.numpy as jnp
import numpy as np
from jax.experimental import pallas as pl
from jax.experimental.pallas import tpu as pltpu


def _round_up(x, m):
    return (x + m - 1) // m * m


def _sigmoid(x):
    # One EUP op (tanh) instead of exp + reciprocal.
    return 0.5 * jnp.tanh(0.5 * x) + 0.5


def _lstm_kernel(x_ref, h0_ref, c0_ref,
                 wih0_ref, whh0_ref, b0_ref,
                 wih1_ref, whh1_ref, b1_ref,
                 wout_ref, bout_ref,
                 out_ref, lasth_ref, lastc_ref,
                 h1_s, c1_s, h2_s, c2_s, h2hist_s,
                 *, TT, Bb, Hp, Vp, lt_last):
    t = pl.program_id(1)          # time-chunk index (sequential)

    # Load initial (h, c) into the carried VMEM state on the first chunk of each batch block.
    @pl.when(t == 0)
    def _():
        h1_s[...] = h0_ref[0]
        c1_s[...] = c0_ref[0]
        h2_s[...] = h0_ref[1]
        c2_s[...] = c0_ref[1]

    h1 = h1_s[...]
    c1 = c1_s[...]
    h2 = h2_s[...]
    c2 = c2_s[...]

    # ---- chunk-level input projection (big K = Vp, M = TT*Bb) + bias, once per chunk ----
    x_all = x_ref[...].reshape(TT * Bb, Vp).astype(jnp.bfloat16)
    xg = jnp.dot(x_all, wih0_ref[...],
                 preferred_element_type=jnp.float32) + b0_ref[...]        # (TT*Bb, 4Hp) f32

    whh0 = whh0_ref[...]          # (Hp, 4Hp) f32 — recurrent path stays f32
    wih1 = wih1_ref[...]
    whh1 = whh1_ref[...]
    b1v = jnp.broadcast_to(b1_ref[...], (Bb, 4 * Hp))                     # hoisted broadcast

    def gates_to_hc(g, c_prev):
        i = _sigmoid(g[:, 0 * Hp:1 * Hp])    # 128-lane-aligned gate slices
        f = _sigmoid(g[:, 1 * Hp:2 * Hp])
        gg = jnp.tanh(g[:, 2 * Hp:3 * Hp])
        o = _sigmoid(g[:, 3 * Hp:4 * Hp])
        c_new = f * c_prev + i * gg
        h_new = o * jnp.tanh(c_new)
        return h_new, c_new

    h1_fin, c1_fin, h2_fin, c2_fin = h1, c1, h2, c2

    # Fully unrolled TT-step recurrence: only the small recurrent matmuls stay serial.
    for lt in range(TT):
        g1 = xg[lt * Bb:(lt + 1) * Bb, :] + jnp.dot(
            h1, whh0, preferred_element_type=jnp.float32)
        h1, c1 = gates_to_hc(g1, c1)

        g2 = (jnp.dot(h1, wih1, preferred_element_type=jnp.float32)
              + jnp.dot(h2, whh1, preferred_element_type=jnp.float32) + b1v)
        h2, c2 = gates_to_hc(g2, c2)

        h2hist_s[lt] = h2
        if lt == lt_last:
            # Statically-known last valid timestep within the last chunk (T % TT tail).
            h1_fin, c1_fin, h2_fin, c2_fin = h1, c1, h2, c2

    # Carry state to the next chunk (unused garbage after the tail of the last chunk).
    h1_s[...] = h1
    c1_s[...] = c1
    h2_s[...] = h2
    c2_s[...] = c2

    # ---- chunk-level output projection (M = TT*Bb) + bias, one dense block store -------
    h2all = h2hist_s[...].reshape(TT * Bb, Hp).astype(jnp.bfloat16)
    out = jnp.dot(h2all, wout_ref[...],
                  preferred_element_type=jnp.float32) + bout_ref[...]     # (TT*Bb, Vp)
    out_ref[...] = out.reshape(TT, Bb, Vp)

    # Emit (last_hidden, last_cell) on the final chunk of this batch block.
    @pl.when(t == pl.num_programs(1) - 1)
    def _():
        lasth_ref[0] = h1_fin
        lasth_ref[1] = h2_fin
        lastc_ref[0] = c1_fin
        lastc_ref[1] = c2_fin


def text_generation_forward(x, params, last_states=None, *, time_chunk=16):
    """x: (B, T, V) float32 (batch_first, like the PyTorch module).

    Returns (out (B, T, V), (last_hidden (2, B, H), last_cell (2, B, H)))."""
    B, T, V = x.shape
    H = params["w_hh0"].shape[1]
    L = 2  # lstm_num_layers

    # Hardware-friendly padded dims: 8 sublanes for batch, 128 lanes for V / H.
    Bp = _round_up(B, 8)
    Vp = _round_up(V, 128)
    Hp = _round_up(H, 128)      # per-gate padding; no waste when H % 128 == 0 (H=256 default)
    TT = max(1, min(time_chunk, T))
    Tp = _round_up(T, TT)
    n_chunks = Tp // TT
    lt_last = (T - 1) % TT      # last valid step inside the final chunk (static)

    # Two batch blocks -> both TensorCores on v7x; no-op split on single-TC v5e/v6e.
    n_bb = 2 if (Bp % 16 == 0) else 1
    Bb = Bp // n_bb

    # ---- input / state padding (time-major internal layout) ---------------------------
    xt = jnp.transpose(x.astype(jnp.float32), (1, 0, 2))                  # (T, B, V)
    xp = jnp.zeros((Tp, Bp, Vp), jnp.float32).at[:T, :B, :V].set(xt)

    if last_states is None:
        h0 = jnp.zeros((L, Bp, Hp), jnp.float32)
        c0 = jnp.zeros((L, Bp, Hp), jnp.float32)
    else:
        h0_in, c0_in = last_states
        h0 = jnp.zeros((L, Bp, Hp), jnp.float32).at[:, :B, :H].set(h0_in.astype(jnp.float32))
        c0 = jnp.zeros((L, Bp, Hp), jnp.float32).at[:, :B, :H].set(c0_in.astype(jnp.float32))

    # ---- weight prep: per-gate padding, transposed for x @ W^T, vocab matmuls in bf16 --
    def pad_gate_mat(w, in_dim, in_pad):
        # w: (4H, in_dim), PyTorch gate order [i, f, g, o] -> (4Hp, in_pad), zero-padded.
        out = jnp.zeros((4 * Hp, in_pad), jnp.float32)
        for g in range(4):
            out = out.at[g * Hp:g * Hp + H, :in_dim].set(w[g * H:(g + 1) * H, :])
        return out

    def pad_gate_vec(b):
        out = jnp.zeros((4 * Hp,), jnp.float32)
        for g in range(4):
            out = out.at[g * Hp:g * Hp + H].set(b[g * H:(g + 1) * H])
        return out

    wih0 = pad_gate_mat(params["w_ih0"], V, Vp).T.astype(jnp.bfloat16)    # (Vp, 4Hp) bf16
    whh0 = pad_gate_mat(params["w_hh0"], H, Hp).T                         # (Hp, 4Hp) f32
    b0 = pad_gate_vec(params["b_ih0"] + params["b_hh0"]).reshape(1, 4 * Hp)

    wih1 = pad_gate_mat(params["w_ih1"], H, Hp).T                         # (Hp, 4Hp) f32
    whh1 = pad_gate_mat(params["w_hh1"], H, Hp).T                         # (Hp, 4Hp) f32
    b1 = pad_gate_vec(params["b_ih1"] + params["b_hh1"]).reshape(1, 4 * Hp)

    wout = (jnp.zeros((Hp, Vp), jnp.float32)
            .at[:H, :V].set(params["w_out"].T).astype(jnp.bfloat16))      # (Hp, Vp) bf16
    bout = jnp.zeros((1, Vp), jnp.float32).at[0, :V].set(params["b_out"])

    grid_spec = pltpu.PrefetchScalarGridSpec(
        num_scalar_prefetch=0,
        grid=(n_bb, n_chunks),
        in_specs=[
            pl.BlockSpec((TT, Bb, Vp), lambda b, t: (t, b, 0)),   # x (time-major chunk)
            pl.BlockSpec((L, Bb, Hp), lambda b, t: (0, b, 0)),    # h0
            pl.BlockSpec((L, Bb, Hp), lambda b, t: (0, b, 0)),    # c0
            pl.BlockSpec((Vp, 4 * Hp), lambda b, t: (0, 0)),      # W_ih0^T (bf16)
            pl.BlockSpec((Hp, 4 * Hp), lambda b, t: (0, 0)),      # W_hh0^T (f32)
            pl.BlockSpec((1, 4 * Hp), lambda b, t: (0, 0)),       # b0
            pl.BlockSpec((Hp, 4 * Hp), lambda b, t: (0, 0)),      # W_ih1^T (f32)
            pl.BlockSpec((Hp, 4 * Hp), lambda b, t: (0, 0)),      # W_hh1^T (f32)
            pl.BlockSpec((1, 4 * Hp), lambda b, t: (0, 0)),       # b1
            pl.BlockSpec((Hp, Vp), lambda b, t: (0, 0)),          # W_out^T (bf16)
            pl.BlockSpec((1, Vp), lambda b, t: (0, 0)),           # b_out
        ],
        out_specs=[
            pl.BlockSpec((TT, Bb, Vp), lambda b, t: (t, b, 0)),   # out (time-major)
            pl.BlockSpec((L, Bb, Hp), lambda b, t: (0, b, 0)),    # last_hidden
            pl.BlockSpec((L, Bb, Hp), lambda b, t: (0, b, 0)),    # last_cell
        ],
        scratch_shapes=[pltpu.VMEM((Bb, Hp), jnp.float32)] * 4        # h1, c1, h2, c2
                       + [pltpu.VMEM((TT, Bb, Hp), jnp.float32)],     # per-step h2 history
    )

    flops = Tp * Bp * (2 * Vp * 4 * Hp          # chunk-level input projection
                       + 2 * Hp * 4 * Hp        # h1 @ W_hh0
                       + 2 * 2 * Hp * 4 * Hp    # layer-2 accumulating dots
                       + 2 * Hp * Vp)           # chunk-level output projection
    transcendentals = Tp * Bp * 10 * Hp
    bytes_accessed = int(
        4 * Tp * Bp * Vp                                   # x (f32 in)
        + 4 * Tp * Bp * Vp                                 # out (f32)
        + n_bb * (2 * wih0.size + 2 * wout.size
                  + 4 * (whh0.size + wih1.size + whh1.size)
                  + 4 * (b0.size + b1.size + bout.size))   # weights (per batch block)
        + 4 * 4 * L * Bp * Hp)                             # h0/c0 in, last_h/c out

    kernel = functools.partial(_lstm_kernel, TT=TT, Bb=Bb, Hp=Hp, Vp=Vp, lt_last=lt_last)

    out_p, last_h_p, last_c_p = pl.pallas_call(
        kernel,
        out_shape=(
            jax.ShapeDtypeStruct((Tp, Bp, Vp), jnp.float32),
            jax.ShapeDtypeStruct((L, Bp, Hp), jnp.float32),
            jax.ShapeDtypeStruct((L, Bp, Hp), jnp.float32),
        ),
        grid_spec=grid_spec,
        compiler_params=pltpu.CompilerParams(
            # batch blocks are independent (v7x 2-TC split); time recurrence is sequential
            dimension_semantics=("parallel", "arbitrary"),
            vmem_limit_bytes=32 * 1024 * 1024),
        cost_estimate=pl.CostEstimate(flops=flops,
                                      transcendentals=transcendentals,
                                      bytes_accessed=bytes_accessed),
    )(xp, h0, c0, wih0, whh0, b0, wih1, whh1, b1, wout, bout)

    out = jnp.transpose(out_p[:T, :B, :V], (1, 0, 2))      # back to batch-first
    last_h = last_h_p[:, :B, :H]
    last_c = last_c_p[:, :B, :H]
    return out, (last_h, last_c)


def init_params(key, vocab, hidden):
    """Deterministic init matching the PyTorch parameter shapes (U(-1/sqrt(H), 1/sqrt(H)))."""
    k = float(1.0 / (hidden ** 0.5))
    keys = jax.random.split(key, 10)

    def u(kk, shape):
        return jax.random.uniform(kk, shape, jnp.float32, -k, k)

    return dict(
        w_ih0=u(keys[0], (4 * hidden, vocab)),
        w_hh0=u(keys[1], (4 * hidden, hidden)),
        b_ih0=u(keys[2], (4 * hidden,)),
        b_hh0=u(keys[3], (4 * hidden,)),
        w_ih1=u(keys[4], (4 * hidden, hidden)),
        w_hh1=u(keys[5], (4 * hidden, hidden)),
        b_ih1=u(keys[6], (4 * hidden,)),
        b_hh1=u(keys[7], (4 * hidden,)),
        w_out=u(keys[8], (vocab, hidden)),
        b_out=u(keys[9], (vocab,)),
    )


def ref_forward(x, params, last_states=None):
    """Pure-JAX f32 reference implementing torch.nn.LSTM(num_layers=2) + Linear semantics."""
    B, T, V = x.shape
    H = params["w_hh0"].shape[1]
    if last_states is None:
        h0 = jnp.zeros((2, B, H), jnp.float32)
        c0 = jnp.zeros((2, B, H), jnp.float32)
    else:
        h0, c0 = last_states
    h1, h2 = h0[0], h0[1]
    c1, c2 = c0[0], c0[1]

    def cell(xt, h, c, wih, whh, bih, bhh):
        g = xt @ wih.T + h @ whh.T + bih + bhh
        i = jax.nn.sigmoid(g[:, :H])
        f = jax.nn.sigmoid(g[:, H:2 * H])
        gg = jnp.tanh(g[:, 2 * H:3 * H])
        o = jax.nn.sigmoid(g[:, 3 * H:])
        c_new = f * c + i * gg
        return o * jnp.tanh(c_new), c_new

    outs = []
    for t in range(T):
        xt = x[:, t, :]
        h1, c1 = cell(xt, h1, c1, params["w_ih0"], params["w_hh0"],
                      params["b_ih0"], params["b_hh0"])
        h2, c2 = cell(h1, h2, c2, params["w_ih1"], params["w_hh1"],
                      params["b_ih1"], params["b_hh1"])
        outs.append(h2 @ params["w_out"].T + params["b_out"])
    out = jnp.stack(outs, axis=1)
    return out, (jnp.stack([h1, h2]), jnp.stack([c1, c2]))


if __name__ == "__main__":
    B, T, V, H = 2, 8, 10, 32   # small shapes consistent with the module's forward
    key = jax.random.PRNGKey(0)
    kx, kp = jax.random.split(key)
    x = jax.random.normal(kx, (B, T, V), jnp.float32)
    params = init_params(kp, V, H)

    # Pass 1: zero initial states.
    out, (last_h, last_c) = text_generation_forward(x, params)
    jax.block_until_ready((out, last_h, last_c))

    ref_out, (ref_h, ref_c) = ref_forward(x, params)
    # bf16 operands on the vocab-sized projections -> looser tolerance vs f32 reference;
    # recurrent-path matmuls and state stay f32 so drift across T is bounded.
    np.testing.assert_allclose(np.asarray(out), np.asarray(ref_out), rtol=5e-2, atol=5e-2)
    np.testing.assert_allclose(np.asarray(last_h), np.asarray(ref_h), rtol=5e-2, atol=5e-2)
    np.testing.assert_allclose(np.asarray(last_c), np.asarray(ref_c), rtol=5e-2, atol=5e-2)

    # Pass 2: continue from the returned (last_hidden, last_cell), like the PyTorch module.
    out2, (h2_, c2_) = text_generation_forward(x, params, last_states=(last_h, last_c))
    jax.block_until_ready((out2, h2_, c2_))
    ref_out2, (rh2, rc2) = ref_forward(x, params, last_states=(ref_h, ref_c))
    np.testing.assert_allclose(np.asarray(out2), np.asarray(ref_out2), rtol=5e-2, atol=5e-2)
    np.testing.assert_allclose(np.asarray(h2_), np.asarray(rh2), rtol=5e-2, atol=5e-2)
    np.testing.assert_allclose(np.asarray(c2_), np.asarray(rc2), rtol=5e-2, atol=5e-2)

    print("KERNEL_OK")
</pallas_src>

<mosaic_0001>
module attributes {stable_mosaic.version = 11 : i64} {
  func.func @_lstm_kernel(%arg0: i32, %arg1: i32, %arg2: memref<8x8x128xf32, #tpu.memory_space<vmem>>, %arg3: memref<2x8x128xf32, #tpu.memory_space<vmem>>, %arg4: memref<2x8x128xf32, #tpu.memory_space<vmem>>, %arg5: memref<128x512xbf16, #tpu.memory_space<vmem>>, %arg6: memref<128x512xf32, #tpu.memory_space<vmem>>, %arg7: memref<1x512xf32, #tpu.memory_space<vmem>>, %arg8: memref<128x512xf32, #tpu.memory_space<vmem>>, %arg9: memref<128x512xf32, #tpu.memory_space<vmem>>, %arg10: memref<1x512xf32, #tpu.memory_space<vmem>>, %arg11: memref<128x128xbf16, #tpu.memory_space<vmem>>, %arg12: memref<1x128xf32, #tpu.memory_space<vmem>>, %arg13: memref<8x8x128xf32, #tpu.memory_space<vmem>>, %arg14: memref<2x8x128xf32, #tpu.memory_space<vmem>>, %arg15: memref<2x8x128xf32, #tpu.memory_space<vmem>>, %arg16: memref<8x128xf32, #tpu.memory_space<vmem>>, %arg17: memref<8x128xf32, #tpu.memory_space<vmem>>, %arg18: memref<8x128xf32, #tpu.memory_space<vmem>>, %arg19: memref<8x128xf32, #tpu.memory_space<vmem>>, %arg20: memref<8x8x128xf32, #tpu.memory_space<vmem>>) attributes {dimension_semantics = [#tpu.dimension_semantics<parallel>, #tpu.dimension_semantics<arbitrary>], iteration_bounds = array<i64: 1, 1>, scalar_prefetch = 0 : i64, scratch_operands = 5 : i64, tpu.core_type = #tpu.core_type<tc>, window_params = [{transform_indices = @transform_0, window_bounds = array<i64: 8, 8, 128>}, {transform_indices = @transform_1, window_bounds = array<i64: 2, 8, 128>}, {transform_indices = @transform_2, window_bounds = array<i64: 2, 8, 128>}, {pipeline_mode = #tpu.pipeline_mode<synchronous>, transform_indices = @transform_3, window_bounds = array<i64: 128, 512>}, {pipeline_mode = #tpu.pipeline_mode<synchronous>, transform_indices = @transform_4, window_bounds = array<i64: 128, 512>}, {pipeline_mode = #tpu.pipeline_mode<synchronous>, transform_indices = @transform_5, window_bounds = array<i64: 1, 512>}, {pipeline_mode = #tpu.pipeline_mode<synchronous>, transform_indices = @transform_6, window_bounds = array<i64: 128, 512>}, {pipeline_mode = #tpu.pipeline_mode<synchronous>, transform_indices = @transform_7, window_bounds = array<i64: 128, 512>}, {pipeline_mode = #tpu.pipeline_mode<synchronous>, transform_indices = @transform_8, window_bounds = array<i64: 1, 512>}, {pipeline_mode = #tpu.pipeline_mode<synchronous>, transform_indices = @transform_9, window_bounds = array<i64: 128, 128>}, {pipeline_mode = #tpu.pipeline_mode<synchronous>, transform_indices = @transform_10, window_bounds = array<i64: 1, 128>}, {transform_indices = @transform_11, window_bounds = array<i64: 8, 8, 128>}, {transform_indices = @transform_12, window_bounds = array<i64: 2, 8, 128>}, {transform_indices = @transform_13, window_bounds = array<i64: 2, 8, 128>}]} {
    %c0_i32 = arith.constant 0 : i32
    %0 = arith.cmpi eq, %arg1, %c0_i32 : i32
    %1 = arith.extui %0 : i1 to i32
    %c0_i32_0 = arith.constant 0 : i32
    %2 = arith.cmpi ne, %1, %c0_i32_0 : i32
    scf.if %2 {
      %c0_229 = arith.constant 0 : index
      %c0_230 = arith.constant 0 : index
      %c0_231 = arith.constant 0 : index
      %614 = vector.load %arg3[%c0_229, %c0_230, %c0_231] : memref<2x8x128xf32, #tpu.memory_space<vmem>>, vector<1x8x128xf32>
      %615 = vector.shape_cast %614 : vector<1x8x128xf32> to vector<8x128xf32>
      %c0_232 = arith.constant 0 : index
      %c0_233 = arith.constant 0 : index
      %616 = vector.load %arg16[%c0_232, %c0_233] : memref<8x128xf32, #tpu.memory_space<vmem>>, vector<8x128xf32>
      tpu.vector_store %arg16[%c0_232, %c0_233], %615 {strides = array<i32>} : memref<8x128xf32, #tpu.memory_space<vmem>>, vector<8x128xf32>,
      %c0_234 = arith.constant 0 : index
      %c0_235 = arith.constant 0 : index
      %c0_236 = arith.constant 0 : index
      %617 = vector.load %arg4[%c0_234, %c0_235, %c0_236] : memref<2x8x128xf32, #tpu.memory_space<vmem>>, vector<1x8x128xf32>
      %618 = vector.shape_cast %617 : vector<1x8x128xf32> to vector<8x128xf32>
      %c0_237 = arith.constant 0 : index
      %c0_238 = arith.constant 0 : index
      %619 = vector.load %arg17[%c0_237, %c0_238] : memref<8x128xf32, #tpu.memory_space<vmem>>, vector<8x128xf32>
      tpu.vector_store %arg17[%c0_237, %c0_238], %618 {strides = array<i32>} : memref<8x128xf32, #tpu.memory_space<vmem>>, vector<8x128xf32>,
      %c1_239 = arith.constant 1 : index
      %c0_240 = arith.constant 0 : index
      %c0_241 = arith.constant 0 : index
      %620 = vector.load %arg3[%c1_239, %c0_240, %c0_241] : memref<2x8x128xf32, #tpu.memory_space<vmem>>, vector<1x8x128xf32>
      %621 = vector.shape_cast %620 : vector<1x8x128xf32> to vector<8x128xf32>
      %c0_242 = arith.constant 0 : index
      %c0_243 = arith.constant 0 : index
      %622 = vector.load %arg18[%c0_242, %c0_243] : memref<8x128xf32, #tpu.memory_space<vmem>>, vector<8x128xf32>
      tpu.vector_store %arg18[%c0_242, %c0_243], %621 {strides = array<i32>} : memref<8x128xf32, #tpu.memory_space<vmem>>, vector<8x128xf32>,
      %c1_244 = arith.constant 1 : index
      %c0_245 = arith.constant 0 : index
      %c0_246 = arith.constant 0 : index
      %623 = vector.load %arg4[%c1_244, %c0_245, %c0_246] : memref<2x8x128xf32, #tpu.memory_space<vmem>>, vector<1x8x128xf32>
      %624 = vector.shape_cast %623 : vector<1x8x128xf32> to vector<8x128xf32>
      %c0_247 = arith.constant 0 : index
      %c0_248 = arith.constant 0 : index
      %625 = vector.load %arg19[%c0_247, %c0_248] : memref<8x128xf32, #tpu.memory_space<vmem>>, vector<8x128xf32>
      tpu.vector_store %arg19[%c0_247, %c0_248], %624 {strides = array<i32>} : memref<8x128xf32, #tpu.memory_space<vmem>>, vector<8x128xf32>,
    } else {
    }
    %c0 = arith.constant 0 : index
    %c0_1 = arith.constant 0 : index
    %3 = vector.load %arg16[%c0, %c0_1] : memref<8x128xf32, #tpu.memory_space<vmem>>, vector<8x128xf32>
    %c0_2 = arith.constant 0 : index
    %c0_3 = arith.constant 0 : index
    %4 = vector.load %arg17[%c0_2, %c0_3] : memref<8x128xf32, #tpu.memory_space<vmem>>, vector<8x128xf32>
    %c0_4 = arith.constant 0 : index
    %c0_5 = arith.constant 0 : index
    %5 = vector.load %arg18[%c0_4, %c0_5] : memref<8x128xf32, #tpu.memory_space<vmem>>, vector<8x128xf32>
    %c0_6 = arith.constant 0 : index
    %c0_7 = arith.constant 0 : index
    %6 = vector.load %arg19[%c0_6, %c0_7] : memref<8x128xf32, #tpu.memory_space<vmem>>, vector<8x128xf32>
    %c0_8 = arith.constant 0 : index
    %c0_9 = arith.constant 0 : index
    %c0_10 = arith.constant 0 : index
    %7 = vector.load %arg2[%c0_8, %c0_9, %c0_10] : memref<8x8x128xf32, #tpu.memory_space<vmem>>, vector<8x8x128xf32>
    %8 = vector.shape_cast %7 : vector<8x8x128xf32> to vector<64x128xf32>
    %9 = arith.truncf %8 : vector<64x128xf32> to vector<64x128xbf16>
    %c0_11 = arith.constant 0 : index
    %c0_12 = arith.constant 0 : index
    %10 = vector.load %arg5[%c0_11, %c0_12] : memref<128x512xbf16, #tpu.memory_space<vmem>>, vector<128x512xbf16>
    %cst = arith.constant dense<0.000000e+00> : vector<64x512xf32>
    %11 = tpu.matmul %9, %10, %cst {dimension_numbers = #tpu.dot_dimension_numbers<[1], [0], [0], [1], [0, 0, 1, 1], [], []>} : vector<64x128xbf16>, vector<128x512xbf16>, vector<64x512xf32> -> vector<64x512xf32>
    %c0_13 = arith.constant 0 : index
    %c0_14 = arith.constant 0 : index
    %12 = vector.load %arg7[%c0_13, %c0_14] : memref<1x512xf32, #tpu.memory_space<vmem>>, vector<1x512xf32>
    %13 = vector.broadcast %12 : vector<1x512xf32> to vector<64x512xf32>
    %14 = arith.addf %11, %13 : vector<64x512xf32>
    %c0_15 = arith.constant 0 : index
    %c0_16 = arith.constant 0 : index
    %15 = vector.load %arg6[%c0_15, %c0_16] : memref<128x512xf32, #tpu.memory_space<vmem>>, vector<128x512xf32>
    %c0_17 = arith.constant 0 : index
    %c0_18 = arith.constant 0 : index
    %16 = vector.load %arg8[%c0_17, %c0_18] : memref<128x512xf32, #tpu.memory_space<vmem>>, vector<128x512xf32>
    %c0_19 = arith.constant 0 : index
    %c0_20 = arith.constant 0 : index
    %17 = vector.load %arg9[%c0_19, %c0_20] : memref<128x512xf32, #tpu.memory_space<vmem>>, vector<128x512xf32>
    %c0_21 = arith.constant 0 : index
    %c0_22 = arith.constant 0 : index
    %18 = vector.load %arg10[%c0_21, %c0_22] : memref<1x512xf32, #tpu.memory_space<vmem>>, vector<1x512xf32>
    %19 = vector.shape_cast %18 : vector<1x512xf32> to vector<1x512xf32>
    %20 = vector.broadcast %19 : vector<1x512xf32> to vector<8x512xf32>
    %21 = vector.extract_strided_slice %14 {offsets = [0, 0], sizes = [8, 512], strides = [1, 1]} : vector<64x512xf32> to vector<8x512xf32>
    %cst_23 = arith.constant dense<0.000000e+00> : vector<8x512xf32>
    %22 = tpu.matmul %3, %15, %cst_23 {dimension_numbers = #tpu.dot_dimension_numbers<[1], [0], [0], [1], [0, 0, 1, 1], [], []>} : vector<8x128xf32>, vector<128x512xf32>, vector<8x512xf32> -> vector<8x512xf32>
    %23 = arith.addf %21, %22 : vector<8x512xf32>
    %24 = vector.extract_strided_slice %23 {offsets = [0, 0], sizes = [8, 128], strides = [1, 1]} : vector<8x512xf32> to vector<8x128xf32>
    %cst_24 = arith.constant 5.000000e-01 : f32
    %25 = vector.broadcast %cst_24 : f32 to vector<8x128xf32>
    %26 = arith.mulf %25, %24 : vector<8x128xf32>
    %27 = math.tanh %26 : vector<8x128xf32>
    %cst_25 = arith.constant 5.000000e-01 : f32
    %28 = vector.broadcast %cst_25 : f32 to vector<8x128xf32>
    %29 = arith.mulf %28, %27 : vector<8x128xf32>
    %cst_26 = arith.constant 5.000000e-01 : f32
    %30 = vector.broadcast %cst_26 : f32 to vector<8x128xf32>
    %31 = arith.addf %29, %30 : vector<8x128xf32>
    %32 = vector.extract_strided_slice %23 {offsets = [0, 128], sizes = [8, 128], strides = [1, 1]} : vector<8x512xf32> to vector<8x128xf32>
    %cst_27 = arith.constant 5.000000e-01 : f32
    %33 = vector.broadcast %cst_27 : f32 to vector<8x128xf32>
    %34 = arith.mulf %33, %32 : vector<8x128xf32>
    %35 = math.tanh %34 : vector<8x128xf32>
    %cst_28 = arith.constant 5.000000e-01 : f32
    %36 = vector.broadcast %cst_28 : f32 to vector<8x128xf32>
    %37 = arith.mulf %36, %35 : vector<8x128xf32>
    %cst_29 = arith.constant 5.000000e-01 : f32
    %38 = vector.broadcast %cst_29 : f32 to vector<8x128xf32>
    %39 = arith.addf %37, %38 : vector<8x128xf32>
    %40 = vector.extract_strided_slice %23 {offsets = [0, 256], sizes = [8, 128], strides = [1, 1]} : vector<8x512xf32> to vector<8x128xf32>
    %41 = math.tanh %40 : vector<8x128xf32>
    %42 = vector.extract_strided_slice %23 {offsets = [0, 384], sizes = [8, 128], strides = [1, 1]} : vector<8x512xf32> to vector<8x128xf32>
    %cst_30 = arith.constant 5.000000e-01 : f32
    %43 = vector.broadcast %cst_30 : f32 to vector<8x128xf32>
    %44 = arith.mulf %43, %42 : vector<8x128xf32>
    %45 = math.tanh %44 : vector<8x128xf32>
    %cst_31 = arith.constant 5.000000e-01 : f32
    %46 = vector.broadcast %cst_31 : f32 to vector<8x128xf32>
    %47 = arith.mulf %46, %45 : vector<8x128xf32>
    %cst_32 = arith.constant 5.000000e-01 : f32
    %48 = vector.broadcast %cst_32 : f32 to vector<8x128xf32>
    %49 = arith.addf %47, %48 : vector<8x128xf32>
    %50 = arith.mulf %39, %4 : vector<8x128xf32>
    %51 = arith.mulf %31, %41 : vector<8x128xf32>
    %52 = arith.addf %50, %51 : vector<8x128xf32>
    %53 = math.tanh %52 : vector<8x128xf32>
    %54 = arith.mulf %49, %53 : vector<8x128xf32>
    %cst_33 = arith.constant dense<0.000000e+00> : vector<8x512xf32>
    %55 = tpu.matmul %54, %16, %cst_33 {dimension_numbers = #tpu.dot_dimension_numbers<[1], [0], [0], [1], [0, 0, 1, 1], [], []>} : vector<8x128xf32>, vector<128x512xf32>, vector<8x512xf32> -> vector<8x512xf32>
    %cst_34 = arith.constant dense<0.000000e+00> : vector<8x512xf32>
    %56 = tpu.matmul %5, %17, %cst_34 {dimension_numbers = #tpu.dot_dimension_numbers<[1], [0], [0], [1], [0, 0, 1, 1], [], []>} : vector<8x128xf32>, vector<128x512xf32>, vector<8x512xf32> -> vector<8x512xf32>
    %57 = arith.addf %55, %56 : vector<8x512xf32>
    %58 = arith.addf %57, %20 : vector<8x512xf32>
    %59 = vector.extract_strided_slice %58 {offsets = [0, 0], sizes = [8, 128], strides = [1, 1]} : vector<8x512xf32> to vector<8x128xf32>
    %cst_35 = arith.constant 5.000000e-01 : f32
    %60 = vector.broadcast %cst_35 : f32 to vector<8x128xf32>
    %61 = arith.mulf %60, %59 : vector<8x128xf32>
    %62 = math.tanh %61 : vector<8x128xf32>
    %cst_36 = arith.constant 5.000000e-01 : f32
    %63 = vector.broadcast %cst_36 : f32 to vector<8x128xf32>
    %64 = arith.mulf %63, %62 : vector<8x128xf32>
    %cst_37 = arith.constant 5.000000e-01 : f32
    %65 = vector.broadcast %cst_37 : f32 to vector<8x128xf32>
    %66 = arith.addf %64, %65 : vector<8x128xf32>
    %67 = vector.extract_strided_slice %58 {offsets = [0, 128], sizes = [8, 128], strides = [1, 1]} : vector<8x512xf32> to vector<8x128xf32>
    %cst_38 = arith.constant 5.000000e-01 : f32
    %68 = vector.broadcast %cst_38 : f32 to vector<8x128xf32>
    %69 = arith.mulf %68, %67 : vector<8x128xf32>
    %70 = math.tanh %69 : vector<8x128xf32>
    %cst_39 = arith.constant 5.000000e-01 : f32
    %71 = vector.broadcast %cst_39 : f32 to vector<8x128xf32>
    %72 = arith.mulf %71, %70 : vector<8x128xf32>
    %cst_40 = arith.constant 5.000000e-01 : f32
    %73 = vector.broadcast %cst_40 : f32 to vector<8x128xf32>
    %74 = arith.addf %72, %73 : vector<8x128xf32>
    %75 = vector.extract_strided_slice %58 {offsets = [0, 256], sizes = [8, 128], strides = [1, 1]} : vector<8x512xf32> to vector<8x128xf32>
    %76 = math.tanh %75 : vector<8x128xf32>
    %77 = vector.extract_strided_slice %58 {offsets = [0, 384], sizes = [8, 128], strides = [1, 1]} : vector<8x512xf32> to vector<8x128xf32>
    %cst_41 = arith.constant 5.000000e-01 : f32
    %78 = vector.broadcast %cst_41 : f32 to vector<8x128xf32>
    %79 = arith.mulf %78, %77 : vector<8x128xf32>
    %80 = math.tanh %79 : vector<8x128xf32>
    %cst_42 = arith.constant 5.000000e-01 : f32
    %81 = vector.broadcast %cst_42 : f32 to vector<8x128xf32>
    %82 = arith.mulf %81, %80 : vector<8x128xf32>
    %cst_43 = arith.constant 5.000000e-01 : f32
    %83 = vector.broadcast %cst_43 : f32 to vector<8x128xf32>
    %84 = arith.addf %82, %83 : vector<8x128xf32>
    %85 = arith.mulf %74, %6 : vector<8x128xf32>
    %86 = arith.mulf %66, %76 : vector<8x128xf32>
    %87 = arith.addf %85, %86 : vector<8x128xf32>
    %88 = math.tanh %87 : vector<8x128xf32>
    %89 = arith.mulf %84, %88 : vector<8x128xf32>
    %c0_44 = arith.constant 0 : index
    %c0_45 = arith.constant 0 : index
    %c0_46 = arith.constant 0 : index
    %90 = vector.load %arg20[%c0_44, %c0_45, %c0_46] : memref<8x8x128xf32, #tpu.memory_space<vmem>>, vector<1x8x128xf32>
    %91 = vector.shape_cast %90 : vector<1x8x128xf32> to vector<8x128xf32>
    %92 = vector.shape_cast %89 : vector<8x128xf32> to vector<1x8x128xf32>
    tpu.vector_store %arg20[%c0_44, %c0_45, %c0_46], %92 {strides = array<i32>} : memref<8x8x128xf32, #tpu.memory_space<vmem>>, vector<1x8x128xf32>,
    %93 = vector.extract_strided_slice %14 {offsets = [8, 0], sizes = [8, 512], strides = [1, 1]} : vector<64x512xf32> to vector<8x512xf32>
    %cst_47 = arith.constant dense<0.000000e+00> : vector<8x512xf32>
    %94 = tpu.matmul %54, %15, %cst_47 {dimension_numbers = #tpu.dot_dimension_numbers<[1], [0], [0], [1], [0, 0, 1, 1], [], []>} : vector<8x128xf32>, vector<128x512xf32>, vector<8x512xf32> -> vector<8x512xf32>
    %95 = arith.addf %93, %94 : vector<8x512xf32>
    %96 = vector.extract_strided_slice %95 {offsets = [0, 0], sizes = [8, 128], strides = [1, 1]} : vector<8x512xf32> to vector<8x128xf32>
    %cst_48 = arith.constant 5.000000e-01 : f32
    %97 = vector.broadcast %cst_48 : f32 to vector<8x128xf32>
    %98 = arith.mulf %97, %96 : vector<8x128xf32>
    %99 = math.tanh %98 : vector<8x128xf32>
    %cst_49 = arith.constant 5.000000e-01 : f32
    %100 = vector.broadcast %cst_49 : f32 to vector<8x128xf32>
    %101 = arith.mulf %100, %99 : vector<8x128xf32>
    %cst_50 = arith.constant 5.000000e-01 : f32
    %102 = vector.broadcast %cst_50 : f32 to vector<8x128xf32>
    %103 = arith.addf %101, %102 : vector<8x128xf32>
    %104 = vector.extract_strided_slice %95 {offsets = [0, 128], sizes = [8, 128], strides = [1, 1]} : vector<8x512xf32> to vector<8x128xf32>
    %cst_51 = arith.constant 5.000000e-01 : f32
    %105 = vector.broadcast %cst_51 : f32 to vector<8x128xf32>
    %106 = arith.mulf %105, %104 : vector<8x128xf32>
    %107 = math.tanh %106 : vector<8x128xf32>
    %cst_52 = arith.constant 5.000000e-01 : f32
    %108 = vector.broadcast %cst_52 : f32 to vector<8x128xf32>
    %109 = arith.mulf %108, %107 : vector<8x128xf32>
    %cst_53 = arith.constant 5.000000e-01 : f32
    %110 = vector.broadcast %cst_53 : f32 to vector<8x128xf32>
    %111 = arith.addf %109, %110 : vector<8x128xf32>
    %112 = vector.extract_strided_slice %95 {offsets = [0, 256], sizes = [8, 128], strides = [1, 1]} : vector<8x512xf32> to vector<8x128xf32>
    %113 = math.tanh %112 : vector<8x128xf32>
    %114 = vector.extract_strided_slice %95 {offsets = [0, 384], sizes = [8, 128], strides = [1, 1]} : vector<8x512xf32> to vector<8x128xf32>
    %cst_54 = arith.constant 5.000000e-01 : f32
    %115 = vector.broadcast %cst_54 : f32 to vector<8x128xf32>
    %116 = arith.mulf %115, %114 : vector<8x128xf32>
    %117 = math.tanh %116 : vector<8x128xf32>
    %cst_55 = arith.constant 5.000000e-01 : f32
    %118 = vector.broadcast %cst_55 : f32 to vector<8x128xf32>
    %119 = arith.mulf %118, %117 : vector<8x128xf32>
    %cst_56 = arith.constant 5.000000e-01 : f32
    %120 = vector.broadcast %cst_56 : f32 to vector<8x128xf32>
    %121 = arith.addf %119, %120 : vector<8x128xf32>
    %122 = arith.mulf %111, %52 : vector<8x128xf32>
    %123 = arith.mulf %103, %113 : vector<8x128xf32>
    %124 = arith.addf %122, %123 : vector<8x128xf32>
    %125 = math.tanh %124 : vector<8x128xf32>
    %126 = arith.mulf %121, %125 : vector<8x128xf32>
    %cst_57 = arith.constant dense<0.000000e+00> : vector<8x512xf32>
    %127 = tpu.matmul %126, %16, %cst_57 {dimension_numbers = #tpu.dot_dimension_numbers<[1], [0], [0], [1], [0, 0, 1, 1], [], []>} : vector<8x128xf32>, vector<128x512xf32>, vector<8x512xf32> -> vector<8x512xf32>
    %cst_58 = arith.constant dense<0.000000e+00> : vector<8x512xf32>
    %128 = tpu.matmul %89, %17, %cst_58 {dimension_numbers = #tpu.dot_dimension_numbers<[1], [0], [0], [1], [0, 0, 1, 1], [], []>} : vector<8x128xf32>, vector<128x512xf32>, vector<8x512xf32> -> vector<8x512xf32>
    %129 = arith.addf %127, %128 : vector<8x512xf32>
    %130 = arith.addf %129, %20 : vector<8x512xf32>
    %131 = vector.extract_strided_slice %130 {offsets = [0, 0], sizes = [8, 128], strides = [1, 1]} : vector<8x512xf32> to vector<8x128xf32>
    %cst_59 = arith.constant 5.000000e-01 : f32
    %132 = vector.broadcast %cst_59 : f32 to vector<8x128xf32>
    %133 = arith.mulf %132, %131 : vector<8x128xf32>
    %134 = math.tanh %133 : vector<8x128xf32>
    %cst_60 = arith.constant 5.000000e-01 : f32
    %135 = vector.broadcast %cst_60 : f32 to vector<8x128xf32>
    %136 = arith.mulf %135, %134 : vector<8x128xf32>
    %cst_61 = arith.constant 5.000000e-01 : f32
    %137 = vector.broadcast %cst_61 : f32 to vector<8x128xf32>
    %138 = arith.addf %136, %137 : vector<8x128xf32>
    %139 = vector.extract_strided_slice %130 {offsets = [0, 128], sizes = [8, 128], strides = [1, 1]} : vector<8x512xf32> to vector<8x128xf32>
    %cst_62 = arith.constant 5.000000e-01 : f32
    %140 = vector.broadcast %cst_62 : f32 to vector<8x128xf32>
    %141 = arith.mulf %140, %139 : vector<8x128xf32>
    %142 = math.tanh %141 : vector<8x128xf32>
    %cst_63 = arith.constant 5.000000e-01 : f32
    %143 = vector.broadcast %cst_63 : f32 to vector<8x128xf32>
    %144 = arith.mulf %143, %142 : vector<8x128xf32>
    %cst_64 = arith.constant 5.000000e-01 : f32
    %145 = vector.broadcast %cst_64 : f32 to vector<8x128xf32>
    %146 = arith.addf %144, %145 : vector<8x128xf32>
    %147 = vector.extract_strided_slice %130 {offsets = [0, 256], sizes = [8, 128], strides = [1, 1]} : vector<8x512xf32> to vector<8x128xf32>
    %148 = math.tanh %147 : vector<8x128xf32>
    %149 = vector.extract_strided_slice %130 {offsets = [0, 384], sizes = [8, 128], strides = [1, 1]} : vector<8x512xf32> to vector<8x128xf32>
    %cst_65 = arith.constant 5.000000e-01 : f32
    %150 = vector.broadcast %cst_65 : f32 to vector<8x128xf32>
    %151 = arith.mulf %150, %149 : vector<8x128xf32>
    %152 = math.tanh %151 : vector<8x128xf32>
    %cst_66 = arith.constant 5.000000e-01 : f32
    %153 = vector.broadcast %cst_66 : f32 to vector<8x128xf32>
    %154 = arith.mulf %153, %152 : vector<8x128xf32>
    %cst_67 = arith.constant 5.000000e-01 : f32
    %155 = vector.broadcast %cst_67 : f32 to vector<8x128xf32>
    %156 = arith.addf %154, %155 : vector<8x128xf32>
    %157 = arith.mulf %146, %87 : vector<8x128xf32>
    %158 = arith.mulf %138, %148 : vector<8x128xf32>
    %159 = arith.addf %157, %158 : vector<8x128xf32>
    %160 = math.tanh %159 : vector<8x128xf32>
    %161 = arith.mulf %156, %160 : vector<8x128xf32>
    %c1 = arith.constant 1 : index
    %c0_68 = arith.constant 0 : index
    %c0_69 = arith.constant 0 : index
    %162 = vector.load %arg20[%c1, %c0_68, %c0_69] : memref<8x8x128xf32, #tpu.memory_space<vmem>>, vector<1x8x128xf32>
    %163 = vector.shape_cast %162 : vector<1x8x128xf32> to vector<8x128xf32>
    %164 = vector.shape_cast %161 : vector<8x128xf32> to vector<1x8x128xf32>
    tpu.vector_store %arg20[%c1, %c0_68, %c0_69], %164 {strides = array<i32>} : memref<8x8x128xf32, #tpu.memory_space<vmem>>, vector<1x8x128xf32>,
    %165 = vector.extract_strided_slice %14 {offsets = [16, 0], sizes = [8, 512], strides = [1, 1]} : vector<64x512xf32> to vector<8x512xf32>
    %cst_70 = arith.constant dense<0.000000e+00> : vector<8x512xf32>
    %166 = tpu.matmul %126, %15, %cst_70 {dimension_numbers = #tpu.dot_dimension_numbers<[1], [0], [0], [1], [0, 0, 1, 1], [], []>} : vector<8x128xf32>, vector<128x512xf32>, vector<8x512xf32> -> vector<8x512xf32>
    %167 = arith.addf %165, %166 : vector<8x512xf32>
    %168 = vector.extract_strided_slice %167 {offsets = [0, 0], sizes = [8, 128], strides = [1, 1]} : vector<8x512xf32> to vector<8x128xf32>
    %cst_71 = arith.constant 5.000000e-01 : f32
    %169 = vector.broadcast %cst_71 : f32 to vector<8x128xf32>
    %170 = arith.mulf %169, %168 : vector<8x128xf32>
    %171 = math.tanh %170 : vector<8x128xf32>
    %cst_72 = arith.constant 5.000000e-01 : f32
    %172 = vector.broadcast %cst_72 : f32 to vector<8x128xf32>
    %173 = arith.mulf %172, %171 : vector<8x128xf32>
    %cst_73 = arith.constant 5.000000e-01 : f32
    %174 = vector.broadcast %cst_73 : f32 to vector<8x128xf32>
    %175 = arith.addf %173, %174 : vector<8x128xf32>
    %176 = vector.extract_strided_slice %167 {offsets = [0, 128], sizes = [8, 128], strides = [1, 1]} : vector<8x512xf32> to vector<8x128xf32>
    %cst_74 = arith.constant 5.000000e-01 : f32
    %177 = vector.broadcast %cst_74 : f32 to vector<8x128xf32>
    %178 = arith.mulf %177, %176 : vector<8x128xf32>
    %179 = math.tanh %178 : vector<8x128xf32>
    %cst_75 = arith.constant 5.000000e-01 : f32
    %180 = vector.broadcast %cst_75 : f32 to vector<8x128xf32>
    %181 = arith.mulf %180, %179 : vector<8x128xf32>
    %cst_76 = arith.constant 5.000000e-01 : f32
    %182 = vector.broadcast %cst_76 : f32 to vector<8x128xf32>
    %183 = arith.addf %181, %182 : vector<8x128xf32>
    %184 = vector.extract_strided_slice %167 {offsets = [0, 256], sizes = [8, 128], strides = [1, 1]} : vector<8x512xf32> to vector<8x128xf32>
    %185 = math.tanh %184 : vector<8x128xf32>
    %186 = vector.extract_strided_slice %167 {offsets = [0, 384], sizes = [8, 128], strides = [1, 1]} : vector<8x512xf32> to vector<8x128xf32>
    %cst_77 = arith.constant 5.000000e-01 : f32
    %187 = vector.broadcast %cst_77 : f32 to vector<8x128xf32>
    %188 = arith.mulf %187, %186 : vector<8x128xf32>
    %189 = math.tanh %188 : vector<8x128xf32>
    %cst_78 = arith.constant 5.000000e-01 : f32
    %190 = vector.broadcast %cst_78 : f32 to vector<8x128xf32>
    %191 = arith.mulf %190, %189 : vector<8x128xf32>
    %cst_79 = arith.constant 5.000000e-01 : f32
    %192 = vector.broadcast %cst_79 : f32 to vector<8x128xf32>
    %193 = arith.addf %191, %192 : vector<8x128xf32>
    %194 = arith.mulf %183, %124 : vector<8x128xf32>
    %195 = arith.mulf %175, %185 : vector<8x128xf32>
    %196 = arith.addf %194, %195 : vector<8x128xf32>
    %197 = math.tanh %196 : vector<8x128xf32>
    %198 = arith.mulf %193, %197 : vector<8x128xf32>
    %cst_80 = arith.constant dense<0.000000e+00> : vector<8x512xf32>
    %199 = tpu.matmul %198, %16, %cst_80 {dimension_numbers = #tpu.dot_dimension_numbers<[1], [0], [0], [1], [0, 0, 1, 1], [], []>} : vector<8x128xf32>, vector<128x512xf32>, vector<8x512xf32> -> vector<8x512xf32>
    %cst_81 = arith.constant dense<0.000000e+00> : vector<8x512xf32>
    %200 = tpu.matmul %161, %17, %cst_81 {dimension_numbers = #tpu.dot_dimension_numbers<[1], [0], [0], [1], [0, 0, 1, 1], [], []>} : vector<8x128xf32>, vector<128x512xf32>, vector<8x512xf32> -> vector<8x512xf32>
    %201 = arith.addf %199, %200 : vector<8x512xf32>
    %202 = arith.addf %201, %20 : vector<8x512xf32>
    %203 = vector.extract_strided_slice %202 {offsets = [0, 0], sizes = [8, 128], strides = [1, 1]} : vector<8x512xf32> to vector<8x128xf32>
    %cst_82 = arith.constant 5.000000e-01 : f32
    %204 = vector.broadcast %cst_82 : f32 to vector<8x128xf32>
    %205 = arith.mulf %204, %203 : vector<8x128xf32>
    %206 = math.tanh %205 : vector<8x128xf32>
    %cst_83 = arith.constant 5.000000e-01 : f32
    %207 = vector.broadcast %cst_83 : f32 to vector<8x128xf32>
    %208 = arith.mulf %207, %206 : vector<8x128xf32>
    %cst_84 = arith.constant 5.000000e-01 : f32
    %209 = vector.broadcast %cst_84 : f32 to vector<8x128xf32>
    %210 = arith.addf %208, %209 : vector<8x128xf32>
    %211 = vector.extract_strided_slice %202 {offsets = [0, 128], sizes = [8, 128], strides = [1, 1]} : vector<8x512xf32> to vector<8x128xf32>
    %cst_85 = arith.constant 5.000000e-01 : f32
    %212 = vector.broadcast %cst_85 : f32 to vector<8x128xf32>
    %213 = arith.mulf %212, %211 : vector<8x128xf32>
    %214 = math.tanh %213 : vector<8x128xf32>
    %cst_86 = arith.constant 5.000000e-01 : f32
    %215 = vector.broadcast %cst_86 : f32 to vector<8x128xf32>
    %216 = arith.mulf %215, %214 : vector<8x128xf32>
    %cst_87 = arith.constant 5.000000e-01 : f32
    %217 = vector.broadcast %cst_87 : f32 to vector<8x128xf32>
    %218 = arith.addf %216, %217 : vector<8x128xf32>
    %219 = vector.extract_strided_slice %202 {offsets = [0, 256], sizes = [8, 128], strides = [1, 1]} : vector<8x512xf32> to vector<8x128xf32>
    %220 = math.tanh %219 : vector<8x128xf32>
    %221 = vector.extract_strided_slice %202 {offsets = [0, 384], sizes = [8, 128], strides = [1, 1]} : vector<8x512xf32> to vector<8x128xf32>
    %cst_88 = arith.constant 5.000000e-01 : f32
    %222 = vector.broadcast %cst_88 : f32 to vector<8x128xf32>
    %223 = arith.mulf %222, %221 : vector<8x128xf32>
    %224 = math.tanh %223 : vector<8x128xf32>
    %cst_89 = arith.constant 5.000000e-01 : f32
    %225 = vector.broadcast %cst_89 : f32 to vector<8x128xf32>
    %226 = arith.mulf %225, %224 : vector<8x128xf32>
    %cst_90 = arith.constant 5.000000e-01 : f32
    %227 = vector.broadcast %cst_90 : f32 to vector<8x128xf32>
    %228 = arith.addf %226, %227 : vector<8x128xf32>
    %229 = arith.mulf %218, %159 : vector<8x128xf32>
    %230 = arith.mulf %210, %220 : vector<8x128xf32>
    %231 = arith.addf %229, %230 : vector<8x128xf32>
    %232 = math.tanh %231 : vector<8x128xf32>
    %233 = arith.mulf %228, %232 : vector<8x128xf32>
    %c2 = arith.constant 2 : index
    %c0_91 = arith.constant 0 : index
    %c0_92 = arith.constant 0 : index
    %234 = vector.load %arg20[%c2, %c0_91, %c0_92] : memref<8x8x128xf32, #tpu.memory_space<vmem>>, vector<1x8x128xf32>
    %235 = vector.shape_cast %234 : vector<1x8x128xf32> to vector<8x128xf32>
    %236 = vector.shape_cast %233 : vector<8x128xf32> to vector<1x8x128xf32>
    tpu.vector_store %arg20[%c2, %c0_91, %c0_92], %236 {strides = array<i32>} : memref<8x8x128xf32, #tpu.memory_space<vmem>>, vector<1x8x128xf32>,
    %237 = vector.extract_strided_slice %14 {offsets = [24, 0], sizes = [8, 512], strides = [1, 1]} : vector<64x512xf32> to vector<8x512xf32>
    %cst_93 = arith.constant dense<0.000000e+00> : vector<8x512xf32>
    %238 = tpu.matmul %198, %15, %cst_93 {dimension_numbers = #tpu.dot_dimension_numbers<[1], [0], [0], [1], [0, 0, 1, 1], [], []>} : vector<8x128xf32>, vector<128x512xf32>, vector<8x512xf32> -> vector<8x512xf32>
    %239 = arith.addf %237, %238 : vector<8x512xf32>
    %240 = vector.extract_strided_slice %239 {offsets = [0, 0], sizes = [8, 128], strides = [1, 1]} : vector<8x512xf32> to vector<8x128xf32>
    %cst_94 = arith.constant 5.000000e-01 : f32
    %241 = vector.broadcast %cst_94 : f32 to vector<8x128xf32>
    %242 = arith.mulf %241, %240 : vector<8x128xf32>
    %243 = math.tanh %242 : vector<8x128xf32>
    %cst_95 = arith.constant 5.000000e-01 : f32
    %244 = vector.broadcast %cst_95 : f32 to vector<8x128xf32>
    %245 = arith.mulf %244, %243 : vector<8x128xf32>
    %cst_96 = arith.constant 5.000000e-01 : f32
    %246 = vector.broadcast %cst_96 : f32 to vector<8x128xf32>
    %247 = arith.addf %245, %246 : vector<8x128xf32>
    %248 = vector.extract_strided_slice %239 {offsets = [0, 128], sizes = [8, 128], strides = [1, 1]} : vector<8x512xf32> to vector<8x128xf32>
    %cst_97 = arith.constant 5.000000e-01 : f32
    %249 = vector.broadcast %cst_97 : f32 to vector<8x128xf32>
    %250 = arith.mulf %249, %248 : vector<8x128xf32>
    %251 = math.tanh %250 : vector<8x128xf32>
    %cst_98 = arith.constant 5.000000e-01 : f32
    %252 = vector.broadcast %cst_98 : f32 to vector<8x128xf32>
    %253 = arith.mulf %252, %251 : vector<8x128xf32>
    %cst_99 = arith.constant 5.000000e-01 : f32
    %254 = vector.broadcast %cst_99 : f32 to vector<8x128xf32>
    %255 = arith.addf %253, %254 : vector<8x128xf32>
    %256 = vector.extract_strided_slice %239 {offsets = [0, 256], sizes = [8, 128], strides = [1, 1]} : vector<8x512xf32> to vector<8x128xf32>
    %257 = math.tanh %256 : vector<8x128xf32>
    %258 = vector.extract_strided_slice %239 {offsets = [0, 384], sizes = [8, 128], strides = [1, 1]} : vector<8x512xf32> to vector<8x128xf32>
    %cst_100 = arith.constant 5.000000e-01 : f32
    %259 = vector.broadcast %cst_100 : f32 to vector<8x128xf32>
    %260 = arith.mulf %259, %258 : vector<8x128xf32>
    %261 = math.tanh %260 : vector<8x128xf32>
    %cst_101 = arith.constant 5.000000e-01 : f32
    %262 = vector.broadcast %cst_101 : f32 to vector<8x128xf32>
    %263 = arith.mulf %262, %261 : vector<8x128xf32>
    %cst_102 = arith.constant 5.000000e-01 : f32
    %264 = vector.broadcast %cst_102 : f32 to vector<8x128xf32>
    %265 = arith.addf %263, %264 : vector<8x128xf32>
    %266 = arith.mulf %255, %196 : vector<8x128xf32>
    %267 = arith.mulf %247, %257 : vector<8x128xf32>
    %268 = arith.addf %266, %267 : vector<8x128xf32>
    %269 = math.tanh %268 : vector<8x128xf32>
    %270 = arith.mulf %265, %269 : vector<8x128xf32>
    %cst_103 = arith.constant dense<0.000000e+00> : vector<8x512xf32>
    %271 = tpu.matmul %270, %16, %cst_103 {dimension_numbers = #tpu.dot_dimension_numbers<[1], [0], [0], [1], [0, 0, 1, 1], [], []>} : vector<8x128xf32>, vector<128x512xf32>, vector<8x512xf32> -> vector<8x512xf32>
    %cst_104 = arith.constant dense<0.000000e+00> : vector<8x512xf32>
    %272 = tpu.matmul %233, %17, %cst_104 {dimension_numbers = #tpu.dot_dimension_numbers<[1], [0], [0], [1], [0, 0, 1, 1], [], []>} : vector<8x128xf32>, vector<128x512xf32>, vector<8x512xf32> -> vector<8x512xf32>
    %273 = arith.addf %271, %272 : vector<8x512xf32>
    %274 = arith.addf %273, %20 : vector<8x512xf32>
    %275 = vector.extract_strided_slice %274 {offsets = [0, 0], sizes = [8, 128], strides = [1, 1]} : vector<8x512xf32> to vector<8x128xf32>
    %cst_105 = arith.constant 5.000000e-01 : f32
    %276 = vector.broadcast %cst_105 : f32 to vector<8x128xf32>
    %277 = arith.mulf %276, %275 : vector<8x128xf32>
    %278 = math.tanh %277 : vector<8x128xf32>
    %cst_106 = arith.constant 5.000000e-01 : f32
    %279 = vector.broadcast %cst_106 : f32 to vector<8x128xf32>
    %280 = arith.mulf %279, %278 : vector<8x128xf32>
    %cst_107 = arith.constant 5.000000e-01 : f32
    %281 = vector.broadcast %cst_107 : f32 to vector<8x128xf32>
    %282 = arith.addf %280, %281 : vector<8x128xf32>
    %283 = vector.extract_strided_slice %274 {offsets = [0, 128], sizes = [8, 128], strides = [1, 1]} : vector<8x512xf32> to vector<8x128xf32>
    %cst_108 = arith.constant 5.000000e-01 : f32
    %284 = vector.broadcast %cst_108 : f32 to vector<8x128xf32>
    %285 = arith.mulf %284, %283 : vector<8x128xf32>
    %286 = math.tanh %285 : vector<8x128xf32>
    %cst_109 = arith.constant 5.000000e-01 : f32
    %287 = vector.broadcast %cst_109 : f32 to vector<8x128xf32>
    %288 = arith.mulf %287, %286 : vector<8x128xf32>
    %cst_110 = arith.constant 5.000000e-01 : f32
    %289 = vector.broadcast %cst_110 : f32 to vector<8x128xf32>
    %290 = arith.addf %288, %289 : vector<8x128xf32>
    %291 = vector.extract_strided_slice %274 {offsets = [0, 256], sizes = [8, 128], strides = [1, 1]} : vector<8x512xf32> to vector<8x128xf32>
    %292 = math.tanh %291 : vector<8x128xf32>
    %293 = vector.extract_strided_slice %274 {offsets = [0, 384], sizes = [8, 128], strides = [1, 1]} : vector<8x512xf32> to vector<8x128xf32>
    %cst_111 = arith.constant 5.000000e-01 : f32
    %294 = vector.broadcast %cst_111 : f32 to vector<8x128xf32>
    %295 = arith.mulf %294, %293 : vector<8x128xf32>
    %296 = math.tanh %295 : vector<8x128xf32>
    %cst_112 = arith.constant 5.000000e-01 : f32
    %297 = vector.broadcast %cst_112 : f32 to vector<8x128xf32>
    %298 = arith.mulf %297, %296 : vector<8x128xf32>
    %cst_113 = arith.constant 5.000000e-01 : f32
    %299 = vector.broadcast %cst_113 : f32 to vector<8x128xf32>
    %300 = arith.addf %298, %299 : vector<8x128xf32>
    %301 = arith.mulf %290, %231 : vector<8x128xf32>
    %302 = arith.mulf %282, %292 : vector<8x128xf32>
    %303 = arith.addf %301, %302 : vector<8x128xf32>
    %304 = math.tanh %303 : vector<8x128xf32>
    %305 = arith.mulf %300, %304 : vector<8x128xf32>
    %c3 = arith.constant 3 : index
    %c0_114 = arith.constant 0 : index
    %c0_115 = arith.constant 0 : index
    %306 = vector.load %arg20[%c3, %c0_114, %c0_115] : memref<8x8x128xf32, #tpu.memory_space<vmem>>, vector<1x8x128xf32>
    %307 = vector.shape_cast %306 : vector<1x8x128xf32> to vector<8x128xf32>
    %308 = vector.shape_cast %305 : vector<8x128xf32> to vector<1x8x128xf32>
    tpu.vector_store %arg20[%c3, %c0_114, %c0_115], %308 {strides = array<i32>} : memref<8x8x128xf32, #tpu.memory_space<vmem>>, vector<1x8x128xf32>,
    %309 = vector.extract_strided_slice %14 {offsets = [32, 0], sizes = [8, 512], strides = [1, 1]} : vector<64x512xf32> to vector<8x512xf32>
    %cst_116 = arith.constant dense<0.000000e+00> : vector<8x512xf32>
    %310 = tpu.matmul %270, %15, %cst_116 {dimension_numbers = #tpu.dot_dimension_numbers<[1], [0], [0], [1], [0, 0, 1, 1], [], []>} : vector<8x128xf32>, vector<128x512xf32>, vector<8x512xf32> -> vector<8x512xf32>
    %311 = arith.addf %309, %310 : vector<8x512xf32>
    %312 = vector.extract_strided_slice %311 {offsets = [0, 0], sizes = [8, 128], strides = [1, 1]} : vector<8x512xf32> to vector<8x128xf32>
    %cst_117 = arith.constant 5.000000e-01 : f32
    %313 = vector.broadcast %cst_117 : f32 to vector<8x128xf32>
    %314 = arith.mulf %313, %312 : vector<8x128xf32>
    %315 = math.tanh %314 : vector<8x128xf32>
    %cst_118 = arith.constant 5.000000e-01 : f32
    %316 = vector.broadcast %cst_118 : f32 to vector<8x128xf32>
    %317 = arith.mulf %316, %315 : vector<8x128xf32>
    %cst_119 = arith.constant 5.000000e-01 : f32
    %318 = vector.broadcast %cst_119 : f32 to vector<8x128xf32>
    %319 = arith.addf %317, %318 : vector<8x128xf32>
    %320 = vector.extract_strided_slice %311 {offsets = [0, 128], sizes = [8, 128], strides = [1, 1]} : vector<8x512xf32> to vector<8x128xf32>
    %cst_120 = arith.constant 5.000000e-01 : f32
    %321 = vector.broadcast %cst_120 : f32 to vector<8x128xf32>
    %322 = arith.mulf %321, %320 : vector<8x128xf32>
    %323 = math.tanh %322 : vector<8x128xf32>
    %cst_121 = arith.constant 5.000000e-01 : f32
    %324 = vector.broadcast %cst_121 : f32 to vector<8x128xf32>
    %325 = arith.mulf %324, %323 : vector<8x128xf32>
    %cst_122 = arith.constant 5.000000e-01 : f32
    %326 = vector.broadcast %cst_122 : f32 to vector<8x128xf32>
    %327 = arith.addf %325, %326 : vector<8x128xf32>
    %328 = vector.extract_strided_slice %311 {offsets = [0, 256], sizes = [8, 128], strides = [1, 1]} : vector<8x512xf32> to vector<8x128xf32>
    %329 = math.tanh %328 : vector<8x128xf32>
    %330 = vector.extract_strided_slice %311 {offsets = [0, 384], sizes = [8, 128], strides = [1, 1]} : vector<8x512xf32> to vector<8x128xf32>
    %cst_123 = arith.constant 5.000000e-01 : f32
    %331 = vector.broadcast %cst_123 : f32 to vector<8x128xf32>
    %332 = arith.mulf %331, %330 : vector<8x128xf32>
    %333 = math.tanh %332 : vector<8x128xf32>
    %cst_124 = arith.constant 5.000000e-01 : f32
    %334 = vector.broadcast %cst_124 : f32 to vector<8x128xf32>
    %335 = arith.mulf %334, %333 : vector<8x128xf32>
    %cst_125 = arith.constant 5.000000e-01 : f32
    %336 = vector.broadcast %cst_125 : f32 to vector<8x128xf32>
    %337 = arith.addf %335, %336 : vector<8x128xf32>
    %338 = arith.mulf %327, %268 : vector<8x128xf32>
    %339 = arith.mulf %319, %329 : vector<8x128xf32>
    %340 = arith.addf %338, %339 : vector<8x128xf32>
    %341 = math.tanh %340 : vector<8x128xf32>
    %342 = arith.mulf %337, %341 : vector<8x128xf32>
    %cst_126 = arith.constant dense<0.000000e+00> : vector<8x512xf32>
    %343 = tpu.matmul %342, %16, %cst_126 {dimension_numbers = #tpu.dot_dimension_numbers<[1], [0], [0], [1], [0, 0, 1, 1], [], []>} : vector<8x128xf32>, vector<128x512xf32>, vector<8x512xf32> -> vector<8x512xf32>
    %cst_127 = arith.constant dense<0.000000e+00> : vector<8x512xf32>
    %344 = tpu.matmul %305, %17, %cst_127 {dimension_numbers = #tpu.dot_dimension_numbers<[1], [0], [0], [1], [0, 0, 1, 1], [], []>} : vector<8x128xf32>, vector<128x512xf32>, vector<8x512xf32> -> vector<8x512xf32>
    %345 = arith.addf %343, %344 : vector<8x512xf32>
    %346 = arith.addf %345, %20 : vector<8x512xf32>
    %347 = vector.extract_strided_slice %346 {offsets = [0, 0], sizes = [8, 128], strides = [1, 1]} : vector<8x512xf32> to vector<8x128xf32>
    %cst_128 = arith.constant 5.000000e-01 : f32
    %348 = vector.broadcast %cst_128 : f32 to vector<8x128xf32>
    %349 = arith.mulf %348, %347 : vector<8x128xf32>
    %350 = math.tanh %349 : vector<8x128xf32>
    %cst_129 = arith.constant 5.000000e-01 : f32
    %351 = vector.broadcast %cst_129 : f32 to vector<8x128xf32>
    %352 = arith.mulf %351, %350 : vector<8x128xf32>
    %cst_130 = arith.constant 5.000000e-01 : f32
    %353 = vector.broadcast %cst_130 : f32 to vector<8x128xf32>
    %354 = arith.addf %352, %353 : vector<8x128xf32>
    %355 = vector.extract_strided_slice %346 {offsets = [0, 128], sizes = [8, 128], strides = [1, 1]} : vector<8x512xf32> to vector<8x128xf32>
    %cst_131 = arith.constant 5.000000e-01 : f32
    %356 = vector.broadcast %cst_131 : f32 to vector<8x128xf32>
    %357 = arith.mulf %356, %355 : vector<8x128xf32>
    %358 = math.tanh %357 : vector<8x128xf32>
    %cst_132 = arith.constant 5.000000e-01 : f32
    %359 = vector.broadcast %cst_132 : f32 to vector<8x128xf32>
    %360 = arith.mulf %359, %358 : vector<8x128xf32>
    %cst_133 = arith.constant 5.000000e-01 : f32
    %361 = vector.broadcast %cst_133 : f32 to vector<8x128xf32>
    %362 = arith.addf %360, %361 : vector<8x128xf32>
    %363 = vector.extract_strided_slice %346 {offsets = [0, 256], sizes = [8, 128], strides = [1, 1]} : vector<8x512xf32> to vector<8x128xf32>
    %364 = math.tanh %363 : vector<8x128xf32>
    %365 = vector.extract_strided_slice %346 {offsets = [0, 384], sizes = [8, 128], strides = [1, 1]} : vector<8x512xf32> to vector<8x128xf32>
    %cst_134 = arith.constant 5.000000e-01 : f32
    %366 = vector.broadcast %cst_134 : f32 to vector<8x128xf32>
    %367 = arith.mulf %366, %365 : vector<8x128xf32>
    %368 = math.tanh %367 : vector<8x128xf32>
    %cst_135 = arith.constant 5.000000e-01 : f32
    %369 = vector.broadcast %cst_135 : f32 to vector<8x128xf32>
    %370 = arith.mulf %369, %368 : vector<8x128xf32>
    %cst_136 = arith.constant 5.000000e-01 : f32
    %371 = vector.broadcast %cst_136 : f32 to vector<8x128xf32>
    %372 = arith.addf %370, %371 : vector<8x128xf32>
    %373 = arith.mulf %362, %303 : vector<8x128xf32>
    %374 = arith.mulf %354, %364 : vector<8x128xf32>
    %375 = arith.addf %373, %374 : vector<8x128xf32>
    %376 = math.tanh %375 : vector<8x128xf32>
    %377 = arith.mulf %372, %376 : vector<8x128xf32>
    %c4 = arith.constant 4 : index
    %c0_137 = arith.constant 0 : index
    %c0_138 = arith.constant 0 : index
    %378 = vector.load %arg20[%c4, %c0_137, %c0_138] : memref<8x8x128xf32, #tpu.memory_space<vmem>>, vector<1x8x128xf32>
    %379 = vector.shape_cast %378 : vector<1x8x128xf32> to vector<8x128xf32>
    %380 = vector.shape_cast %377 : vector<8x128xf32> to vector<1x8x128xf32>
    tpu.vector_store %arg20[%c4, %c0_137, %c0_138], %380 {strides = array<i32>} : memref<8x8x128xf32, #tpu.memory_space<vmem>>, vector<1x8x128xf32>,
    %381 = vector.extract_strided_slice %14 {offsets = [40, 0], sizes = [8, 512], strides = [1, 1]} : vector<64x512xf32> to vector<8x512xf32>
    %cst_139 = arith.constant dense<0.000000e+00> : vector<8x512xf32>
    %382 = tpu.matmul %342, %15, %cst_139 {dimension_numbers = #tpu.dot_dimension_numbers<[1], [0], [0], [1], [0, 0, 1, 1], [], []>} : vector<8x128xf32>, vector<128x512xf32>, vector<8x512xf32> -> vector<8x512xf32>
    %383 = arith.addf %381, %382 : vector<8x512xf32>
    %384 = vector.extract_strided_slice %383 {offsets = [0, 0], sizes = [8, 128], strides = [1, 1]} : vector<8x512xf32> to vector<8x128xf32>
    %cst_140 = arith.constant 5.000000e-01 : f32
    %385 = vector.broadcast %cst_140 : f32 to vector<8x128xf32>
    %386 = arith.mulf %385, %384 : vector<8x128xf32>
    %387 = math.tanh %386 : vector<8x128xf32>
    %cst_141 = arith.constant 5.000000e-01 : f32
    %388 = vector.broadcast %cst_141 : f32 to vector<8x128xf32>
    %389 = arith.mulf %388, %387 : vector<8x128xf32>
    %cst_142 = arith.constant 5.000000e-01 : f32
    %390 = vector.broadcast %cst_142 : f32 to vector<8x128xf32>
    %391 = arith.addf %389, %390 : vector<8x128xf32>
    %392 = vector.extract_strided_slice %383 {offsets = [0, 128], sizes = [8, 128], strides = [1, 1]} : vector<8x512xf32> to vector<8x128xf32>
    %cst_143 = arith.constant 5.000000e-01 : f32
    %393 = vector.broadcast %cst_143 : f32 to vector<8x128xf32>
    %394 = arith.mulf %393, %392 : vector<8x128xf32>
    %395 = math.tanh %394 : vector<8x128xf32>
    %cst_144 = arith.constant 5.000000e-01 : f32
    %396 = vector.broadcast %cst_144 : f32 to vector<8x128xf32>
    %397 = arith.mulf %396, %395 : vector<8x128xf32>
    %cst_145 = arith.constant 5.000000e-01 : f32
    %398 = vector.broadcast %cst_145 : f32 to vector<8x128xf32>
    %399 = arith.addf %397, %398 : vector<8x128xf32>
    %400 = vector.extract_strided_slice %383 {offsets = [0, 256], sizes = [8, 128], strides = [1, 1]} : vector<8x512xf32> to vector<8x128xf32>
    %401 = math.tanh %400 : vector<8x128xf32>
    %402 = vector.extract_strided_slice %383 {offsets = [0, 384], sizes = [8, 128], strides = [1, 1]} : vector<8x512xf32> to vector<8x128xf32>
    %cst_146 = arith.constant 5.000000e-01 : f32
    %403 = vector.broadcast %cst_146 : f32 to vector<8x128xf32>
    %404 = arith.mulf %403, %402 : vector<8x128xf32>
    %405 = math.tanh %404 : vector<8x128xf32>
    %cst_147 = arith.constant 5.000000e-01 : f32
    %406 = vector.broadcast %cst_147 : f32 to vector<8x128xf32>
    %407 = arith.mulf %406, %405 : vector<8x128xf32>
    %cst_148 = arith.constant 5.000000e-01 : f32
    %408 = vector.broadcast %cst_148 : f32 to vector<8x128xf32>
    %409 = arith.addf %407, %408 : vector<8x128xf32>
    %410 = arith.mulf %399, %340 : vector<8x128xf32>
    %411 = arith.mulf %391, %401 : vector<8x128xf32>
    %412 = arith.addf %410, %411 : vector<8x128xf32>
    %413 = math.tanh %412 : vector<8x128xf32>
    %414 = arith.mulf %409, %413 : vector<8x128xf32>
    %cst_149 = arith.constant dense<0.000000e+00> : vector<8x512xf32>
    %415 = tpu.matmul %414, %16, %cst_149 {dimension_numbers = #tpu.dot_dimension_numbers<[1], [0], [0], [1], [0, 0, 1, 1], [], []>} : vector<8x128xf32>, vector<128x512xf32>, vector<8x512xf32> -> vector<8x512xf32>
    %cst_150 = arith.constant dense<0.000000e+00> : vector<8x512xf32>
    %416 = tpu.matmul %377, %17, %cst_150 {dimension_numbers = #tpu.dot_dimension_numbers<[1], [0], [0], [1], [0, 0, 1, 1], [], []>} : vector<8x128xf32>, vector<128x512xf32>, vector<8x512xf32> -> vector<8x512xf32>
    %417 = arith.addf %415, %416 : vector<8x512xf32>
    %418 = arith.addf %417, %20 : vector<8x512xf32>
    %419 = vector.extract_strided_slice %418 {offsets = [0, 0], sizes = [8, 128], strides = [1, 1]} : vector<8x512xf32> to vector<8x128xf32>
    %cst_151 = arith.constant 5.000000e-01 : f32
    %420 = vector.broadcast %cst_151 : f32 to vector<8x128xf32>
    %421 = arith.mulf %420, %419 : vector<8x128xf32>
    %422 = math.tanh %421 : vector<8x128xf32>
    %cst_152 = arith.constant 5.000000e-01 : f32
    %423 = vector.broadcast %cst_152 : f32 to vector<8x128xf32>
    %424 = arith.mulf %423, %422 : vector<8x128xf32>
    %cst_153 = arith.constant 5.000000e-01 : f32
    %425 = vector.broadcast %cst_153 : f32 to vector<8x128xf32>
    %426 = arith.addf %424, %425 : vector<8x128xf32>
    %427 = vector.extract_strided_slice %418 {offsets = [0, 128], sizes = [8, 128], strides = [1, 1]} : vector<8x512xf32> to vector<8x128xf32>
    %cst_154 = arith.constant 5.000000e-01 : f32
    %428 = vector.broadcast %cst_154 : f32 to vector<8x128xf32>
    %429 = arith.mulf %428, %427 : vector<8x128xf32>
    %430 = math.tanh %429 : vector<8x128xf32>
    %cst_155 = arith.constant 5.000000e-01 : f32
    %431 = vector.broadcast %cst_155 : f32 to vector<8x128xf32>
    %432 = arith.mulf %431, %430 : vector<8x128xf32>
    %cst_156 = arith.constant 5.000000e-01 : f32
    %433 = vector.broadcast %cst_156 : f32 to vector<8x128xf32>
    %434 = arith.addf %432, %433 : vector<8x128xf32>
    %435 = vector.extract_strided_slice %418 {offsets = [0, 256], sizes = [8, 128], strides = [1, 1]} : vector<8x512xf32> to vector<8x128xf32>
    %436 = math.tanh %435 : vector<8x128xf32>
    %437 = vector.extract_strided_slice %418 {offsets = [0, 384], sizes = [8, 128], strides = [1, 1]} : vector<8x512xf32> to vector<8x128xf32>
    %cst_157 = arith.constant 5.000000e-01 : f32
    %438 = vector.broadcast %cst_157 : f32 to vector<8x128xf32>
    %439 = arith.mulf %438, %437 : vector<8x128xf32>
    %440 = math.tanh %439 : vector<8x128xf32>
    %cst_158 = arith.constant 5.000000e-01 : f32
    %441 = vector.broadcast %cst_158 : f32 to vector<8x128xf32>
    %442 = arith.mulf %441, %440 : vector<8x128xf32>
    %cst_159 = arith.constant 5.000000e-01 : f32
    %443 = vector.broadcast %cst_159 : f32 to vector<8x128xf32>
    %444 = arith.addf %442, %443 : vector<8x128xf32>
    %445 = arith.mulf %434, %375 : vector<8x128xf32>
    %446 = arith.mulf %426, %436 : vector<8x128xf32>
    %447 = arith.addf %445, %446 : vector<8x128xf32>
    %448 = math.tanh %447 : vector<8x128xf32>
    %449 = arith.mulf %444, %448 : vector<8x128xf32>
    %c5 = arith.constant 5 : index
    %c0_160 = arith.constant 0 : index
    %c0_161 = arith.constant 0 : index
    %450 = vector.load %arg20[%c5, %c0_160, %c0_161] : memref<8x8x128xf32, #tpu.memory_space<vmem>>, vector<1x8x128xf32>
    %451 = vector.shape_cast %450 : vector<1x8x128xf32> to vector<8x128xf32>
    %452 = vector.shape_cast %449 : vector<8x128xf32> to vector<1x8x128xf32>
    tpu.vector_store %arg20[%c5, %c0_160, %c0_161], %452 {strides = array<i32>} : memref<8x8x128xf32, #tpu.memory_space<vmem>>, vector<1x8x128xf32>,
    %453 = vector.extract_strided_slice %14 {offsets = [48, 0], sizes = [8, 512], strides = [1, 1]} : vector<64x512xf32> to vector<8x512xf32>
    %cst_162 = arith.constant dense<0.000000e+00> : vector<8x512xf32>
    %454 = tpu.matmul %414, %15, %cst_162 {dimension_numbers = #tpu.dot_dimension_numbers<[1], [0], [0], [1], [0, 0, 1, 1], [], []>} : vector<8x128xf32>, vector<128x512xf32>, vector<8x512xf32> -> vector<8x512xf32>
    %455 = arith.addf %453, %454 : vector<8x512xf32>
    %456 = vector.extract_strided_slice %455 {offsets = [0, 0], sizes = [8, 128], strides = [1, 1]} : vector<8x512xf32> to vector<8x128xf32>
    %cst_163 = arith.constant 5.000000e-01 : f32
    %457 = vector.broadcast %cst_163 : f32 to vector<8x128xf32>
    %458 = arith.mulf %457, %456 : vector<8x128xf32>
    %459 = math.tanh %458 : vector<8x128xf32>
    %cst_164 = arith.constant 5.000000e-01 : f32
    %460 = vector.broadcast %cst_164 : f32 to vector<8x128xf32>
    %461 = arith.mulf %460, %459 : vector<8x128xf32>
    %cst_165 = arith.constant 5.000000e-01 : f32
    %462 = vector.broadcast %cst_165 : f32 to vector<8x128xf32>
    %463 = arith.addf %461, %462 : vector<8x128xf32>
    %464 = vector.extract_strided_slice %455 {offsets = [0, 128], sizes = [8, 128], strides = [1, 1]} : vector<8x512xf32> to vector<8x128xf32>
    %cst_166 = arith.constant 5.000000e-01 : f32
    %465 = vector.broadcast %cst_166 : f32 to vector<8x128xf32>
    %466 = arith.mulf %465, %464 : vector<8x128xf32>
    %467 = math.tanh %466 : vector<8x128xf32>
    %cst_167 = arith.constant 5.000000e-01 : f32
    %468 = vector.broadcast %cst_167 : f32 to vector<8x128xf32>
    %469 = arith.mulf %468, %467 : vector<8x128xf32>
    %cst_168 = arith.constant 5.000000e-01 : f32
    %470 = vector.broadcast %cst_168 : f32 to vector<8x128xf32>
    %471 = arith.addf %469, %470 : vector<8x128xf32>
    %472 = vector.extract_strided_slice %455 {offsets = [0, 256], sizes = [8, 128], strides = [1, 1]} : vector<8x512xf32> to vector<8x128xf32>
    %473 = math.tanh %472 : vector<8x128xf32>
    %474 = vector.extract_strided_slice %455 {offsets = [0, 384], sizes = [8, 128], strides = [1, 1]} : vector<8x512xf32> to vector<8x128xf32>
    %cst_169 = arith.constant 5.000000e-01 : f32
    %475 = vector.broadcast %cst_169 : f32 to vector<8x128xf32>
    %476 = arith.mulf %475, %474 : vector<8x128xf32>
    %477 = math.tanh %476 : vector<8x128xf32>
    %cst_170 = arith.constant 5.000000e-01 : f32
    %478 = vector.broadcast %cst_170 : f32 to vector<8x128xf32>
    %479 = arith.mulf %478, %477 : vector<8x128xf32>
    %cst_171 = arith.constant 5.000000e-01 : f32
    %480 = vector.broadcast %cst_171 : f32 to vector<8x128xf32>
    %481 = arith.addf %479, %480 : vector<8x128xf32>
    %482 = arith.mulf %471, %412 : vector<8x128xf32>
    %483 = arith.mulf %463, %473 : vector<8x128xf32>
    %484 = arith.addf %482, %483 : vector<8x128xf32>
    %485 = math.tanh %484 : vector<8x128xf32>
    %486 = arith.mulf %481, %485 : vector<8x128xf32>
    %cst_172 = arith.constant dense<0.000000e+00> : vector<8x512xf32>
    %487 = tpu.matmul %486, %16, %cst_172 {dimension_numbers = #tpu.dot_dimension_numbers<[1], [0], [0], [1], [0, 0, 1, 1], [], []>} : vector<8x128xf32>, vector<128x512xf32>, vector<8x512xf32> -> vector<8x512xf32>
    %cst_173 = arith.constant dense<0.000000e+00> : vector<8x512xf32>
    %488 = tpu.matmul %449, %17, %cst_173 {dimension_numbers = #tpu.dot_dimension_numbers<[1], [0], [0], [1], [0, 0, 1, 1], [], []>} : vector<8x128xf32>, vector<128x512xf32>, vector<8x512xf32> -> vector<8x512xf32>
    %489 = arith.addf %487, %488 : vector<8x512xf32>
    %490 = arith.addf %489, %20 : vector<8x512xf32>
    %491 = vector.extract_strided_slice %490 {offsets = [0, 0], sizes = [8, 128], strides = [1, 1]} : vector<8x512xf32> to vector<8x128xf32>
    %cst_174 = arith.constant 5.000000e-01 : f32
    %492 = vector.broadcast %cst_174 : f32 to vector<8x128xf32>
    %493 = arith.mulf %492, %491 : vector<8x128xf32>
    %494 = math.tanh %493 : vector<8x128xf32>
    %cst_175 = arith.constant 5.000000e-01 : f32
    %495 = vector.broadcast %cst_175 : f32 to vector<8x128xf32>
    %496 = arith.mulf %495, %494 : vector<8x128xf32>
    %cst_176 = arith.constant 5.000000e-01 : f32
    %497 = vector.broadcast %cst_176 : f32 to vector<8x128xf32>
    %498 = arith.addf %496, %497 : vector<8x128xf32>
    %499 = vector.extract_strided_slice %490 {offsets = [0, 128], sizes = [8, 128], strides = [1, 1]} : vector<8x512xf32> to vector<8x128xf32>
    %cst_177 = arith.constant 5.000000e-01 : f32
    %500 = vector.broadcast %cst_177 : f32 to vector<8x128xf32>
    %501 = arith.mulf %500, %499 : vector<8x128xf32>
    %502 = math.tanh %501 : vector<8x128xf32>
    %cst_178 = arith.constant 5.000000e-01 : f32
    %503 = vector.broadcast %cst_178 : f32 to vector<8x128xf32>
    %504 = arith.mulf %503, %502 : vector<8x128xf32>
    %cst_179 = arith.constant 5.000000e-01 : f32
    %505 = vector.broadcast %cst_179 : f32 to vector<8x128xf32>
    %506 = arith.addf %504, %505 : vector<8x128xf32>
    %507 = vector.extract_strided_slice %490 {offsets = [0, 256], sizes = [8, 128], strides = [1, 1]} : vector<8x512xf32> to vector<8x128xf32>
    %508 = math.tanh %507 : vector<8x128xf32>
    %509 = vector.extract_strided_slice %490 {offsets = [0, 384], sizes = [8, 128], strides = [1, 1]} : vector<8x512xf32> to vector<8x128xf32>
    %cst_180 = arith.constant 5.000000e-01 : f32
    %510 = vector.broadcast %cst_180 : f32 to vector<8x128xf32>
    %511 = arith.mulf %510, %509 : vector<8x128xf32>
    %512 = math.tanh %511 : vector<8x128xf32>
    %cst_181 = arith.constant 5.000000e-01 : f32
    %513 = vector.broadcast %cst_181 : f32 to vector<8x128xf32>
    %514 = arith.mulf %513, %512 : vector<8x128xf32>
    %cst_182 = arith.constant 5.000000e-01 : f32
    %515 = vector.broadcast %cst_182 : f32 to vector<8x128xf32>
    %516 = arith.addf %514, %515 : vector<8x128xf32>
    %517 = arith.mulf %506, %447 : vector<8x128xf32>
    %518 = arith.mulf %498, %508 : vector<8x128xf32>
    %519 = arith.addf %517, %518 : vector<8x128xf32>
    %520 = math.tanh %519 : vector<8x128xf32>
    %521 = arith.mulf %516, %520 : vector<8x128xf32>
    %c6 = arith.constant 6 : index
    %c0_183 = arith.constant 0 : index
    %c0_184 = arith.constant 0 : index
    %522 = vector.load %arg20[%c6, %c0_183, %c0_184] : memref<8x8x128xf32, #tpu.memory_space<vmem>>, vector<1x8x128xf32>
    %523 = vector.shape_cast %522 : vector<1x8x128xf32> to vector<8x128xf32>
    %524 = vector.shape_cast %521 : vector<8x128xf32> to vector<1x8x128xf32>
    tpu.vector_store %arg20[%c6, %c0_183, %c0_184], %524 {strides = array<i32>} : memref<8x8x128xf32, #tpu.memory_space<vmem>>, vector<1x8x128xf32>,
    %525 = vector.extract_strided_slice %14 {offsets = [56, 0], sizes = [8, 512], strides = [1, 1]} : vector<64x512xf32> to vector<8x512xf32>
    %cst_185 = arith.constant dense<0.000000e+00> : vector<8x512xf32>
    %526 = tpu.matmul %486, %15, %cst_185 {dimension_numbers = #tpu.dot_dimension_numbers<[1], [0], [0], [1], [0, 0, 1, 1], [], []>} : vector<8x128xf32>, vector<128x512xf32>, vector<8x512xf32> -> vector<8x512xf32>
    %527 = arith.addf %525, %526 : vector<8x512xf32>
    %528 = vector.extract_strided_slice %527 {offsets = [0, 0], sizes = [8, 128], strides = [1, 1]} : vector<8x512xf32> to vector<8x128xf32>
    %cst_186 = arith.constant 5.000000e-01 : f32
    %529 = vector.broadcast %cst_186 : f32 to vector<8x128xf32>
    %530 = arith.mulf %529, %528 : vector<8x128xf32>
    %531 = math.tanh %530 : vector<8x128xf32>
    %cst_187 = arith.constant 5.000000e-01 : f32
    %532 = vector.broadcast %cst_187 : f32 to vector<8x128xf32>
    %533 = arith.mulf %532, %531 : vector<8x128xf32>
    %cst_188 = arith.constant 5.000000e-01 : f32
    %534 = vector.broadcast %cst_188 : f32 to vector<8x128xf32>
    %535 = arith.addf %533, %534 : vector<8x128xf32>
    %536 = vector.extract_strided_slice %527 {offsets = [0, 128], sizes = [8, 128], strides = [1, 1]} : vector<8x512xf32> to vector<8x128xf32>
    %cst_189 = arith.constant 5.000000e-01 : f32
    %537 = vector.broadcast %cst_189 : f32 to vector<8x128xf32>
    %538 = arith.mulf %537, %536 : vector<8x128xf32>
    %539 = math.tanh %538 : vector<8x128xf32>
    %cst_190 = arith.constant 5.000000e-01 : f32
    %540 = vector.broadcast %cst_190 : f32 to vector<8x128xf32>
    %541 = arith.mulf %540, %539 : vector<8x128xf32>
    %cst_191 = arith.constant 5.000000e-01 : f32
    %542 = vector.broadcast %cst_191 : f32 to vector<8x128xf32>
    %543 = arith.addf %541, %542 : vector<8x128xf32>
    %544 = vector.extract_strided_slice %527 {offsets = [0, 256], sizes = [8, 128], strides = [1, 1]} : vector<8x512xf32> to vector<8x128xf32>
    %545 = math.tanh %544 : vector<8x128xf32>
    %546 = vector.extract_strided_slice %527 {offsets = [0, 384], sizes = [8, 128], strides = [1, 1]} : vector<8x512xf32> to vector<8x128xf32>
    %cst_192 = arith.constant 5.000000e-01 : f32
    %547 = vector.broadcast %cst_192 : f32 to vector<8x128xf32>
    %548 = arith.mulf %547, %546 : vector<8x128xf32>
    %549 = math.tanh %548 : vector<8x128xf32>
    %cst_193 = arith.constant 5.000000e-01 : f32
    %550 = vector.broadcast %cst_193 : f32 to vector<8x128xf32>
    %551 = arith.mulf %550, %549 : vector<8x128xf32>
    %cst_194 = arith.constant 5.000000e-01 : f32
    %552 = vector.broadcast %cst_194 : f32 to vector<8x128xf32>
    %553 = arith.addf %551, %552 : vector<8x128xf32>
    %554 = arith.mulf %543, %484 : vector<8x128xf32>
    %555 = arith.mulf %535, %545 : vector<8x128xf32>
    %556 = arith.addf %554, %555 : vector<8x128xf32>
    %557 = math.tanh %556 : vector<8x128xf32>
    %558 = arith.mulf %553, %557 : vector<8x128xf32>
    %cst_195 = arith.constant dense<0.000000e+00> : vector<8x512xf32>
    %559 = tpu.matmul %558, %16, %cst_195 {dimension_numbers = #tpu.dot_dimension_numbers<[1], [0], [0], [1], [0, 0, 1, 1], [], []>} : vector<8x128xf32>, vector<128x512xf32>, vector<8x512xf32> -> vector<8x512xf32>
    %cst_196 = arith.constant dense<0.000000e+00> : vector<8x512xf32>
    %560 = tpu.matmul %521, %17, %cst_196 {dimension_numbers = #tpu.dot_dimension_numbers<[1], [0], [0], [1], [0, 0, 1, 1], [], []>} : vector<8x128xf32>, vector<128x512xf32>, vector<8x512xf32> -> vector<8x512xf32>
    %561 = arith.addf %559, %560 : vector<8x512xf32>
    %562 = arith.addf %561, %20 : vector<8x512xf32>
    %563 = vector.extract_strided_slice %562 {offsets = [0, 0], sizes = [8, 128], strides = [1, 1]} : vector<8x512xf32> to vector<8x128xf32>
    %cst_197 = arith.constant 5.000000e-01 : f32
    %564 = vector.broadcast %cst_197 : f32 to vector<8x128xf32>
    %565 = arith.mulf %564, %563 : vector<8x128xf32>
    %566 = math.tanh %565 : vector<8x128xf32>
    %cst_198 = arith.constant 5.000000e-01 : f32
    %567 = vector.broadcast %cst_198 : f32 to vector<8x128xf32>
    %568 = arith.mulf %567, %566 : vector<8x128xf32>
    %cst_199 = arith.constant 5.000000e-01 : f32
    %569 = vector.broadcast %cst_199 : f32 to vector<8x128xf32>
    %570 = arith.addf %568, %569 : vector<8x128xf32>
    %571 = vector.extract_strided_slice %562 {offsets = [0, 128], sizes = [8, 128], strides = [1, 1]} : vector<8x512xf32> to vector<8x128xf32>
    %cst_200 = arith.constant 5.000000e-01 : f32
    %572 = vector.broadcast %cst_200 : f32 to vector<8x128xf32>
    %573 = arith.mulf %572, %571 : vector<8x128xf32>
    %574 = math.tanh %573 : vector<8x128xf32>
    %cst_201 = arith.constant 5.000000e-01 : f32
    %575 = vector.broadcast %cst_201 : f32 to vector<8x128xf32>
    %576 = arith.mulf %575, %574 : vector<8x128xf32>
    %cst_202 = arith.constant 5.000000e-01 : f32
    %577 = vector.broadcast %cst_202 : f32 to vector<8x128xf32>
    %578 = arith.addf %576, %577 : vector<8x128xf32>
    %579 = vector.extract_strided_slice %562 {offsets = [0, 256], sizes = [8, 128], strides = [1, 1]} : vector<8x512xf32> to vector<8x128xf32>
    %580 = math.tanh %579 : vector<8x128xf32>
    %581 = vector.extract_strided_slice %562 {offsets = [0, 384], sizes = [8, 128], strides = [1, 1]} : vector<8x512xf32> to vector<8x128xf32>
    %cst_203 = arith.constant 5.000000e-01 : f32
    %582 = vector.broadcast %cst_203 : f32 to vector<8x128xf32>
    %583 = arith.mulf %582, %581 : vector<8x128xf32>
    %584 = math.tanh %583 : vector<8x128xf32>
    %cst_204 = arith.constant 5.000000e-01 : f32
    %585 = vector.broadcast %cst_204 : f32 to vector<8x128xf32>
    %586 = arith.mulf %585, %584 : vector<8x128xf32>
    %cst_205 = arith.constant 5.000000e-01 : f32
    %587 = vector.broadcast %cst_205 : f32 to vector<8x128xf32>
    %588 = arith.addf %586, %587 : vector<8x128xf32>
    %589 = arith.mulf %578, %519 : vector<8x128xf32>
    %590 = arith.mulf %570, %580 : vector<8x128xf32>
    %591 = arith.addf %589, %590 : vector<8x128xf32>
    %592 = math.tanh %591 : vector<8x128xf32>
    %593 = arith.mulf %588, %592 : vector<8x128xf32>
    %c7 = arith.constant 7 : index
    %c0_206 = arith.constant 0 : index
    %c0_207 = arith.constant 0 : index
    %594 = vector.load %arg20[%c7, %c0_206, %c0_207] : memref<8x8x128xf32, #tpu.memory_space<vmem>>, vector<1x8x128xf32>
    %595 = vector.shape_cast %594 : vector<1x8x128xf32> to vector<8x128xf32>
    %596 = vector.shape_cast %593 : vector<8x128xf32> to vector<1x8x128xf32>
    tpu.vector_store %arg20[%c7, %c0_206, %c0_207], %596 {strides = array<i32>} : memref<8x8x128xf32, #tpu.memory_space<vmem>>, vector<1x8x128xf32>,
    %c0_208 = arith.constant 0 : index
    %c0_209 = arith.constant 0 : index
    %597 = vector.load %arg16[%c0_208, %c0_209] : memref<8x128xf32, #tpu.memory_space<vmem>>, vector<8x128xf32>
    tpu.vector_store %arg16[%c0_208, %c0_209], %558 {strides = array<i32>} : memref<8x128xf32, #tpu.memory_space<vmem>>, vector<8x128xf32>,
    %c0_210 = arith.constant 0 : index
    %c0_211 = arith.constant 0 : index
    %598 = vector.load %arg17[%c0_210, %c0_211] : memref<8x128xf32, #tpu.memory_space<vmem>>, vector<8x128xf32>
    tpu.vector_store %arg17[%c0_210, %c0_211], %556 {strides = array<i32>} : memref<8x128xf32, #tpu.memory_space<vmem>>, vector<8x128xf32>,
    %c0_212 = arith.constant 0 : index
    %c0_213 = arith.constant 0 : index
    %599 = vector.load %arg18[%c0_212, %c0_213] : memref<8x128xf32, #tpu.memory_space<vmem>>, vector<8x128xf32>
    tpu.vector_store %arg18[%c0_212, %c0_213], %593 {strides = array<i32>} : memref<8x128xf32, #tpu.memory_space<vmem>>, vector<8x128xf32>,
    %c0_214 = arith.constant 0 : index
    %c0_215 = arith.constant 0 : index
    %600 = vector.load %arg19[%c0_214, %c0_215] : memref<8x128xf32, #tpu.memory_space<vmem>>, vector<8x128xf32>
    tpu.vector_store %arg19[%c0_214, %c0_215], %591 {strides = array<i32>} : memref<8x128xf32, #tpu.memory_space<vmem>>, vector<8x128xf32>,
    %c0_216 = arith.constant 0 : index
    %c0_217 = arith.constant 0 : index
    %c0_218 = arith.constant 0 : index
    %601 = vector.load %arg20[%c0_216, %c0_217, %c0_218] : memref<8x8x128xf32, #tpu.memory_space<vmem>>, vector<8x8x128xf32>
    %602 = vector.shape_cast %601 : vector<8x8x128xf32> to vector<64x128xf32>
    %603 = arith.truncf %602 : vector<64x128xf32> to vector<64x128xbf16>
    %c0_219 = arith.constant 0 : index
    %c0_220 = arith.constant 0 : index
    %604 = vector.load %arg11[%c0_219, %c0_220] : memref<128x128xbf16, #tpu.memory_space<vmem>>, vector<128x128xbf16>
    %cst_221 = arith.constant dense<0.000000e+00> : vector<64x128xf32>
    %605 = tpu.matmul %603, %604, %cst_221 {dimension_numbers = #tpu.dot_dimension_numbers<[1], [0], [0], [1], [0, 0, 1, 1], [], []>} : vector<64x128xbf16>, vector<128x128xbf16>, vector<64x128xf32> -> vector<64x128xf32>
    %c0_222 = arith.constant 0 : index
    %c0_223 = arith.constant 0 : index
    %606 = vector.load %arg12[%c0_222, %c0_223] : memref<1x128xf32, #tpu.memory_space<vmem>>, vector<1x128xf32>
    %607 = vector.broadcast %606 : vector<1x128xf32> to vector<64x128xf32>
    %608 = arith.addf %605, %607 : vector<64x128xf32>
    %609 = vector.shape_cast %608 : vector<64x128xf32> to vector<8x8x128xf32>
    %c0_224 = arith.constant 0 : index
    %c0_225 = arith.constant 0 : index
    %c0_226 = arith.constant 0 : index
    %610 = vector.load %arg13[%c0_224, %c0_225, %c0_226] : memref<8x8x128xf32, #tpu.memory_space<vmem>>, vector<8x8x128xf32>
    tpu.vector_store %arg13[%c0_224, %c0_225, %c0_226], %609 {strides = array<i32>} : memref<8x8x128xf32, #tpu.memory_space<vmem>>, vector<8x8x128xf32>,
    %c0_i32_227 = arith.constant 0 : i32
    %611 = arith.cmpi eq, %arg1, %c0_i32_227 : i32
    %612 = arith.extui %611 : i1 to i32
    %c0_i32_228 = arith.constant 0 : i32
    %613 = arith.cmpi ne, %612, %c0_i32_228 : i32
    scf.if %613 {
      %c0_229 = arith.constant 0 : index
      %c0_230 = arith.constant 0 : index
      %c0_231 = arith.constant 0 : index
      %614 = vector.load %arg14[%c0_229, %c0_230, %c0_231] : memref<2x8x128xf32, #tpu.memory_space<vmem>>, vector<1x8x128xf32>
      %615 = vector.shape_cast %614 : vector<1x8x128xf32> to vector<8x128xf32>
      %616 = vector.shape_cast %558 : vector<8x128xf32> to vector<1x8x128xf32>
      tpu.vector_store %arg14[%c0_229, %c0_230, %c0_231], %616 {strides = array<i32>} : memref<2x8x128xf32, #tpu.memory_space<vmem>>, vector<1x8x128xf32>,
      %c1_232 = arith.constant 1 : index
      %c0_233 = arith.constant 0 : index
      %c0_234 = arith.constant 0 : index
      %617 = vector.load %arg14[%c1_232, %c0_233, %c0_234] : memref<2x8x128xf32, #tpu.memory_space<vmem>>, vector<1x8x128xf32>
      %618 = vector.shape_cast %617 : vector<1x8x128xf32> to vector<8x128xf32>
      %619 = vector.shape_cast %593 : vector<8x128xf32> to vector<1x8x128xf32>
      tpu.vector_store %arg14[%c1_232, %c0_233, %c0_234], %619 {strides = array<i32>} : memref<2x8x128xf32, #tpu.memory_space<vmem>>, vector<1x8x128xf32>,
      %c0_235 = arith.constant 0 : index
      %c0_236 = arith.constant 0 : index
      %c0_237 = arith.constant 0 : index
      %620 = vector.load %arg15[%c0_235, %c0_236, %c0_237] : memref<2x8x128xf32, #tpu.memory_space<vmem>>, vector<1x8x128xf32>
      %621 = vector.shape_cast %620 : vector<1x8x128xf32> to vector<8x128xf32>
      %622 = vector.shape_cast %556 : vector<8x128xf32> to vector<1x8x128xf32>
      tpu.vector_store %arg15[%c0_235, %c0_236, %c0_237], %622 {strides = array<i32>} : memref<2x8x128xf32, #tpu.memory_space<vmem>>, vector<1x8x128xf32>,
      %c1_238 = arith.constant 1 : index
      %c0_239 = arith.constant 0 : index
      %c0_240 = arith.constant 0 : index
      %623 = vector.load %arg15[%c1_238, %c0_239, %c0_240] : memref<2x8x128xf32, #tpu.memory_space<vmem>>, vector<1x8x128xf32>
      %624 = vector.shape_cast %623 : vector<1x8x128xf32> to vector<8x128xf32>
      %625 = vector.shape_cast %591 : vector<8x128xf32> to vector<1x8x128xf32>
      tpu.vector_store %arg15[%c1_238, %c0_239, %c0_240], %625 {strides = array<i32>} : memref<2x8x128xf32, #tpu.memory_space<vmem>>, vector<1x8x128xf32>,
    } else {
    }
    return
  }
  func.func @transform_0(%arg0: i32, %arg1: i32) -> (i32, i32, i32) {
    %c0_i32 = arith.constant 0 : i32
    %c0_i32_0 = arith.constant 0 : i32
    return %arg1, %arg0, %c0_i32 : i32, i32, i32
  }
  func.func @transform_1(%arg0: i32, %arg1: i32) -> (i32, i32, i32) {
    %c0_i32 = arith.constant 0 : i32
    %c0_i32_0 = arith.constant 0 : i32
    %c0_i32_1 = arith.constant 0 : i32
    return %c0_i32, %arg0, %c0_i32_0 : i32, i32, i32
  }
  func.func @transform_2(%arg0: i32, %arg1: i32) -> (i32, i32, i32) {
    %c0_i32 = arith.constant 0 : i32
    %c0_i32_0 = arith.constant 0 : i32
    %c0_i32_1 = arith.constant 0 : i32
    return %c0_i32, %arg0, %c0_i32_0 : i32, i32, i32
  }
  func.func @transform_3(%arg0: i32, %arg1: i32) -> (i32, i32) {
    %c0_i32 = arith.constant 0 : i32
    %c0_i32_0 = arith.constant 0 : i32
    %c0_i32_1 = arith.constant 0 : i32
    return %c0_i32, %c0_i32_0 : i32, i32
  }
  func.func @transform_4(%arg0: i32, %arg1: i32) -> (i32, i32) {
    %c0_i32 = arith.constant 0 : i32
    %c0_i32_0 = arith.constant 0 : i32
    %c0_i32_1 = arith.constant 0 : i32
    return %c0_i32, %c0_i32_0 : i32, i32
  }
  func.func @transform_5(%arg0: i32, %arg1: i32) -> (i32, i32) {
    %c0_i32 = arith.constant 0 : i32
    %c0_i32_0 = arith.constant 0 : i32
    %c0_i32_1 = arith.constant 0 : i32
    return %c0_i32, %c0_i32_0 : i32, i32
  }
  func.func @transform_6(%arg0: i32, %arg1: i32) -> (i32, i32) {
    %c0_i32 = arith.constant 0 : i32
    %c0_i32_0 = arith.constant 0 : i32
    %c0_i32_1 = arith.constant 0 : i32
    return %c0_i32, %c0_i32_0 : i32, i32
  }
  func.func @transform_7(%arg0: i32, %arg1: i32) -> (i32, i32) {
    %c0_i32 = arith.constant 0 : i32
    %c0_i32_0 = arith.constant 0 : i32
    %c0_i32_1 = arith.constant 0 : i32
    return %c0_i32, %c0_i32_0 : i32, i32
  }
  func.func @transform_8(%arg0: i32, %arg1: i32) -> (i32, i32) {
    %c0_i32 = arith.constant 0 : i32
    %c0_i32_0 = arith.constant 0 : i32
    %c0_i32_1 = arith.constant 0 : i32
    return %c0_i32, %c0_i32_0 : i32, i32
  }
  func.func @transform_9(%arg0: i32, %arg1: i32) -> (i32, i32) {
    %c0_i32 = arith.constant 0 : i32
    %c0_i32_0 = arith.constant 0 : i32
    %c0_i32_1 = arith.constant 0 : i32
    return %c0_i32, %c0_i32_0 : i32, i32
  }
  func.func @transform_10(%arg0: i32, %arg1: i32) -> (i32, i32) {
    %c0_i32 = arith.constant 0 : i32
    %c0_i32_0 = arith.constant 0 : i32
    %c0_i32_1 = arith.constant 0 : i32
    return %c0_i32, %c0_i32_0 : i32, i32
  }
  func.func @transform_11(%arg0: i32, %arg1: i32) -> (i32, i32, i32) {
    %c0_i32 = arith.constant 0 : i32
    %c0_i32_0 = arith.constant 0 : i32
    return %arg1, %arg0, %c0_i32 : i32, i32, i32
  }
  func.func @transform_12(%arg0: i32, %arg1: i32) -> (i32, i32, i32) {
    %c0_i32 = arith.constant 0 : i32
    %c0_i32_0 = arith.constant 0 : i32
    %c0_i32_1 = arith.constant 0 : i32
    return %c0_i32, %arg0, %c0_i32_0 : i32, i32, i32
  }
  func.func @transform_13(%arg0: i32, %arg1: i32) -> (i32, i32, i32) {
    %c0_i32 = arith.constant 0 : i32
    %c0_i32_0 = arith.constant 0 : i32
    %c0_i32_1 = arith.constant 0 : i32
    return %c0_i32, %arg0, %c0_i32_0 : i32, i32, i32
  }
}

</mosaic_0001>

<bundles_post_ra>
// kernel: tpu_custom_call.1
= control target key start
LH: loop header
LB: loop body
LE: loop exit
PB: predicated region body
PF: predicated region fallthrough
CT: control target
= control target key end

     0   :  { %19 = vsyncpa [#allocation8], 0  ;;  %s8451_s0 = inlined_call_operand.hbm [shape: f32[8,8,128], index: 0, kind: input, shape index: {}]   ;;  %s8452_s1 = inlined_call_operand.hbm [shape: f32[2,8,128], index: 1, kind: input, shape index: {}]   ;;  %s8453_s2 = inlined_call_operand.hbm [shape: f32[2,8,128], index: 2, kind: input, shape index: {}]   ;;  %s8454_s3 = inlined_call_operand.hbm [shape: bf16[128,512], index: 3, kind: input, shape index: {}]   ;;  %s8455_s4 = inlined_call_operand.hbm [shape: f32[128,512], index: 4, kind: input, shape index: {}]   ;;  %s8456_s5 = inlined_call_operand.vmem [shape: f32[1,512], index: 5, kind: input, shape index: {}]   ;;  %s8457_s6 = inlined_call_operand.hbm [shape: f32[128,512], index: 6, kind: input, shape index: {}]   ;;  %s8458_s7 = inlined_call_operand.hbm [shape: f32[128,512], index: 7, kind: input, shape index: {}]   ;;  %s8459_s8 = inlined_call_operand.vmem [shape: f32[1,512], index: 8, kind: input, shape index: {}]   ;;  %s8460_s9 = inlined_call_operand.hbm [shape: bf16[128,128], index: 9, kind: input, shape index: {}]   ;;  %s8461_s10 = inlined_call_operand.vmem [shape: f32[1,128], index: 10, kind: input, shape index: {}]   ;;  %s8462_s11 = inlined_call_operand.hbm [shape: f32[8,8,128], index: 11, kind: output, shape index: {0}]   ;;  %s8463_s12 = inlined_call_operand.hbm [shape: f32[2,8,128], index: 12, kind: output, shape index: {1}]   ;;  %s8464_s13 = inlined_call_operand.hbm [shape: f32[2,8,128], index: 13, kind: output, shape index: {2}]  }
   0x1   :  { %20 = vsyncpa [#allocation11], 0 }
   0x2   :  { %21 = vsyncpa [#allocation14], 0 }
   0x3   :  { %22 = vsyncpa [#allocation17], 0 }
   0x4   :  { %23 = vsyncpa [#allocation20], 0 }
   0x5   :  { %24 = vsyncpa [#allocation9], 0 }
   0x6   :  { %25 = vsyncpa [#allocation23], 0  ;;  %s6891_s25 = smov [#allocation10]   ;;  %s6892_s27 = smov [#allocation13]  }
   0x7   :  { %s43_s26 = sshll.u32 %s6891_s25, 4  ;;  %s67_s28 = sshll.u32 %s6892_s27, 4  ;;  %s44_s26 = int_to_ptr.vmem [resolvable:$true] %s43_s26  ;;  %s6982_s28 = int_to_ptr.vmem [resolvable:$true] %s67_s28 }
   0x8   :  { %s6635_s14 = scalar_lea.hbm %s8452_s1, 256 }
   0x9   :  { %p6636_p0 = scmp.ne.s32.totalorder %s8452_s1, %s6635_s14  ;;  %p6639_p1 = scmp.lt.u32.totalorder %s6635_s14, %s8452_s1 }
   0xb   :  { %p6641_p2 = pnand %p6639_p1, %p6636_p0 }
   0xd   :  { %6644 = shalt.err (!%p6641_p2)
}
   0xe   :  { %s6645_s19 = scalar_lea.vmem %s44_s26, 256  ;;  %p6650_p4 = scmp.lt.s32.totalorder %s44_s26, %s44_s26 }
   0xf   :  { %p6646_p3 = scmp.ne.s32.totalorder %s44_s26, %s6645_s19  ;;  %p6651_p5 = scmp.lt.s32.totalorder %s6645_s19, %s6645_s19 }
  0x11   :  { %p6652_p6 = por %p6651_p5, %p6650_p4 }
  0x13   :  { %p6653_p7 = pnand %p6652_p6, %p6646_p3 }
  0x15   :  { %6656 = shalt.err (!%p6653_p7)
}
  0x16   :  { %s6893_s20 = smov 128   ;;  %s6894_s21 = smov 8  }
  0x17   :  { %49 = dma.hbm_to_vmem [thread:$0]  %s8452_s1, 256, %s44_s26, [#allocation11], %s6893_s20, %s6893_s20, %s6894_s21  }
  0x18   :  { %s6657_s27 = scalar_lea.hbm %s8454_s3, 4096 }
  0x19   :  { %p6658_p8 = scmp.ne.s32.totalorder %s8454_s3, %s6657_s27  ;;  %p6661_p9 = scmp.lt.u32.totalorder %s6657_s27, %s8454_s3 }
  0x1b   :  { %p6663_p10 = pnand %p6661_p9, %p6658_p8 }
  0x1d   :  { %6666 = shalt.err (!%p6663_p10)
}
  0x1e   :  { %s6667_s16 = scalar_lea.vmem %s6982_s28, 4096  ;;  %p6672_p12 = scmp.lt.s32.totalorder %s6982_s28, %s6982_s28 }
  0x1f   :  { %p6668_p11 = scmp.ne.s32.totalorder %s6982_s28, %s6667_s16  ;;  %p6673_p13 = scmp.lt.s32.totalorder %s6667_s16, %s6667_s16 }
  0x21   :  { %p6674_p0 = por %p6673_p13, %p6672_p12 }
  0x23   :  { %p6675_p1 = pnand %p6674_p0, %p6668_p11 }
  0x25   :  { %6678 = shalt.err (!%p6675_p1)
}
  0x26   :  { %s6895_s1 = smov 256   ;;  %s6896_s26 = smov 16  }
  0x27   :  { %73 = dma.hbm_to_vmem [thread:$0]  %s8454_s3, 4096, %s6982_s28, [#allocation14], %s6895_s1, %s6895_s1, %s6896_s26  }
  0x28   :  { %s6897_s19 = smov [#allocation16]   ;;  %s6898_s23 = smov [#allocation7]  }
  0x29   :  { %s93_s22 = sshll.u32 %s6897_s19, 4  ;;  %s31_s24 = sshll.u32 %s6898_s23, 4  ;;  %s94_s22 = int_to_ptr.vmem [resolvable:$true] %s93_s22  ;;  %s7016_s24 = int_to_ptr.vmem [resolvable:$true] %s31_s24 }
  0x2a   :  { %s6679_s29 = scalar_lea.hbm %s8457_s6, 8192 }
  0x2b   :  { %p6680_p2 = scmp.ne.s32.totalorder %s8457_s6, %s6679_s29  ;;  %p6683_p3 = scmp.lt.u32.totalorder %s6679_s29, %s8457_s6 }
  0x2d   :  { %p6685_p4 = pnand %p6683_p3, %p6680_p2 }
  0x2f   :  { %6688 = shalt.err (!%p6685_p4)
}
  0x30   :  { %s6689_s3 = scalar_lea.vmem %s94_s22, 8192  ;;  %p6694_p6 = scmp.lt.s32.totalorder %s94_s22, %s94_s22 }
  0x31   :  { %p6690_p5 = scmp.ne.s32.totalorder %s94_s22, %s6689_s3  ;;  %p6695_p7 = scmp.lt.s32.totalorder %s6689_s3, %s6689_s3 }
  0x33   :  { %p6696_p8 = por %p6695_p7, %p6694_p6 }
  0x35   :  { %p6697_p9 = pnand %p6696_p8, %p6690_p5 }
  0x37   :  { %6700 = shalt.err (!%p6697_p9)
}
  0x38   :  { %s6899_s28 = smov 512   ;;  %s6900_s1 = smov 32  }
  0x39   :  { %99 = dma.hbm_to_vmem [thread:$0]  %s8457_s6, 8192, %s94_s22, [#allocation17], %s6899_s28, %s6899_s28, %s6900_s1  }
  0x3a   :  { %s6701_s23 = scalar_lea.hbm %s8451_s0, 1024 }
  0x3b   :  { %p6702_p10 = scmp.ne.s32.totalorder %s8451_s0, %s6701_s23  ;;  %p6705_p11 = scmp.lt.u32.totalorder %s6701_s23, %s8451_s0 }
  0x3d   :  { %p6707_p12 = pnand %p6705_p11, %p6702_p10 }
  0x3f   :  { %6710 = shalt.err (!%p6707_p12)
}
  0x40   :  { %s6711_s14 = scalar_lea.vmem %s7016_s24, 1024  ;;  %p6716_p0 = scmp.lt.s32.totalorder %s7016_s24, %s7016_s24 }
  0x41   :  { %p6712_p13 = scmp.ne.s32.totalorder %s7016_s24, %s6711_s14  ;;  %p6717_p1 = scmp.lt.s32.totalorder %s6711_s14, %s6711_s14 }
  0x43   :  { %p6718_p2 = por %p6717_p1, %p6716_p0 }
  0x45   :  { %p6719_p3 = pnand %p6718_p2, %p6712_p13 }
  0x47   :  { %6722 = shalt.err (!%p6719_p3)
}
  0x48   :  { %37 = dma.hbm_to_vmem [thread:$0]  %s8451_s0, 1024, %s7016_s24, [#allocation8], %s6893_s20, %s6893_s20, %s6894_s21  }
  0x49   :  { %s6901_s15 = smov [#allocation12]   ;;  %s6902_s3 = smov [#allocation15]  }
  0x4a   :  { %s55_s16 = sshll.u32 %s6901_s15, 4  ;;  %s79_s26 = sshll.u32 %s6902_s3, 4  ;;  %s56_s16 = int_to_ptr.vmem [resolvable:$true] %s55_s16  ;;  %s7053_s26 = int_to_ptr.vmem [resolvable:$true] %s79_s26 }
  0x4b   :  { %s6723_s19 = scalar_lea.hbm %s8453_s2, 256 }
  0x4c   :  { %p6724_p4 = scmp.ne.s32.totalorder %s8453_s2, %s6723_s19  ;;  %p6727_p5 = scmp.lt.u32.totalorder %s6723_s19, %s8453_s2 }
  0x4e   :  { %p6729_p6 = pnand %p6727_p5, %p6724_p4 }
  0x50   :  { %6732 = shalt.err (!%p6729_p6)
}
  0x51   :  { %s6733_s0 = scalar_lea.vmem %s56_s16, 256  ;;  %p6738_p8 = scmp.lt.s32.totalorder %s56_s16, %s56_s16 }
  0x52   :  { %p6734_p7 = scmp.ne.s32.totalorder %s56_s16, %s6733_s0  ;;  %p6739_p9 = scmp.lt.s32.totalorder %s6733_s0, %s6733_s0 }
  0x54   :  { %p6740_p10 = por %p6739_p9, %p6738_p8 }
  0x56   :  { %p6741_p11 = pnand %p6740_p10, %p6734_p7 }
  0x58   :  { %6744 = shalt.err (!%p6741_p11)
}
  0x59   :  { %61 = dma.hbm_to_vmem [thread:$0]  %s8453_s2, 256, %s56_s16, [#allocation11], %s6893_s20, %s6893_s20, %s6894_s21  }
  0x5a   :  { %s6745_s22 = scalar_lea.hbm %s8455_s4, 8192 }
  0x5b   :  { %p6746_p12 = scmp.ne.s32.totalorder %s8455_s4, %s6745_s22  ;;  %p6749_p13 = scmp.lt.u32.totalorder %s6745_s22, %s8455_s4 }
  0x5d   :  { %p6751_p0 = pnand %p6749_p13, %p6746_p12 }
  0x5f   :  { %6754 = shalt.err (!%p6751_p0)
}
  0x60   :  { %s6755_s19 = scalar_lea.vmem %s7053_s26, 8192  ;;  %p6760_p2 = scmp.lt.s32.totalorder %s7053_s26, %s7053_s26 }
  0x61   :  { %p6756_p1 = scmp.ne.s32.totalorder %s7053_s26, %s6755_s19  ;;  %p6761_p3 = scmp.lt.s32.totalorder %s6755_s19, %s6755_s19 }
  0x63   :  { %p6762_p4 = por %p6761_p3, %p6760_p2 }
  0x65   :  { %p6763_p5 = pnand %p6762_p4, %p6756_p1 }
  0x67   :  { %6766 = shalt.err (!%p6763_p5)
}
  0x68   :  { %85 = dma.hbm_to_vmem [thread:$0]  %s8455_s4, 8192, %s7053_s26, [#allocation14], %s6899_s28, %s6899_s28, %s6900_s1  }
  0x69   :  { %s6903_s23 = smov [#allocation18]   ;;  %s6904_s27 = smov [#allocation19]  }
  0x6a   :  { %s105_s25 = sshll.u32 %s6903_s23, 4  ;;  %s119_s29 = sshll.u32 %s6904_s27, 4  ;;  %s106_s25 = int_to_ptr.vmem [resolvable:$true] %s105_s25  ;;  %s7090_s29 = int_to_ptr.vmem [resolvable:$true] %s119_s29 }
  0x6b   :  { %s6767_s30 = scalar_lea.hbm %s8458_s7, 8192 }
  0x6c   :  { %p6768_p6 = scmp.ne.s32.totalorder %s8458_s7, %s6767_s30  ;;  %p6771_p7 = scmp.lt.u32.totalorder %s6767_s30, %s8458_s7 }
  0x6e   :  { %p6773_p8 = pnand %p6771_p7, %p6768_p6 }
  0x70   :  { %6776 = shalt.err (!%p6773_p8)
}
  0x71   :  { %s6777_s4 = scalar_lea.vmem %s106_s25, 8192  ;;  %p6782_p10 = scmp.lt.s32.totalorder %s106_s25, %s106_s25 }
  0x72   :  { %p6778_p9 = scmp.ne.s32.totalorder %s106_s25, %s6777_s4  ;;  %p6783_p11 = scmp.lt.s32.totalorder %s6777_s4, %s6777_s4 }
  0x74   :  { %p6784_p12 = por %p6783_p11, %p6782_p10 }
  0x76   :  { %p6785_p13 = pnand %p6784_p12, %p6778_p9 }
  0x78   :  { %6788 = shalt.err (!%p6785_p13)
}
  0x79   :  { %111 = dma.hbm_to_vmem [thread:$0]  %s8458_s7, 8192, %s106_s25, [#allocation17], %s6899_s28, %s6899_s28, %s6900_s1  }
  0x7a   :  { %s6789_s19 = scalar_lea.hbm %s8460_s9, 1024 }
  0x7b   :  { %p6790_p0 = scmp.ne.s32.totalorder %s8460_s9, %s6789_s19  ;;  %p6793_p1 = scmp.lt.u32.totalorder %s6789_s19, %s8460_s9 }
  0x7d   :  { %p6795_p2 = pnand %p6793_p1, %p6790_p0 }
  0x7f   :  { %6798 = shalt.err (!%p6795_p2)
}
  0x80   :  { %s6799_s0 = scalar_lea.vmem %s7090_s29, 1024  ;;  %p6804_p4 = scmp.lt.s32.totalorder %s7090_s29, %s7090_s29 }
  0x81   :  { %p6800_p3 = scmp.ne.s32.totalorder %s7090_s29, %s6799_s0  ;;  %p6805_p5 = scmp.lt.s32.totalorder %s6799_s0, %s6799_s0 }
  0x83   :  { %p6806_p6 = por %p6805_p5, %p6804_p4 }
  0x85   :  { %p6807_p7 = pnand %p6806_p6, %p6800_p3 }
  0x87   :  { %6810 = shalt.err (!%p6807_p7)
}
  0x88   :  { %s6905_s7 = smov 64   ;;  %s6906_s28 = smov 4  }
  0x89   :  { %125 = dma.hbm_to_vmem [thread:$0]  %s8460_s9, 1024, %s7090_s29, [#allocation20], %s6905_s7, %s6905_s7, %s6906_s28  }
  0x8a   :  { %6877 = dma.done.wait [#allocation8], 1024  }
  0x8b   :  { %6878 = vsyncadd [#allocation8], 4294966272 }
  0x8c   :  { %6879 = dma.done.wait [#allocation11], 512  }
  0x8d   :  { %6880 = vsyncadd [#allocation11], 4294966784 }
  0x8e   :  { %6881 = dma.done.wait [#allocation14], 12288  }
  0x8f   :  { %6882 = vsyncadd [#allocation14], 4294955008 }
  0x90   :  { %6883 = dma.done.wait [#allocation17], 16384  }
  0x91   :  { %6884 = vsyncadd [#allocation17], 4294950912 }
  0x92   :  { %6885 = dma.done.wait [#allocation20], 1024  }
  0x93   :  { %6886 = vsyncadd [#allocation20], 4294966272  ;;  %v6907_v0 = vmov 0   ;;  %v8465_v1 = vmov 0.0   ;;  %v6419_v2 = vld [vmem:[#allocation13 + $0x4] ss:$16 sps:$4 sm:$0xff]  }
  0x94   :  { %429 = vmatprep.mubr.bf16.mxu1 %v6907_v0  ;;  %821 = vmatprep.mubr.f32.mxu0 %v8465_v1  ;;  %v6421_v3 = vld [vmem:[#allocation13] ss:$16 sps:$4 sm:$0xff]   ;;  %v544_v4 = vld [vmem:[#allocation15 + $0x8] sm:$0xff]  ;;  %v6422_v10 = vld [vmem:[#allocation13 + $0x24] ss:$16 sps:$4 sm:$0xff]  }
  0x95   :  { %v548_v5 = vld [vmem:[#allocation15 + $0x28] sm:$0xff]  ;;  %397 = vmatprep.subr.bf16.mxu1 %v6419_v2  ;;  %v543_v7 = vld [vmem:[#allocation15] sm:$0xff] }
  0x96   :  { %v7126_v6 = vpack.c.bf16 %v548_v5, %v544_v4  ;;  %v547_v8 = vld [vmem:[#allocation15 + $0x20] sm:$0xff]  ;;  %398 = vmatpush1.bf16.msra.mxu1 %v6421_v3  ;;  %v552_v12 = vld [vmem:[#allocation15 + $0x48] sm:$0xff] }
  0x97   :  { %v7128_v9 = vpack.c.bf16 %v547_v8, %v543_v7  ;;  %v6424_v11 = vld [vmem:[#allocation13 + $0x20] ss:$16 sps:$4 sm:$0xff]   ;;  %v556_v13 = vld [vmem:[#allocation15 + $0x68] sm:$0xff]  ;;  %399 = vmatprep.subr.bf16.mxu1 %v6422_v10  ;;  %v6425_v18 = vld [vmem:[#allocation13 + $0x44] ss:$16 sps:$4 sm:$0xff]  }
  0x98   :  { %8663 = vst [vmem:[#allocation32_spill] sm:$0xff] %v7126_v6  ;;  %4831 = vmatprep.subr.bf16.mxu0 %v7126_v6  ;;  %v551_v14 = vld [vmem:[#allocation15 + $0x40] sm:$0xff]  ;;  %v7132_v15 = vpack.c.bf16 %v556_v13, %v552_v12  ;;  %v560_v20 = vld [vmem:[#allocation15 + $0x88] sm:$0xff] }
  0x99   :  { %4833 = vmatpush1.bf16.msra.mxu0 %v7128_v9  ;;  %v555_v16 = vld [vmem:[#allocation15 + $0x60] sm:$0xff]  ;;  %v564_v21 = vld [vmem:[#allocation15 + $0xa8] sm:$0xff] }
  0x9a   :  { %v7134_v17 = vpack.c.bf16 %v555_v16, %v551_v14  ;;  %v6427_v19 = vld [vmem:[#allocation13 + $0x40] ss:$16 sps:$4 sm:$0xff]   ;;  %400 = vmatpush1.bf16.msra.mxu1 %v6424_v11  ;;  %4835 = vmatprep.subr.bf16.mxu0 %v7132_v15  ;;  %v7137_v24 = vpack.c.bf16 %v564_v21, %v560_v20  ;;  %v6428_v25 = vld [vmem:[#allocation13 + $0x64] ss:$16 sps:$4 sm:$0xff]   ;;  %v568_v27 = vld [vmem:[#allocation15 + $0xc8] sm:$0xff] }
  0x9b   :  { %v559_v22 = vld [vmem:[#allocation15 + $0x80] sm:$0xff]  ;;  %401 = vmatprep.subr.bf16.mxu1 %v6425_v18  ;;  %v572_v28 = vld [vmem:[#allocation15 + $0xe8] sm:$0xff]  ;;  %v173_v14 = vld [vmem:[#allocation7 + $0x10] sm:$0xff] }
  0x9c   :  { %v563_v23 = vld [vmem:[#allocation15 + $0xa0] sm:$0xff]  ;;  %v7143_v29 = vpack.c.bf16 %v572_v28, %v568_v27  ;;  %v576_v34 = vld [vmem:[#allocation15 + $0x108] sm:$0xff]  ;;  %v174_v16 = vld [vmem:[#allocation7 + $0x18] sm:$0xff] }
  0x9d   :  { %4837 = vmatpush1.bf16.msra.mxu0 %v7134_v17  ;;  %v7140_v26 = vpack.c.bf16 %v563_v23, %v559_v22  ;;  %v567_v30 = vld [vmem:[#allocation15 + $0xc0] sm:$0xff]  ;;  %v580_v35 = vld [vmem:[#allocation15 + $0x128] sm:$0xff] }
  0x9e   :  { %4839 = vmatprep.subr.bf16.mxu0 %v7137_v24  ;;  %8665 = vst [vmem:[#allocation34_spill] sm:$0xff] %v7143_v29  ;;  %v571_v31 = vld [vmem:[#allocation15 + $0xe0] sm:$0xff]  ;;  %402 = vmatpush1.bf16.msra.mxu1 %v6427_v19  ;;  %v7149_v37 = vpack.c.bf16 %v580_v35, %v576_v34  ;;  %v584_v41 = vld [vmem:[#allocation15 + $0x148] sm:$0xff]  ;;  %v7182_v19 = vpack.c.bf16 %v174_v16, %v173_v14  ;;  %v178_v34 = vld [vmem:[#allocation7 + $0x38] sm:$0xff] }
  0x9f   :  { %8664 = vst [vmem:[#allocation33_spill] sm:$0xff] %v7140_v26  ;;  %v6430_v32 = vld [vmem:[#allocation13 + $0x60] ss:$16 sps:$4 sm:$0xff]   ;;  %403 = vmatprep.subr.bf16.mxu1 %v6428_v25  ;;  %v6431_v33 = vld [vmem:[#allocation13 + $0x84] ss:$16 sps:$4 sm:$0xff]   ;;  %v7146_v36 = vpack.c.bf16 %v571_v31, %v567_v30  ;;  %v588_v42 = vld [vmem:[#allocation15 + $0x168] sm:$0xff] }
  0xa0   :  { %8667 = vst [vmem:[#allocation36_spill] sm:$0xff] %v7149_v37  ;;  %v575_v38 = vld [vmem:[#allocation15 + $0x100] sm:$0xff]  ;;  %v7155_v46 = vpack.c.bf16 %v588_v42, %v584_v41  ;;  %v592_v49 = vld [vmem:[#allocation15 + $0x188] sm:$0xff]  ;;  %v546_v41 = vld [vmem:[#allocation15 + $0x18] sm:$0xff] }
  0xa1   :  { %4841 = vmatpush1.bf16.msra.mxu0 %v7140_v26  ;;  %8666 = vst [vmem:[#allocation35_spill] sm:$0xff] %v7146_v36  ;;  %v579_v39 = vld [vmem:[#allocation15 + $0x120] sm:$0xff]  ;;  %v596_v50 = vld [vmem:[#allocation15 + $0x1a8] sm:$0xff]  ;;  %v550_v42 = vld [vmem:[#allocation15 + $0x38] sm:$0xff] }
  0xa2   :  { %4843 = vmatprep.subr.bf16.mxu0 %v7143_v29  ;;  %404 = vmatpush1.bf16.msra.mxu1 %v6430_v32  ;;  %v6433_v40 = vld [vmem:[#allocation13 + $0x80] ss:$16 sps:$4 sm:$0xff]   ;;  %v6434_v43 = vld [vmem:[#allocation13 + $0xa4] ss:$16 sps:$4 sm:$0xff]   ;;  %v7152_v44 = vpack.c.bf16 %v579_v39, %v575_v38  ;;  %8669 = vst [vmem:[#allocation38_spill] sm:$0xff] %v7155_v46  ;;  %v7161_v55 = vpack.c.bf16 %v596_v50, %v592_v49  ;;  %v600_v57 = vld [vmem:[#allocation15 + $0x1c8] sm:$0xff] }
  0xa3   :  { %405 = vmatprep.subr.bf16.mxu1 %v6431_v33  ;;  %v6436_v45 = vld [vmem:[#allocation13 + $0xa0] ss:$16 sps:$4 sm:$0xff]   ;;  %v6437_v51 = vld [vmem:[#allocation13 + $0xc4] ss:$16 sps:$4 sm:$0xff]   ;;  %v604_v58 = vld [vmem:[#allocation15 + $0x1e8] sm:$0xff] }
  0xa4   :  { %8668 = vst [vmem:[#allocation37_spill] sm:$0xff] %v7152_v44  ;;  %v583_v47 = vld [vmem:[#allocation15 + $0x140] sm:$0xff]  ;;  %8671 = vst [vmem:[#allocation40_spill] sm:$0xff] %v7161_v55  ;;  %v7167_v63 = vpack.c.bf16 %v604_v58, %v600_v57  ;;  %v172_v4 = vld [vmem:[#allocation7 + $0x8] sm:$0xff] }
  0xa5   :  { %4845 = vmatpush1.bf16.msra.mxu0 %v7146_v36  ;;  %v587_v48 = vld [vmem:[#allocation15 + $0x160] sm:$0xff]  ;;  %v6445_v5 = vld [vmem:[#allocation13 + $0xc] ss:$16 sps:$4 sm:$0xff]   ;;  %v6443_v10 = vld [vmem:[#allocation13 + $0x8] ss:$16 sps:$4 sm:$0xff]  }
  0xa6   :  { %4847 = vmatprep.subr.bf16.mxu0 %v7149_v37  ;;  %406 = vmatpush1.bf16.msra.mxu1 %v6433_v40  ;;  %v7158_v52 = vpack.c.bf16 %v587_v48, %v583_v47  ;;  %v6439_v53 = vld [vmem:[#allocation13 + $0xc0] ss:$16 sps:$4 sm:$0xff]   ;;  %v6440_v59 = vld [vmem:[#allocation13 + $0xe4] ss:$16 sps:$4 sm:$0xff]   ;;  %8673 = vst [vmem:[#allocation42_spill] sm:$0xff] %v7167_v63  ;;  %v176_v25 = vld [vmem:[#allocation7 + $0x28] sm:$0xff] }
  0xa7   :  { %407 = vmatprep.subr.bf16.mxu1 %v6434_v43  ;;  %v591_v54 = vld [vmem:[#allocation15 + $0x180] sm:$0xff]  ;;  %v6448_v11 = vld [vmem:[#allocation13 + $0x2c] ss:$16 sps:$4 sm:$0xff]   ;;  %v6446_v13 = vld [vmem:[#allocation13 + $0x28] ss:$16 sps:$4 sm:$0xff]  }
  0xa8   :  { %8670 = vst [vmem:[#allocation39_spill] sm:$0xff] %v7158_v52  ;;  %v595_v56 = vld [vmem:[#allocation15 + $0x1a0] sm:$0xff]  ;;  %v6451_v18 = vld [vmem:[#allocation13 + $0x4c] ss:$16 sps:$4 sm:$0xff]   ;;  %v6449_v20 = vld [vmem:[#allocation13 + $0x48] ss:$16 sps:$4 sm:$0xff]  }
  0xa9   :  { %4849 = vmatpush1.bf16.msra.mxu0 %v7152_v44  ;;  %v7164_v60 = vpack.c.bf16 %v595_v56, %v591_v54  ;;  %v6442_v61 = vld [vmem:[#allocation13 + $0xe0] ss:$16 sps:$4 sm:$0xff]   ;;  %v6454_v21 = vld [vmem:[#allocation13 + $0x6c] ss:$16 sps:$4 sm:$0xff]   ;;  %v6452_v22 = vld [vmem:[#allocation13 + $0x68] ss:$16 sps:$4 sm:$0xff]  }
  0xaa   :  { %4851 = vmatprep.subr.bf16.mxu0 %v7155_v46  ;;  %408 = vmatpush1.bf16.msra.mxu1 %v6436_v45  ;;  %v599_v62 = vld [vmem:[#allocation15 + $0x1c0] sm:$0xff]  ;;  %v6457_v27 = vld [vmem:[#allocation13 + $0x8c] ss:$16 sps:$4 sm:$0xff]   ;;  %v6455_v28 = vld [vmem:[#allocation13 + $0x88] ss:$16 sps:$4 sm:$0xff]   ;;  %v7194_v45 = vpack.c.bf16 %v550_v42, %v546_v41 }
  0xab   :  { %409 = vmatprep.subr.bf16.mxu1 %v6437_v51  ;;  %8672 = vst [vmem:[#allocation41_spill] sm:$0xff] %v7164_v60  ;;  %v603_v2 = vld [vmem:[#allocation15 + $0x1e0] sm:$0xff]  ;;  %v6460_v31 = vld [vmem:[#allocation13 + $0xac] ss:$16 sps:$4 sm:$0xff]   ;;  %v6458_v32 = vld [vmem:[#allocation13 + $0xa8] ss:$16 sps:$4 sm:$0xff]  }
  0xac   :  { %v171_v3 = vld [vmem:[#allocation7] sm:$0xff]  ;;  %v7170_v7 = vpack.c.bf16 %v603_v2, %v599_v62  ;;  %v177_v33 = vld [vmem:[#allocation7 + $0x30] sm:$0xff]  ;;  %v6463_v35 = vld [vmem:[#allocation13 + $0xcc] ss:$16 sps:$4 sm:$0xff]   ;;  %8675 = vst [vmem:[#allocation44_spill] sm:$0xff] %v7194_v45 }
  0xad   :  { %4853 = vmatpush1.bf16.msra.mxu0 %v7158_v52  ;;  %v7173_v8 = vpack.c.bf16 %v172_v4, %v171_v3  ;;  %v7176_v12 = vld [vmem:[#allocation10] sm:$0xff]  ;;  %v7190_v38 = vpack.c.bf16 %v178_v34, %v177_v33  ;;  %v6461_v39 = vld [vmem:[#allocation13 + $0xc8] ss:$16 sps:$4 sm:$0xff]   ;;  %v6466_v40 = vld [vmem:[#allocation13 + $0xec] ss:$16 sps:$4 sm:$0xff]  }
  0xae   :  { %4855 = vmatprep.subr.bf16.mxu0 %v7161_v55  ;;  %410 = vmatpush1.bf16.msra.mxu1 %v6439_v53  ;;  %8674 = vst [vmem:[#allocation43_spill] sm:$0xff] %v7170_v7  ;;  %v175_v23 = vld [vmem:[#allocation7 + $0x20] sm:$0xff]  ;;  %v6464_v43 = vld [vmem:[#allocation13 + $0xe8] ss:$16 sps:$4 sm:$0xff]   ;;  %v545_v47 = vld [vmem:[#allocation15 + $0x10] sm:$0xff] }
  0xaf   :  { %411 = vmatprep.subr.bf16.mxu1 %v6440_v59  ;;  %v7186_v30 = vpack.c.bf16 %v176_v25, %v175_v23  ;;  %v549_v48 = vld [vmem:[#allocation15 + $0x30] sm:$0xff]  ;;  %v554_v49 = vld [vmem:[#allocation15 + $0x58] sm:$0xff] }
  0xb0   :  { %v558_v50 = vld [vmem:[#allocation15 + $0x78] sm:$0xff]  ;;  %v7196_v51 = vpack.c.bf16 %v549_v48, %v545_v47  ;;  %v553_v54 = vld [vmem:[#allocation15 + $0x50] sm:$0xff]  ;;  %v672_v48 = vld [vmem:[#allocation18 + $0x8] sm:$0xff] }
  0xb1   :  { %4857 = vmatpush1.bf16.msra.mxu0 %v7164_v60  ;;  %v7199_v53 = vpack.c.bf16 %v558_v50, %v554_v49  ;;  %v557_v56 = vld [vmem:[#allocation15 + $0x70] sm:$0xff]  ;;  %v562_v57 = vld [vmem:[#allocation15 + $0x98] sm:$0xff]  ;;  %v676_v49 = vld [vmem:[#allocation18 + $0x28] sm:$0xff] }
  0xb2   :  { %4859 = vmatprep.subr.bf16.mxu0 %v7167_v63  ;;  %412 = vmatpush1.bf16.msra.mxu1 %v6442_v61  ;;  %v566_v58 = vld [vmem:[#allocation15 + $0xb8] sm:$0xff]  ;;  %v7203_v59 = vpack.c.bf16 %v557_v56, %v553_v54  ;;  %v561_v62 = vld [vmem:[#allocation15 + $0x90] sm:$0xff]  ;;  %v7252_v54 = vpack.c.bf16 %v676_v49, %v672_v48  ;;  %v671_v56 = vld [vmem:[#allocation18] sm:$0xff] }
  0xb3   :  { %470 = vmatprep.subr.bf16.mxu1 %v6445_v5  ;;  %v7207_v61 = vpack.c.bf16 %v566_v58, %v562_v57  ;;  %v565_v2 = vld [vmem:[#allocation15 + $0xb0] sm:$0xff]  ;;  %v570_v3 = vld [vmem:[#allocation15 + $0xd8] sm:$0xff]  ;;  %v675_v57 = vld [vmem:[#allocation18 + $0x20] sm:$0xff] }
  0xb4   :  { %v574_v4 = vld [vmem:[#allocation15 + $0xf8] sm:$0xff]  ;;  %v7210_v5 = vpack.c.bf16 %v565_v2, %v561_v62  ;;  %v605_v47 = vld [vmem:[#allocation15 + $0x1f0] sm:$0xff]  ;;  %8687 = vst [vmem:[#allocation56_spill] sm:$0xff] %v7252_v54  ;;  %v7256_v62 = vpack.c.bf16 %v675_v57, %v671_v56  ;;  %v696_v57 = vld [vmem:[#allocation18 + $0xc8] sm:$0xff] }
  0xb5   :  { %4861 = vmatpush1.bf16.msra.mxu0 %v7170_v7  ;;  %430 = vmatmul.mubr.bf16.vlgmr.msra.gmra.mrb[0].mxu1 %v7173_v8  ;;  %v582_v14 = vld [vmem:[#allocation15 + $0x138] sm:$0xff]  ;;  %v673_v2 = vld [vmem:[#allocation18 + $0x10] sm:$0xff] }
  0xb6   :  { %471 = vmatpush1.bf16.msra.mxu1 %v6443_v10  ;;  %439 = vmatprep.mubr.bf16.mxu1 %v6907_v0  ;;  %8676 = vst [vmem:[#allocation45_spill] sm:$0xff] %v7210_v5  ;;  %v569_v10 = vld [vmem:[#allocation15 + $0xd0] sm:$0xff]  ;;  %v590_v23 = vld [vmem:[#allocation15 + $0x178] sm:$0xff]  ;;  %8689 = vst [vmem:[#allocation58_spill] sm:$0xff] %v7256_v62 }
  0xb7   :  { %472 = vmatprep.subr.bf16.mxu1 %v6448_v11  ;;  %v573_v11 = vld [vmem:[#allocation15 + $0xf0] sm:$0xff]  ;;  %v606_v41 = vld [vmem:[#allocation15 + $0x1f8] sm:$0xff]  ;;  %4895 = vmatprep.subr.bf16.mxu0 %v7252_v54 }
  0xb8   :  { %822 = vmatmul.mubr.f32.vlgmr.msra.gmra.mrb[0].mxu0 %v7176_v12  ;;  %v7217_v16 = vpack.c.bf16 %v573_v11, %v569_v10  ;;  %v674_v50 = vld [vmem:[#allocation18 + $0x18] sm:$0xff]  ;;  %v684_v10 = vld [vmem:[#allocation18 + $0x68] sm:$0xff] }
  0xb9   :  { %985 = vmatprep.mubr.f32.mxu0 %v8465_v1  ;;  %4897 = vmatpush1.bf16.msra.mxu0 %v7256_v62  ;;  %v682_v11 = vld [vmem:[#allocation18 + $0x58] sm:$0xff] }
  0xba   :  { %473 = vmatpush1.bf16.msra.mxu1 %v6446_v13  ;;  %v578_v13 = vld [vmem:[#allocation15 + $0x118] sm:$0xff]  ;;  %8678 = vst [vmem:[#allocation47_spill] sm:$0xff] %v7217_v16 }
  0xbb   :  { %474 = vmatprep.subr.bf16.mxu1 %v6451_v18  ;;  %v7221_v18 = vpack.c.bf16 %v582_v14, %v578_v13  ;;  %v686_v14 = vld [vmem:[#allocation18 + $0x78] sm:$0xff] }
  0xbd   :  { %440 = vmatmul.mubr.bf16.gmra.mrb[4].mxu1 %v7182_v19  ;;  %8679 = vst [vmem:[#allocation48_spill] sm:$0xff] %v7221_v18 }
  0xbe   :  { %475 = vmatpush1.bf16.msra.mxu1 %v6449_v20  ;;  %449 = vmatprep.mubr.bf16.mxu1 %v6907_v0  ;;  %v577_v20 = vld [vmem:[#allocation15 + $0x110] sm:$0xff] }
  0xbf   :  { %476 = vmatprep.subr.bf16.mxu1 %v6454_v21  ;;  %v581_v21 = vld [vmem:[#allocation15 + $0x130] sm:$0xff] }
  0xc0   :  { %v7224_v25 = vpack.c.bf16 %v581_v21, %v577_v20  ;;  %v679_v20 = vld [vmem:[#allocation18 + $0x40] sm:$0xff] }
  0xc1   :  { %v683_v21 = vld [vmem:[#allocation18 + $0x60] sm:$0xff] }
  0xc2   :  { %477 = vmatpush1.bf16.msra.mxu1 %v6452_v22  ;;  %v586_v22 = vld [vmem:[#allocation15 + $0x158] sm:$0xff]  ;;  %8680 = vst [vmem:[#allocation49_spill] sm:$0xff] %v7224_v25 }
  0xc3   :  { %478 = vmatprep.subr.bf16.mxu1 %v6457_v27  ;;  %v585_v27 = vld [vmem:[#allocation15 + $0x150] sm:$0xff] }
  0xc5   :  { %450 = vmatmul.mubr.bf16.gmra.mrb[8].mxu1 %v7186_v30 }
  0xc6   :  { %479 = vmatpush1.bf16.msra.mxu1 %v6455_v28  ;;  %459 = vmatprep.mubr.bf16.mxu1 %v6907_v0  ;;  %v589_v28 = vld [vmem:[#allocation15 + $0x170] sm:$0xff] }
  0xc7   :  { %480 = vmatprep.subr.bf16.mxu1 %v6460_v31  ;;  %v594_v31 = vld [vmem:[#allocation15 + $0x198] sm:$0xff]  ;;  %v7231_v33 = vpack.c.bf16 %v589_v28, %v585_v27  ;;  %v681_v27 = vld [vmem:[#allocation18 + $0x50] sm:$0xff] }
  0xc8   :  { %v685_v28 = vld [vmem:[#allocation18 + $0x70] sm:$0xff] }
  0xc9   :  { %8682 = vst [vmem:[#allocation51_spill] sm:$0xff] %v7231_v33 }
  0xca   :  { %481 = vmatpush1.bf16.msra.mxu1 %v6458_v32  ;;  %v598_v32 = vld [vmem:[#allocation15 + $0x1b8] sm:$0xff] }
  0xcb   :  { %482 = vmatprep.subr.bf16.mxu1 %v6463_v35  ;;  %v7235_v34 = vpack.c.bf16 %v598_v32, %v594_v31  ;;  %v593_v35 = vld [vmem:[#allocation15 + $0x190] sm:$0xff]  ;;  %v7271_v31 = vpack.c.bf16 %v685_v28, %v681_v27  ;;  %v688_v32 = vld [vmem:[#allocation18 + $0x88] sm:$0xff] }
  0xcc   :  { %v697_v27 = vld [vmem:[#allocation18 + $0xd0] sm:$0xff] }
  0xcd   :  { %460 = vmatmul.mubr.bf16.gmra.mrb[12].mxu1 %v7190_v38  ;;  %8683 = vst [vmem:[#allocation52_spill] sm:$0xff] %v7235_v34  ;;  %8694 = vst [vmem:[#allocation63_spill] sm:$0xff] %v7271_v31  ;;  %v701_v28 = vld [vmem:[#allocation18 + $0xf0] sm:$0xff] }
  0xce   :  { %483 = vmatpush1.bf16.msra.mxu1 %v6461_v39  ;;  %502 = vmatprep.mubr.bf16.mxu1 %v6907_v0  ;;  %v597_v39 = vld [vmem:[#allocation15 + $0x1b0] sm:$0xff] }
  0xcf   :  { %484 = vmatprep.subr.bf16.mxu1 %v6466_v40  ;;  %v602_v40 = vld [vmem:[#allocation15 + $0x1d8] sm:$0xff]  ;;  %v7238_v42 = vpack.c.bf16 %v597_v39, %v593_v35  ;;  %v692_v35 = vld [vmem:[#allocation18 + $0xa8] sm:$0xff] }
  0xd0   :  { %v690_v39 = vld [vmem:[#allocation18 + $0x98] sm:$0xff] }
  0xd1   :  { %8684 = vst [vmem:[#allocation53_spill] sm:$0xff] %v7238_v42 }
  0xd2   :  { %485 = vmatpush1.bf16.msra.mxu1 %v6464_v43  ;;  %v601_v43 = vld [vmem:[#allocation15 + $0x1d0] sm:$0xff] }
  0xd3   :  { %4863 = vmatprep.subr.bf16.mxu1 %v7194_v45 }
  0xd5   :  { %503 = vmatmul.mubr.bf16.vlgmr.msra.gmra.mrb[16].mxu1 %v7173_v8  ;;  %v7213_v8 = vpack.c.bf16 %v574_v4, %v570_v3  ;;  %v677_v3 = vld [vmem:[#allocation18 + $0x30] sm:$0xff] }
  0xd6   :  { %4865 = vmatpush1.bf16.msra.mxu1 %v7196_v51  ;;  %512 = vmatprep.mubr.bf16.mxu1 %v6907_v0  ;;  %v7259_v4 = vpack.c.bf16 %v677_v3, %v673_v2  ;;  %v700_v2 = vld [vmem:[#allocation18 + $0xe8] sm:$0xff]  ;;  %v698_v3 = vld [vmem:[#allocation18 + $0xd8] sm:$0xff] }
  0xd7   :  { %4867 = vmatprep.subr.bf16.mxu1 %v7199_v53  ;;  %8677 = vst [vmem:[#allocation46_spill] sm:$0xff] %v7213_v8 }
  0xd8   :  { %8690 = vst [vmem:[#allocation59_spill] sm:$0xff] %v7259_v4 }
  0xda   :  { %4869 = vmatpush1.bf16.msra.mxu1 %v7203_v59 }
  0xdb   :  { %4871 = vmatprep.subr.bf16.mxu1 %v7207_v61 }
  0xdd   :  { %513 = vmatmul.mubr.bf16.gmra.mrb[20].mxu1 %v7182_v19  ;;  %v7227_v19 = vpack.c.bf16 %v590_v23, %v586_v22  ;;  %v7266_v22 = vpack.c.bf16 %v686_v14, %v682_v11  ;;  %v7268_v23 = vpack.c.bf16 %v683_v21, %v679_v20  ;;  %v695_v11 = vld [vmem:[#allocation18 + $0xc0] sm:$0xff] }
  0xde   :  { %4873 = vmatpush1.bf16.msra.mxu1 %v7210_v5  ;;  %522 = vmatprep.mubr.bf16.mxu1 %v6907_v0  ;;  %v699_v14 = vld [vmem:[#allocation18 + $0xe0] sm:$0xff] }
  0xdf   :  { %4875 = vmatprep.subr.bf16.mxu1 %v7213_v8  ;;  %8681 = vst [vmem:[#allocation50_spill] sm:$0xff] %v7227_v19  ;;  %8692 = vst [vmem:[#allocation61_spill] sm:$0xff] %v7266_v22  ;;  %v7292_v21 = vpack.c.bf16 %v699_v14, %v695_v11  ;;  %v712_v14 = vld [vmem:[#allocation18 + $0x148] sm:$0xff] }
  0xe0   :  { %8693 = vst [vmem:[#allocation62_spill] sm:$0xff] %v7268_v23 }
  0xe1   :  { %8701 = vst [vmem:[#allocation70_spill] sm:$0xff] %v7292_v21 }
  0xe2   :  { %4877 = vmatpush1.bf16.msra.mxu1 %v7217_v16 }
  0xe3   :  { %4879 = vmatprep.subr.bf16.mxu1 %v7221_v18 }
  0xe5   :  { %523 = vmatmul.mubr.bf16.gmra.mrb[24].mxu1 %v7186_v30  ;;  %v7241_v30 = vpack.c.bf16 %v606_v41, %v602_v40  ;;  %v7276_v40 = vpack.c.bf16 %v692_v35, %v688_v32  ;;  %v694_v41 = vld [vmem:[#allocation18 + $0xb8] sm:$0xff]  ;;  %v7295_v32 = vpack.c.bf16 %v701_v28, %v697_v27  ;;  %v704_v35 = vld [vmem:[#allocation18 + $0x108] sm:$0xff] }
  0xe6   :  { %4881 = vmatpush1.bf16.msra.mxu1 %v7224_v25  ;;  %532 = vmatprep.mubr.bf16.mxu1 %v6907_v0  ;;  %v7245_v0 = vpack.c.bf16 %v605_v47, %v601_v43  ;;  %v687_v43 = vld [vmem:[#allocation18 + $0x80] sm:$0xff]  ;;  %v7278_v48 = vpack.c.bf16 %v694_v41, %v690_v39  ;;  %v708_v39 = vld [vmem:[#allocation18 + $0x128] sm:$0xff]  ;;  %v706_v41 = vld [vmem:[#allocation18 + $0x118] sm:$0xff] }
  0xe7   :  { %4883 = vmatprep.subr.bf16.mxu1 %v7227_v19  ;;  %8685 = vst [vmem:[#allocation54_spill] sm:$0xff] %v7241_v30  ;;  %8695 = vst [vmem:[#allocation64_spill] sm:$0xff] %v7276_v40  ;;  %v691_v47 = vld [vmem:[#allocation18 + $0xa0] sm:$0xff]  ;;  %v716_v27 = vld [vmem:[#allocation18 + $0x168] sm:$0xff] }
  0xe8   :  { %8686 = vst [vmem:[#allocation55_spill] sm:$0xff] %v7245_v0  ;;  %8696 = vst [vmem:[#allocation65_spill] sm:$0xff] %v7278_v48  ;;  %v7280_v49 = vpack.c.bf16 %v691_v47, %v687_v43  ;;  %v7300_v43 = vpack.c.bf16 %v708_v39, %v704_v35  ;;  %v710_v47 = vld [vmem:[#allocation18 + $0x138] sm:$0xff]  ;;  %v7312_v35 = vpack.c.bf16 %v716_v27, %v712_v14  ;;  %v724_v14 = vld [vmem:[#allocation18 + $0x1a8] sm:$0xff] }
  0xe9   :  { %8702 = vst [vmem:[#allocation71_spill] sm:$0xff] %v7295_v32  ;;  %v714_v28 = vld [vmem:[#allocation18 + $0x158] sm:$0xff] }
  0xea   :  { %4885 = vmatpush1.bf16.msra.mxu1 %v7231_v33  ;;  %8697 = vst [vmem:[#allocation66_spill] sm:$0xff] %v7280_v49  ;;  %8703 = vst [vmem:[#allocation72_spill] sm:$0xff] %v7300_v43  ;;  %v718_v39 = vld [vmem:[#allocation18 + $0x178] sm:$0xff] }
  0xeb   :  { %4887 = vmatprep.subr.bf16.mxu1 %v7235_v34  ;;  %8707 = vst [vmem:[#allocation76_spill] sm:$0xff] %v7312_v35  ;;  %v722_v27 = vld [vmem:[#allocation18 + $0x198] sm:$0xff] }
  0xed   :  { %533 = vmatmul.mubr.bf16.gmra.mrb[28].mxu1 %v7190_v38  ;;  %v678_v38 = vld [vmem:[#allocation18 + $0x38] sm:$0xff] }
  0xee   :  { %4889 = vmatpush1.bf16.msra.mxu1 %v7238_v42  ;;  %892 = vmatprep.mubr.f32.mxu1 %v8465_v1  ;;  %v7254_v58 = vpack.c.bf16 %v678_v38, %v674_v50  ;;  %v689_v50 = vld [vmem:[#allocation18 + $0x90] sm:$0xff] }
  0xef   :  { %4891 = vmatprep.subr.bf16.mxu1 %v7241_v30  ;;  %v693_v38 = vld [vmem:[#allocation18 + $0xb0] sm:$0xff] }
  0xf0   :  { %8688 = vst [vmem:[#allocation57_spill] sm:$0xff] %v7254_v58  ;;  %v7283_v56 = vpack.c.bf16 %v693_v38, %v689_v50  ;;  %v703_v50 = vld [vmem:[#allocation18 + $0x100] sm:$0xff] }
  0xf1   :  { %v707_v38 = vld [vmem:[#allocation18 + $0x120] sm:$0xff] }
  0xf2   :  { %4893 = vmatpush1.bf16.msra.mxu1 %v7245_v0  ;;  %8698 = vst [vmem:[#allocation67_spill] sm:$0xff] %v7283_v56 }
  0xf3   :  { %4927 = vmatprep.subr.bf16.mxu1 %v7254_v58 }
  0xf5   :  { %893 = vmatmul.mubr.f32.vlgmr.msra.gmra.mrb[32].mxu1 %v7176_v12  ;;  %v680_v12 = vld [vmem:[#allocation18 + $0x48] sm:$0xff] }
  0xf6   :  { %1056 = vmatprep.mubr.f32.mxu1 %v8465_v1  ;;  %4929 = vmatpush1.bf16.msra.mxu1 %v7259_v4  ;;  %v7264_v13 = vpack.c.bf16 %v684_v10, %v680_v12  ;;  %v7288_v12 = vpack.c.bf16 %v700_v2, %v696_v57  ;;  %v702_v10 = vld [vmem:[#allocation18 + $0xf8] sm:$0xff]  ;;  %v7302_v57 = vpack.c.bf16 %v710_v47, %v706_v41  ;;  %v711_v41 = vld [vmem:[#allocation18 + $0x140] sm:$0xff] }
  0xf7   :  { %4931 = vmatprep.subr.bf16.mxu1 %v7266_v22  ;;  %v7290_v20 = vpack.c.bf16 %v702_v10, %v698_v3  ;;  %v7304_v2 = vpack.c.bf16 %v707_v38, %v703_v50  ;;  %v705_v3 = vld [vmem:[#allocation18 + $0x110] sm:$0xff]  ;;  %v715_v47 = vld [vmem:[#allocation18 + $0x160] sm:$0xff]  ;;  %v7314_v50 = vpack.c.bf16 %v718_v39, %v714_v28  ;;  %v726_v28 = vld [vmem:[#allocation18 + $0x1b8] sm:$0xff] }
  0xf8   :  { %8691 = vst [vmem:[#allocation60_spill] sm:$0xff] %v7264_v13  ;;  %4899 = vmatprep.subr.bf16.mxu0 %v7264_v13  ;;  %8699 = vst [vmem:[#allocation68_spill] sm:$0xff] %v7288_v12  ;;  %v709_v10 = vld [vmem:[#allocation18 + $0x130] sm:$0xff]  ;;  %v7316_v38 = vpack.c.bf16 %v715_v47, %v711_v41  ;;  %v719_v39 = vld [vmem:[#allocation18 + $0x180] sm:$0xff]  ;;  %v7326_v47 = vpack.c.bf16 %v726_v28, %v722_v27 }
  0xf9   :  { %4901 = vmatpush1.bf16.msra.mxu0 %v7268_v23  ;;  %8700 = vst [vmem:[#allocation69_spill] sm:$0xff] %v7290_v20  ;;  %8704 = vst [vmem:[#allocation73_spill] sm:$0xff] %v7302_v57  ;;  %v7307_v11 = vpack.c.bf16 %v709_v10, %v705_v3  ;;  %v713_v3 = vld [vmem:[#allocation18 + $0x150] sm:$0xff]  ;;  %v723_v41 = vld [vmem:[#allocation18 + $0x1a0] sm:$0xff] }
  0xfa   :  { %4933 = vmatpush1.bf16.msra.mxu1 %v7271_v31  ;;  %4903 = vmatprep.subr.bf16.mxu0 %v7276_v40  ;;  %8705 = vst [vmem:[#allocation74_spill] sm:$0xff] %v7304_v2  ;;  %8708 = vst [vmem:[#allocation77_spill] sm:$0xff] %v7314_v50  ;;  %v717_v10 = vld [vmem:[#allocation18 + $0x170] sm:$0xff]  ;;  %v734_v27 = vld [vmem:[#allocation18 + $0x1f8] sm:$0xff] }
  0xfb   :  { %4935 = vmatprep.subr.bf16.mxu1 %v7278_v48  ;;  %8706 = vst [vmem:[#allocation75_spill] sm:$0xff] %v7307_v11  ;;  %8709 = vst [vmem:[#allocation78_spill] sm:$0xff] %v7316_v38  ;;  %v7319_v1 = vpack.c.bf16 %v717_v10, %v713_v3  ;;  %v721_v3 = vld [vmem:[#allocation18 + $0x190] sm:$0xff]  ;;  %v727_v28 = vld [vmem:[#allocation18 + $0x1c0] sm:$0xff] }
  0xfc   :  { %8712 = vst [vmem:[#allocation81_spill] sm:$0xff] %v7326_v47  ;;  %v725_v10 = vld [vmem:[#allocation18 + $0x1b0] sm:$0xff] }
  0xfd   :  { %4905 = vmatpush1.bf16.msra.mxu0 %v7280_v49  ;;  %8710 = vst [vmem:[#allocation79_spill] sm:$0xff] %v7319_v1 }
  0xfe   :  { %4937 = vmatpush1.bf16.msra.mxu1 %v7283_v56  ;;  %4907 = vmatprep.subr.bf16.mxu0 %v7288_v12 }
  0xff   :  { %4939 = vmatprep.subr.bf16.mxu1 %v7290_v20 }
 0x101   :  { %4909 = vmatpush1.bf16.msra.mxu0 %v7292_v21 }
 0x102   :  { %4941 = vmatpush1.bf16.msra.mxu1 %v7295_v32  ;;  %4911 = vmatprep.subr.bf16.mxu0 %v7300_v43 }
 0x103   :  { %4943 = vmatprep.subr.bf16.mxu1 %v7302_v57  ;;  %v7328_v57 = vpack.c.bf16 %v723_v41, %v719_v39  ;;  %v731_v39 = vld [vmem:[#allocation18 + $0x1e0] sm:$0xff] }
 0x105   :  { %4913 = vmatpush1.bf16.msra.mxu0 %v7304_v2  ;;  %8713 = vst [vmem:[#allocation82_spill] sm:$0xff] %v7328_v57 }
 0x106   :  { %4945 = vmatpush1.bf16.msra.mxu1 %v7307_v11  ;;  %4915 = vmatprep.subr.bf16.mxu0 %v7312_v35  ;;  %v720_v11 = vld [vmem:[#allocation18 + $0x188] sm:$0xff]  ;;  %v7340_v35 = vpack.c.bf16 %v731_v39, %v727_v28  ;;  %v607_v28 = vld [vmem:[#allocation16] sm:$0xff] }
 0x107   :  { %4947 = vmatprep.subr.bf16.mxu1 %v7314_v50  ;;  %v7324_v2 = vpack.c.bf16 %v724_v14, %v720_v11  ;;  %v7331_v50 = vpack.c.bf16 %v725_v10, %v721_v3  ;;  %v732_v11 = vld [vmem:[#allocation18 + $0x1e8] sm:$0xff]  ;;  %v730_v14 = vld [vmem:[#allocation18 + $0x1d8] sm:$0xff]  ;;  %v729_v3 = vld [vmem:[#allocation18 + $0x1d0] sm:$0xff] }
 0x108   :  { %v7338_v41 = vpack.c.bf16 %v734_v27, %v730_v14  ;;  %8717 = vst [vmem:[#allocation86_spill] sm:$0xff] %v7340_v35  ;;  %v733_v10 = vld [vmem:[#allocation18 + $0x1f0] sm:$0xff]  ;;  %v614_v14 = vld [vmem:[#allocation16 + $0x38] sm:$0xff]  ;;  %v162_v27 = vld [vmem:[#allocation10 + $0x8] sm:$0xff] }
 0x109   :  { %4917 = vmatpush1.bf16.msra.mxu0 %v7316_v38  ;;  %8711 = vst [vmem:[#allocation80_spill] sm:$0xff] %v7324_v2  ;;  %8714 = vst [vmem:[#allocation83_spill] sm:$0xff] %v7331_v50 }
 0x10a   :  { %4949 = vmatpush1.bf16.msra.mxu1 %v7319_v1  ;;  %4919 = vmatprep.subr.bf16.mxu0 %v7324_v2  ;;  %v728_v1 = vld [vmem:[#allocation18 + $0x1c8] sm:$0xff]  ;;  %8716 = vst [vmem:[#allocation85_spill] sm:$0xff] %v7338_v41  ;;  %v611_v2 = vld [vmem:[#allocation16 + $0x20] sm:$0xff] }
 0x10b   :  { %4951 = vmatprep.subr.bf16.mxu1 %v7326_v47  ;;  %v7336_v38 = vpack.c.bf16 %v732_v11, %v728_v1  ;;  %v7343_v47 = vpack.c.bf16 %v733_v10, %v729_v3  ;;  %v612_v1 = vld [vmem:[#allocation16 + $0x28] sm:$0xff]  ;;  %v610_v11 = vld [vmem:[#allocation16 + $0x18] sm:$0xff]  ;;  %v613_v3 = vld [vmem:[#allocation16 + $0x30] sm:$0xff]  ;;  %v7353_v10 = vpack.c.bf16 %v611_v2, %v607_v28 }
 0x10c   :  { %v7350_v39 = vpack.c.bf16 %v614_v14, %v610_v11  ;;  %v622_v14 = vld [vmem:[#allocation16 + $0x78] sm:$0xff]  ;;  %v621_v28 = vld [vmem:[#allocation16 + $0x70] sm:$0xff] }
 0x10d   :  { %4921 = vmatpush1.bf16.msra.mxu0 %v7328_v57  ;;  %8715 = vst [vmem:[#allocation84_spill] sm:$0xff] %v7336_v38  ;;  %8718 = vst [vmem:[#allocation87_spill] sm:$0xff] %v7343_v47 }
 0x10e   :  { %4953 = vmatpush1.bf16.msra.mxu1 %v7331_v50  ;;  %4923 = vmatprep.subr.bf16.mxu0 %v7336_v38  ;;  %v608_v50 = vld [vmem:[#allocation16 + $0x8] sm:$0xff]  ;;  %8720 = vst [vmem:[#allocation89_spill] sm:$0xff] %v7350_v39  ;;  %v609_v38 = vld [vmem:[#allocation16 + $0x10] sm:$0xff]  ;;  %8721 = vst [vmem:[#allocation90_spill] sm:$0xff] %v7353_v10 }
 0x10f   :  { %4955 = vmatprep.subr.bf16.mxu1 %v7338_v41  ;;  %v7348_v57 = vpack.c.bf16 %v612_v1, %v608_v50  ;;  %v616_v50 = vld [vmem:[#allocation16 + $0x48] sm:$0xff]  ;;  %v615_v41 = vld [vmem:[#allocation16 + $0x40] sm:$0xff] }
 0x110   :  { %v620_v1 = vld [vmem:[#allocation16 + $0x68] sm:$0xff] }
 0x111   :  { %4925 = vmatpush1.bf16.msra.mxu0 %v7340_v35  ;;  %8719 = vst [vmem:[#allocation88_spill] sm:$0xff] %v7348_v57  ;;  %v7355_v35 = vpack.c.bf16 %v613_v3, %v609_v38  ;;  %v7360_v11 = vpack.c.bf16 %v620_v1, %v616_v50  ;;  %v617_v38 = vld [vmem:[#allocation16 + $0x50] sm:$0xff]  ;;  %v8726_v3 = vmov 0.0   ;;  %v624_v50 = vld [vmem:[#allocation16 + $0x88] sm:$0xff] }
 0x112   :  { %4957 = vmatpush1.bf16.msra.mxu1 %v7343_v47  ;;  %4959 = vmatprep.subr.bf16.mxu0 %v7348_v57  ;;  %v618_v47 = vld [vmem:[#allocation16 + $0x58] sm:$0xff]  ;;  %v619_v57 = vld [vmem:[#allocation16 + $0x60] sm:$0xff]  ;;  %v628_v1 = vld [vmem:[#allocation16 + $0xa8] sm:$0xff] }
 0x113   :  { %8722 = vst [vmem:[#allocation91_spill] sm:$0xff] %v7355_v35  ;;  %4991 = vmatprep.subr.bf16.mxu1 %v7350_v39  ;;  %8723 = vst [vmem:[#allocation92_spill] sm:$0xff] %v7360_v11  ;;  %v7362_v43 = vpack.c.bf16 %v622_v14, %v618_v47  ;;  %v7364_v2 = vpack.c.bf16 %v619_v57, %v615_v41  ;;  %v7374_v57 = vpack.c.bf16 %v628_v1, %v624_v50  ;;  %v630_v47 = vld [vmem:[#allocation16 + $0xb8] sm:$0xff]  ;;  %v623_v41 = vld [vmem:[#allocation16 + $0x80] sm:$0xff] }
 0x114   :  { %986 = vmatmul.mubr.f32.vlgmr.msra.gmra.mrb[2].mxu0 %v162_v27  ;;  %v627_v14 = vld [vmem:[#allocation16 + $0xa0] sm:$0xff] }
 0x115   :  { %1057 = vmatmul.mubr.f32.vlgmr.msra.gmra.mrb[34].mxu1 %v162_v27  ;;  %4961 = vmatpush1.bf16.msra.mxu0 %v7353_v10  ;;  %8724 = vst [vmem:[#allocation93_spill] sm:$0xff] %v7362_v43  ;;  %8725 = vst [vmem:[#allocation94_spill] sm:$0xff] %v7364_v2  ;;  %v7369_v27 = vpack.c.bf16 %v621_v28, %v617_v38  ;;  %v7378_v39 = vpack.c.bf16 %v627_v14, %v623_v41  ;;  %v625_v38 = vld [vmem:[#allocation16 + $0x90] sm:$0xff]  ;;  %v631_v1 = vld [vmem:[#allocation16 + $0xc0] sm:$0xff] }
 0x116   :  { %4993 = vmatpush1.bf16.msra.mxu1 %v7355_v35  ;;  %1127 = vmatprep.mubr.f32.mxu0 %v8726_v3  ;;  %v626_v35 = vld [vmem:[#allocation16 + $0x98] sm:$0xff]  ;;  %8728 = vst [vmem:[#allocation96_spill] sm:$0xff] %v7374_v57  ;;  %v629_v28 = vld [vmem:[#allocation16 + $0xb0] sm:$0xff] }
 0x117   :  { %1198 = vmatprep.mubr.f32.mxu1 %v8726_v3  ;;  %4963 = vmatprep.subr.bf16.mxu0 %v7360_v11  ;;  %8727 = vst [vmem:[#allocation95_spill] sm:$0xff] %v7369_v27  ;;  %v7376_v10 = vpack.c.bf16 %v630_v47, %v626_v35  ;;  %8730 = vst [vmem:[#allocation98_spill] sm:$0xff] %v7378_v39  ;;  %v636_v11 = vld [vmem:[#allocation16 + $0xe8] sm:$0xff]  ;;  %v638_v35 = vld [vmem:[#allocation16 + $0xf8] sm:$0xff] }
 0x118   :  { %4995 = vmatprep.subr.bf16.mxu1 %v7362_v43  ;;  %v7381_v43 = vpack.c.bf16 %v629_v28, %v625_v38  ;;  %v635_v47 = vld [vmem:[#allocation16 + $0xe0] sm:$0xff]  ;;  %v633_v38 = vld [vmem:[#allocation16 + $0xd0] sm:$0xff] }
 0x119   :  { %4965 = vmatpush1.bf16.msra.mxu0 %v7364_v2  ;;  %8729 = vst [vmem:[#allocation97_spill] sm:$0xff] %v7376_v10  ;;  %v632_v2 = vld [vmem:[#allocation16 + $0xc8] sm:$0xff]  ;;  %v7390_v14 = vpack.c.bf16 %v635_v47, %v631_v1  ;;  %v637_v28 = vld [vmem:[#allocation16 + $0xf0] sm:$0xff] }
 0x11a   :  { %4997 = vmatpush1.bf16.msra.mxu1 %v7369_v27  ;;  %4967 = vmatprep.subr.bf16.mxu0 %v7374_v57  ;;  %8731 = vst [vmem:[#allocation99_spill] sm:$0xff] %v7381_v43  ;;  %v634_v27 = vld [vmem:[#allocation16 + $0xd8] sm:$0xff]  ;;  %v7386_v50 = vpack.c.bf16 %v636_v11, %v632_v2  ;;  %v644_v57 = vld [vmem:[#allocation16 + $0x128] sm:$0xff] }
 0x11b   :  { %4999 = vmatprep.subr.bf16.mxu1 %v7376_v10  ;;  %v7388_v41 = vpack.c.bf16 %v638_v35, %v634_v27  ;;  %8734 = vst [vmem:[#allocation102_spill] sm:$0xff] %v7390_v14  ;;  %v7393_v10 = vpack.c.bf16 %v637_v28, %v633_v38  ;;  %v646_v2 = vld [vmem:[#allocation16 + $0x138] sm:$0xff]  ;;  %v639_v27 = vld [vmem:[#allocation16 + $0x100] sm:$0xff]  ;;  %v641_v38 = vld [vmem:[#allocation16 + $0x110] sm:$0xff] }
 0x11c   :  { %8732 = vst [vmem:[#allocation100_spill] sm:$0xff] %v7386_v50  ;;  %v643_v35 = vld [vmem:[#allocation16 + $0x120] sm:$0xff]  ;;  %v645_v28 = vld [vmem:[#allocation16 + $0x130] sm:$0xff] }
 0x11d   :  { %4969 = vmatpush1.bf16.msra.mxu0 %v7378_v39  ;;  %8733 = vst [vmem:[#allocation101_spill] sm:$0xff] %v7388_v41  ;;  %8735 = vst [vmem:[#allocation103_spill] sm:$0xff] %v7393_v10  ;;  %v640_v39 = vld [vmem:[#allocation16 + $0x108] sm:$0xff]  ;;  %v7402_v47 = vpack.c.bf16 %v643_v35, %v639_v27 }
 0x11e   :  { %5001 = vmatpush1.bf16.msra.mxu1 %v7381_v43  ;;  %4971 = vmatprep.subr.bf16.mxu0 %v7386_v50  ;;  %v642_v43 = vld [vmem:[#allocation16 + $0x118] sm:$0xff]  ;;  %v7398_v11 = vpack.c.bf16 %v644_v57, %v640_v39  ;;  %v652_v50 = vld [vmem:[#allocation16 + $0x168] sm:$0xff]  ;;  %v647_v57 = vld [vmem:[#allocation16 + $0x140] sm:$0xff] }
 0x11f   :  { %5003 = vmatprep.subr.bf16.mxu1 %v7388_v41  ;;  %v7400_v1 = vpack.c.bf16 %v646_v2, %v642_v43  ;;  %8738 = vst [vmem:[#allocation106_spill] sm:$0xff] %v7402_v47  ;;  %v7405_v41 = vpack.c.bf16 %v645_v28, %v641_v38  ;;  %v654_v43 = vld [vmem:[#allocation16 + $0x178] sm:$0xff]  ;;  %v651_v2 = vld [vmem:[#allocation16 + $0x160] sm:$0xff]  ;;  %v649_v38 = vld [vmem:[#allocation16 + $0x150] sm:$0xff] }
 0x120   :  { %8736 = vst [vmem:[#allocation104_spill] sm:$0xff] %v7398_v11  ;;  %v7414_v35 = vpack.c.bf16 %v651_v2, %v647_v57  ;;  %v653_v28 = vld [vmem:[#allocation16 + $0x170] sm:$0xff] }
 0x121   :  { %4973 = vmatpush1.bf16.msra.mxu0 %v7390_v14  ;;  %8737 = vst [vmem:[#allocation105_spill] sm:$0xff] %v7400_v1  ;;  %8739 = vst [vmem:[#allocation107_spill] sm:$0xff] %v7405_v41  ;;  %v648_v14 = vld [vmem:[#allocation16 + $0x148] sm:$0xff] }
 0x122   :  { %5005 = vmatpush1.bf16.msra.mxu1 %v7393_v10  ;;  %4975 = vmatprep.subr.bf16.mxu0 %v7398_v11  ;;  %v650_v10 = vld [vmem:[#allocation16 + $0x158] sm:$0xff]  ;;  %v7410_v39 = vpack.c.bf16 %v652_v50, %v648_v14  ;;  %8742 = vst [vmem:[#allocation110_spill] sm:$0xff] %v7414_v35  ;;  %v660_v11 = vld [vmem:[#allocation16 + $0x1a8] sm:$0xff]  ;;  %v655_v14 = vld [vmem:[#allocation16 + $0x180] sm:$0xff] }
 0x123   :  { %5007 = vmatprep.subr.bf16.mxu1 %v7400_v1  ;;  %v7412_v27 = vpack.c.bf16 %v654_v43, %v650_v10  ;;  %v7417_v1 = vpack.c.bf16 %v653_v28, %v649_v38  ;;  %v662_v10 = vld [vmem:[#allocation16 + $0x1b8] sm:$0xff]  ;;  %v659_v43 = vld [vmem:[#allocation16 + $0x1a0] sm:$0xff]  ;;  %v657_v38 = vld [vmem:[#allocation16 + $0x190] sm:$0xff] }
 0x124   :  { %8740 = vst [vmem:[#allocation108_spill] sm:$0xff] %v7410_v39  ;;  %v7426_v2 = vpack.c.bf16 %v659_v43, %v655_v14  ;;  %v661_v28 = vld [vmem:[#allocation16 + $0x1b0] sm:$0xff] }
 0x125   :  { %4977 = vmatpush1.bf16.msra.mxu0 %v7402_v47  ;;  %8741 = vst [vmem:[#allocation109_spill] sm:$0xff] %v7412_v27  ;;  %8743 = vst [vmem:[#allocation111_spill] sm:$0xff] %v7417_v1  ;;  %v656_v47 = vld [vmem:[#allocation16 + $0x188] sm:$0xff] }
 0x126   :  { %5009 = vmatpush1.bf16.msra.mxu1 %v7405_v41  ;;  %4979 = vmatprep.subr.bf16.mxu0 %v7410_v39  ;;  %v658_v41 = vld [vmem:[#allocation16 + $0x198] sm:$0xff]  ;;  %v7422_v50 = vpack.c.bf16 %v660_v11, %v656_v47  ;;  %8746 = vst [vmem:[#allocation114_spill] sm:$0xff] %v7426_v2  ;;  %v668_v39 = vld [vmem:[#allocation16 + $0x1e8] sm:$0xff]  ;;  %v663_v47 = vld [vmem:[#allocation16 + $0x1c0] sm:$0xff] }
 0x127   :  { %5011 = vmatprep.subr.bf16.mxu1 %v7412_v27  ;;  %v7424_v57 = vpack.c.bf16 %v662_v10, %v658_v41  ;;  %v7429_v27 = vpack.c.bf16 %v661_v28, %v657_v38  ;;  %v670_v41 = vld [vmem:[#allocation16 + $0x1f8] sm:$0xff]  ;;  %v667_v10 = vld [vmem:[#allocation16 + $0x1e0] sm:$0xff]  ;;  %v665_v38 = vld [vmem:[#allocation16 + $0x1d0] sm:$0xff] }
 0x128   :  { %8744 = vst [vmem:[#allocation112_spill] sm:$0xff] %v7422_v50  ;;  %v7438_v43 = vpack.c.bf16 %v667_v10, %v663_v47  ;;  %v669_v28 = vld [vmem:[#allocation16 + $0x1f0] sm:$0xff] }
 0x129   :  { %4981 = vmatpush1.bf16.msra.mxu0 %v7414_v35  ;;  %8745 = vst [vmem:[#allocation113_spill] sm:$0xff] %v7424_v57  ;;  %8747 = vst [vmem:[#allocation115_spill] sm:$0xff] %v7429_v27  ;;  %v664_v35 = vld [vmem:[#allocation16 + $0x1c8] sm:$0xff] }
 0x12a   :  { %5013 = vmatpush1.bf16.msra.mxu1 %v7417_v1  ;;  %4983 = vmatprep.subr.bf16.mxu0 %v7422_v50  ;;  %v666_v1 = vld [vmem:[#allocation16 + $0x1d8] sm:$0xff]  ;;  %v7434_v11 = vpack.c.bf16 %v668_v39, %v664_v35  ;;  %8750 = vst [vmem:[#allocation118_spill] sm:$0xff] %v7438_v43 }
 0x12b   :  { %5015 = vmatprep.subr.bf16.mxu1 %v7424_v57  ;;  %v7436_v14 = vpack.c.bf16 %v670_v41, %v666_v1  ;;  %v7441_v57 = vpack.c.bf16 %v669_v28, %v665_v38  ;;  %v217_v1 = vlaneseq  ;;  %v215_v41 = vld [vmem:[%s8456_s5] sm:$0xf] }
 0x12c   :  { %8748 = vst [vmem:[#allocation116_spill] sm:$0xff] %v7434_v11 }
 0x12d   :  { %4985 = vmatpush1.bf16.msra.mxu0 %v7426_v2  ;;  %8749 = vst [vmem:[#allocation117_spill] sm:$0xff] %v7436_v14  ;;  %8751 = vst [vmem:[#allocation119_spill] sm:$0xff] %v7441_v57  ;;  %v7448_v39 = vshrl.u32 %v217_v1, 7 }
 0x12e   :  { %5017 = vmatpush1.bf16.msra.mxu1 %v7429_v27  ;;  %4987 = vmatprep.subr.bf16.mxu0 %v7434_v11 }
 0x12f   :  { %5019 = vmatprep.subr.bf16.mxu1 %v7436_v14  ;;  %8752 = vst [vmem:[#allocation120_spill] sm:$0xff] %v7448_v39  ;;  %v8573_v35 = vsub.s32 0, %v7448_v39  ;;  %v8576_v47 = vsub.s32 1, %v7448_v39 }
 0x131   :  { %4989 = vmatpush1.bf16.msra.mxu0 %v7438_v43  ;;  %v220_v10 = vrot.slane %v215_v41, %v8573_v35  ;;  %v224_v38 = vrot.slane %v215_v41, %v8576_v47 }
 0x132   :  { %5021 = vmatpush1.bf16.msra.mxu1 %v7441_v57  ;;  %5023 = vmatprep.subr.bf16.mxu0 %v7126_v6 }
 0x133   :  { %5055 = vmatprep.subr.bf16.mxu1 %v7194_v45 }
 0x188   :  { %v431_v28 = vpop.f32.mrb[0].mxu1 }
 0x189   :  { %v432_v6 = vadd.f32 %v431_v28, %v220_v10  ;;  %v433_v45 = vpop.f32.mrb[1].mxu1 }
 0x18a   :  { %v434_v57 = vadd.f32 %v433_v45, %v224_v38  ;;  %v435_v1 = vpop.f32.mrb[2].mxu1 }
 0x18b   :  { %v823_v43 = vpop.f32.mrb[0].mxu0  ;;  %v7459_v14 = vadd.f32 %v435_v1, %v220_v10  ;;  %v437_v27 = vpop.f32.mrb[3].mxu1 }
 0x18c   :  { %v899_v11 = vadd.f32 %v823_v43, %v432_v6  ;;  %v825_v2 = vpop.f32.mrb[1].mxu0  ;;  %v7461_v50 = vadd.f32 %v437_v27, %v224_v38 }
 0x18d   :  { %8753 = vst [vmem:[#allocation121_spill] sm:$0xff] %v7459_v14  ;;  %v900_v32 = vadd.f32 %v825_v2, %v434_v57 }
 0x18e   :  { %8754 = vst [vmem:[#allocation122_spill] sm:$0xff] %v7461_v50 }
 0x190   :  { %v441_v21 = vpop.f32.mrb[4].mxu1 }
 0x191   :  { %v7463_v20 = vadd.f32 %v441_v21, %v220_v10  ;;  %v443_v35 = vpop.f32.mrb[5].mxu1 }
 0x192   :  { %v7465_v12 = vadd.f32 %v443_v35, %v224_v38  ;;  %v445_v47 = vpop.f32.mrb[6].mxu1 }
 0x193   :  { %8755 = vst [vmem:[#allocation123_spill] sm:$0xff] %v7463_v20  ;;  %v7467_v28 = vadd.f32 %v445_v47, %v220_v10  ;;  %v447_v45 = vpop.f32.mrb[7].mxu1 }
 0x194   :  { %8756 = vst [vmem:[#allocation124_spill] sm:$0xff] %v7465_v12  ;;  %v7469_v56 = vadd.f32 %v447_v45, %v224_v38 }
 0x195   :  { %8757 = vst [vmem:[#allocation125_spill] sm:$0xff] %v7467_v28 }
 0x196   :  { %8758 = vst [vmem:[#allocation126_spill] sm:$0xff] %v7469_v56 }
 0x198   :  { %v451_v1 = vpop.f32.mrb[8].mxu1 }
 0x199   :  { %v7471_v14 = vadd.f32 %v451_v1, %v220_v10  ;;  %v453_v6 = vpop.f32.mrb[9].mxu1 }
 0x19a   :  { %v7473_v43 = vadd.f32 %v453_v6, %v224_v38  ;;  %v455_v27 = vpop.f32.mrb[10].mxu1  ;;  %v8579_v6 = vsub.s32 2, %v7448_v39 }
 0x19b   :  { %8759 = vst [vmem:[#allocation127_spill] sm:$0xff] %v7471_v14  ;;  %v7475_v57 = vadd.f32 %v455_v27, %v220_v10  ;;  %v457_v21 = vpop.f32.mrb[11].mxu1  ;;  %v8580_v27 = vsub.s32 3, %v7448_v39 }
 0x19c   :  { %8760 = vst [vmem:[#allocation128_spill] sm:$0xff] %v7473_v43  ;;  %v7477_v2 = vadd.f32 %v457_v21, %v224_v38  ;;  %v228_v21 = vrot.slane %v215_v41, %v8579_v6 }
 0x19d   :  { %8761 = vst [vmem:[#allocation129_spill] sm:$0xff] %v7475_v57 }
 0x19e   :  { %8762 = vst [vmem:[#allocation130_spill] sm:$0xff] %v7477_v2 }
 0x1a0   :  { %v461_v35 = vpop.f32.mrb[12].mxu1 }
 0x1a1   :  { %v7479_v12 = vadd.f32 %v461_v35, %v220_v10  ;;  %v463_v47 = vpop.f32.mrb[13].mxu1  ;;  %v232_v35 = vrot.slane %v215_v41, %v8580_v27 }
 0x1a2   :  { %v7481_v28 = vadd.f32 %v463_v47, %v224_v38  ;;  %v465_v45 = vpop.f32.mrb[14].mxu1 }
 0x1a3   :  { %8763 = vst [vmem:[#allocation131_spill] sm:$0xff] %v7479_v12  ;;  %v7483_v56 = vadd.f32 %v465_v45, %v220_v10  ;;  %v467_v1 = vpop.f32.mrb[15].mxu1 }
 0x1a4   :  { %8764 = vst [vmem:[#allocation132_spill] sm:$0xff] %v7481_v28  ;;  %v7485_v14 = vadd.f32 %v467_v1, %v224_v38 }
 0x1a5   :  { %8765 = vst [vmem:[#allocation133_spill] sm:$0xff] %v7483_v56 }
 0x1a6   :  { %8766 = vst [vmem:[#allocation134_spill] sm:$0xff] %v7485_v14 }
 0x1a8   :  { %v504_v57 = vpop.f32.mrb[16].mxu1 }
 0x1a9   :  { %v506_v2 = vpop.f32.mrb[17].mxu1 }
 0x1aa   :  { %v508_v47 = vpop.f32.mrb[18].mxu1 }
 0x1ab   :  { %v7493_v28 = vadd.f32 %v508_v47, %v228_v21  ;;  %v510_v10 = vpop.f32.mrb[19].mxu1 }
 0x1ac   :  { %v7495_v45 = vadd.f32 %v510_v10, %v232_v35 }
 0x1ad   :  { %8767 = vst [vmem:[#allocation135_spill] sm:$0xff] %v7493_v28 }
 0x1ae   :  { %8768 = vst [vmem:[#allocation136_spill] sm:$0xff] %v7495_v45 }
 0x1b0   :  { %v514_v38 = vpop.f32.mrb[20].mxu1 }
 0x1b1   :  { %v7497_v1 = vadd.f32 %v514_v38, %v228_v21  ;;  %v516_v14 = vpop.f32.mrb[21].mxu1 }
 0x1b2   :  { %v7499_v56 = vadd.f32 %v516_v14, %v232_v35  ;;  %v518_v12 = vpop.f32.mrb[22].mxu1  ;;  %v907_v14 = vmul.f32 0.5, %v900_v32 }
 0x1b3   :  { %8769 = vst [vmem:[#allocation137_spill] sm:$0xff] %v7497_v1  ;;  %v7501_v43 = vadd.f32 %v518_v12, %v228_v21  ;;  %v520_v6 = vpop.f32.mrb[23].mxu1 }
 0x1b4   :  { %8770 = vst [vmem:[#allocation138_spill] sm:$0xff] %v7499_v56  ;;  %v7503_v20 = vadd.f32 %v520_v6, %v232_v35  ;;  %v903_v56 = vmul.f32 0.5, %v899_v11  ;;  %6475 = vtanh.f32 %v907_v14 }
 0x1b5   :  { %8771 = vst [vmem:[#allocation139_spill] sm:$0xff] %v7501_v43 }
 0x1b6   :  { %8772 = vst [vmem:[#allocation140_spill] sm:$0xff] %v7503_v20  ;;  %6477 = vtanh.f32 %v903_v56  ;;  %v159_v56 = vld [vmem:[#allocation12] sm:$0xff] }
 0x1b8   :  { %v524_v50 = vpop.f32.mrb[24].mxu1 }
 0x1b9   :  { %v7505_v41 = vadd.f32 %v524_v50, %v228_v21  ;;  %v526_v47 = vpop.f32.mrb[25].mxu1 }
 0x1ba   :  { %v7507_v27 = vadd.f32 %v526_v47, %v232_v35  ;;  %v528_v10 = vpop.f32.mrb[26].mxu1 }
 0x1bb   :  { %8773 = vst [vmem:[#allocation141_spill] sm:$0xff] %v7505_v41  ;;  %v7509_v45 = vadd.f32 %v528_v10, %v228_v21  ;;  %v530_v38 = vpop.f32.mrb[27].mxu1  ;;  %v505_v10 = vadd.f32 %v504_v57, %v228_v21 }
 0x1bc   :  { %8774 = vst [vmem:[#allocation142_spill] sm:$0xff] %v7507_v27  ;;  %v7511_v1 = vadd.f32 %v530_v38, %v232_v35 }
 0x1bd   :  { %8775 = vst [vmem:[#allocation143_spill] sm:$0xff] %v7509_v45  ;;  %v507_v45 = vadd.f32 %v506_v2, %v232_v35 }
 0x1be   :  { %8776 = vst [vmem:[#allocation144_spill] sm:$0xff] %v7511_v1  ;;  %v6476_v43 = vpop.eup %6475 }
 0x1bf   :  { %v909_v14 = vmul.f32 0.5, %v6476_v43  ;;  %v8783_v43 = vld [vmem:[#allocation69_spill] sm:$0xff] }
 0x1c0   :  { %v534_v28 = vpop.f32.mrb[28].mxu1 }
 0x1c1   :  { %v7513_v12 = vadd.f32 %v534_v28, %v228_v21  ;;  %v536_v6 = vpop.f32.mrb[29].mxu1  ;;  %v6478_v28 = vpop.eup %6477 }
 0x1c2   :  { %v7515_v20 = vadd.f32 %v536_v6, %v232_v35  ;;  %v538_v50 = vpop.f32.mrb[30].mxu1  ;;  %v905_v6 = vmul.f32 0.5, %v6478_v28  ;;  %v8791_v28 = vld [vmem:[#allocation77_spill] sm:$0xff] }
 0x1c3   :  { %8777 = vst [vmem:[#allocation145_spill] sm:$0xff] %v7513_v12  ;;  %v7517_v41 = vadd.f32 %v538_v50, %v228_v21  ;;  %v540_v47 = vpop.f32.mrb[31].mxu1 }
 0x1c4   :  { %8778 = vst [vmem:[#allocation146_spill] sm:$0xff] %v7515_v20  ;;  %v7519_v27 = vadd.f32 %v540_v47, %v232_v35  ;;  %v910_v20 = vadd.f32 0.5, %v909_v14  ;;  %v906_v50 = vadd.f32 0.5, %v905_v6  ;;  %v8792_v14 = vld [vmem:[#allocation78_spill] sm:$0xff]  ;;  %v8793_v6 = vld [vmem:[#allocation79_spill] sm:$0xff] }
 0x1c5   :  { %8779 = vst [vmem:[#allocation147_spill] sm:$0xff] %v7517_v41 }
 0x1c6   :  { %8780 = vst [vmem:[#allocation148_spill] sm:$0xff] %v7519_v27  ;;  %v916_v39 = vmul.f32 %v910_v20, %v159_v56  ;;  %v8781_v20 = vld [vmem:[#allocation67_spill] sm:$0xff]  ;;  %v8794_v56 = vld [vmem:[#allocation80_spill] sm:$0xff] }
 0x1c8   :  { %v894_v38 = vpop.f32.mrb[32].mxu1 }
 0x1c9   :  { %v901_v1 = vadd.f32 %v894_v38, %v505_v10  ;;  %v896_v32 = vpop.f32.mrb[33].mxu1  ;;  %v8787_v10 = vld [vmem:[#allocation73_spill] sm:$0xff]  ;;  %v8788_v38 = vld [vmem:[#allocation74_spill] sm:$0xff] }
 0x1ca   :  { %v902_v11 = vadd.f32 %v896_v32, %v507_v45  ;;  %v8789_v32 = vld [vmem:[#allocation75_spill] sm:$0xff] }
 0x1cb   :  { %6479 = vtanh.f32 %v901_v1  ;;  %v8784_v1 = vld [vmem:[#allocation70_spill] sm:$0xff] }
 0x1cc   :  { %v912_v12 = vmul.f32 0.5, %v902_v11  ;;  %v8790_v11 = vld [vmem:[#allocation76_spill] sm:$0xff] }
 0x1ce   :  { %6481 = vtanh.f32 %v912_v12  ;;  %v8786_v12 = vld [vmem:[#allocation72_spill] sm:$0xff] }
 0x1d5   :  { %v6480_v41 = vpop.eup %6479 }
 0x1d6   :  { %v917_v47 = vmul.f32 %v6480_v41, %v906_v50  ;;  %v8785_v41 = vld [vmem:[#allocation71_spill] sm:$0xff]  ;;  %v8795_v50 = vld [vmem:[#allocation81_spill] sm:$0xff] }
 0x1d8   :  { %v7521_v27 = vadd.f32 %v917_v47, %v916_v39  ;;  %v6482_v57 = vpop.eup %6481  ;;  %v8782_v39 = vld [vmem:[#allocation68_spill] sm:$0xff]  ;;  %v8796_v47 = vld [vmem:[#allocation82_spill] sm:$0xff] }
 0x1d9   :  { %v914_v2 = vmul.f32 0.5, %v6482_v57  ;;  %v8797_v57 = vld [vmem:[#allocation83_spill] sm:$0xff] }
 0x1da   :  { %6483 = vtanh.f32 %v7521_v27 }
 0x1db   :  { %v915_v21 = vadd.f32 0.5, %v914_v2  ;;  %v8798_v2 = vld [vmem:[#allocation84_spill] sm:$0xff] }
 0x1e4   :  { %v6484_v35 = vpop.eup %6483 }
 0x1e5   :  { %v920_v45 = vmul.f32 %v6484_v35, %v915_v21  ;;  %v8799_v21 = vld [vmem:[#allocation85_spill] sm:$0xff]  ;;  %v8800_v35 = vld [vmem:[#allocation86_spill] sm:$0xff] }
 0x1e7   :  { %1128 = vmatmul.mubr.f32.vlgmr.msra.gmra.mrb[2].mxu0 %v920_v45  ;;  %1199 = vmatmul.mubr.f32.vlgmr.msra.gmra.mrb[34].mxu1 %v920_v45 }
 0x1e8   :  { %5025 = vmatpush1.bf16.msra.mxu0 %v7128_v9  ;;  %5057 = vmatpush1.bf16.msra.mxu1 %v7196_v51 }
 0x1e9   :  { %5027 = vmatprep.subr.bf16.mxu0 %v7132_v15  ;;  %5059 = vmatprep.subr.bf16.mxu1 %v7199_v53 }
 0x1ea   :  { %1292 = vmatprep.mubr.f32.mxu0 %v8726_v3  ;;  %1363 = vmatprep.mubr.f32.mxu1 %v8726_v3 }
 0x1ec   :  { %5029 = vmatpush1.bf16.msra.mxu0 %v7134_v17  ;;  %5061 = vmatpush1.bf16.msra.mxu1 %v7203_v59 }
 0x1ed   :  { %5031 = vmatprep.subr.bf16.mxu0 %v7137_v24  ;;  %5063 = vmatprep.subr.bf16.mxu1 %v7207_v61 }
 0x1f0   :  { %5033 = vmatpush1.bf16.msra.mxu0 %v7140_v26  ;;  %5065 = vmatpush1.bf16.msra.mxu1 %v7210_v5 }
 0x1f1   :  { %5035 = vmatprep.subr.bf16.mxu0 %v7143_v29  ;;  %5067 = vmatprep.subr.bf16.mxu1 %v7213_v8 }
 0x1f4   :  { %5037 = vmatpush1.bf16.msra.mxu0 %v7146_v36  ;;  %5069 = vmatpush1.bf16.msra.mxu1 %v7217_v16 }
 0x1f5   :  { %5039 = vmatprep.subr.bf16.mxu0 %v7149_v37  ;;  %5071 = vmatprep.subr.bf16.mxu1 %v7221_v18 }
 0x1f8   :  { %5041 = vmatpush1.bf16.msra.mxu0 %v7152_v44  ;;  %5073 = vmatpush1.bf16.msra.mxu1 %v7224_v25 }
 0x1f9   :  { %5043 = vmatprep.subr.bf16.mxu0 %v7155_v46  ;;  %5075 = vmatprep.subr.bf16.mxu1 %v7227_v19 }
 0x1fc   :  { %5045 = vmatpush1.bf16.msra.mxu0 %v7158_v52  ;;  %5077 = vmatpush1.bf16.msra.mxu1 %v7231_v33 }
 0x1fd   :  { %5047 = vmatprep.subr.bf16.mxu0 %v7161_v55  ;;  %5079 = vmatprep.subr.bf16.mxu1 %v7235_v34 }
 0x200   :  { %5049 = vmatpush1.bf16.msra.mxu0 %v7164_v60  ;;  %5081 = vmatpush1.bf16.msra.mxu1 %v7238_v42 }
 0x201   :  { %5051 = vmatprep.subr.bf16.mxu0 %v7167_v63  ;;  %5083 = vmatprep.subr.bf16.mxu1 %v7241_v30 }
 0x204   :  { %5053 = vmatpush1.bf16.msra.mxu0 %v7170_v7  ;;  %5085 = vmatpush1.bf16.msra.mxu1 %v7245_v0 }
 0x205   :  { %5087 = vmatprep.subr.bf16.mxu0 %v7252_v54  ;;  %5119 = vmatprep.subr.bf16.mxu1 %v7254_v58 }
 0x207   :  { %1293 = vmatmul.mubr.f32.vlgmr.msra.gmra.mrb[4].mxu0 %v920_v45  ;;  %1364 = vmatmul.mubr.f32.vlgmr.msra.gmra.mrb[36].mxu1 %v920_v45  ;;  %v8801_v45 = vld [vmem:[#allocation87_spill] sm:$0xff] }
 0x208   :  { %5089 = vmatpush1.bf16.msra.mxu0 %v7256_v62  ;;  %5121 = vmatpush1.bf16.msra.mxu1 %v7259_v4 }
 0x209   :  { %5091 = vmatprep.subr.bf16.mxu0 %v7264_v13  ;;  %5123 = vmatprep.subr.bf16.mxu1 %v7266_v22 }
 0x20a   :  { %1456 = vmatprep.mubr.f32.mxu0 %v8726_v3  ;;  %1527 = vmatprep.mubr.f32.mxu1 %v8726_v3 }
 0x20c   :  { %5093 = vmatpush1.bf16.msra.mxu0 %v7268_v23  ;;  %5125 = vmatpush1.bf16.msra.mxu1 %v7271_v31 }
 0x20d   :  { %5095 = vmatprep.subr.bf16.mxu0 %v7276_v40  ;;  %5127 = vmatprep.subr.bf16.mxu1 %v7278_v48 }
 0x210   :  { %5097 = vmatpush1.bf16.msra.mxu0 %v7280_v49  ;;  %5129 = vmatpush1.bf16.msra.mxu1 %v8781_v20 }
 0x211   :  { %5099 = vmatprep.subr.bf16.mxu0 %v8782_v39  ;;  %5131 = vmatprep.subr.bf16.mxu1 %v8783_v43 }
 0x214   :  { %5101 = vmatpush1.bf16.msra.mxu0 %v8784_v1  ;;  %5133 = vmatpush1.bf16.msra.mxu1 %v8785_v41 }
 0x215   :  { %5103 = vmatprep.subr.bf16.mxu0 %v8786_v12  ;;  %5135 = vmatprep.subr.bf16.mxu1 %v8787_v10 }
 0x218   :  { %5105 = vmatpush1.bf16.msra.mxu0 %v8788_v38  ;;  %5137 = vmatpush1.bf16.msra.mxu1 %v8789_v32 }
 0x219   :  { %5107 = vmatprep.subr.bf16.mxu0 %v8790_v11  ;;  %5139 = vmatprep.subr.bf16.mxu1 %v8791_v28  ;;  %v8802_v28 = vld [vmem:[#allocation88_spill] sm:$0xff] }
 0x21c   :  { %5109 = vmatpush1.bf16.msra.mxu0 %v8792_v14  ;;  %5141 = vmatpush1.bf16.msra.mxu1 %v8793_v6  ;;  %v8803_v14 = vld [vmem:[#allocation89_spill] sm:$0xff] }
 0x21d   :  { %5111 = vmatprep.subr.bf16.mxu0 %v8794_v56  ;;  %5143 = vmatprep.subr.bf16.mxu1 %v8795_v50  ;;  %v735_v50 = vld [vmem:[%s8459_s8] sm:$0xf] }
 0x21e   :  { %v8804_v56 = vld [vmem:[#allocation120_spill] sm:$0xff] }
 0x220   :  { %5113 = vmatpush1.bf16.msra.mxu0 %v8796_v47  ;;  %5145 = vmatpush1.bf16.msra.mxu1 %v8797_v57  ;;  %v8805_v47 = vsub.s32 0, %v8804_v56 }
 0x221   :  { %5115 = vmatprep.subr.bf16.mxu0 %v8798_v2  ;;  %5147 = vmatprep.subr.bf16.mxu1 %v8799_v21  ;;  %v8807_v2 = vsub.s32 1, %v8804_v56 }
 0x222   :  { %v7597_v6 = vrot.slane %v735_v50, %v8805_v47 }
 0x223   :  { %v7601_v57 = vrot.slane %v735_v50, %v8807_v2  ;;  %v8811_v2 = vsub.s32 3, %v8804_v56 }
 0x224   :  { %5117 = vmatpush1.bf16.msra.mxu0 %v8800_v35  ;;  %5149 = vmatpush1.bf16.msra.mxu1 %v8801_v45  ;;  %8806 = vst [vmem:[#allocation120_spill] sm:$0xff] %v7597_v6 }
 0x225   :  { %5151 = vmatprep.subr.bf16.mxu0 %v8802_v28  ;;  %5183 = vmatprep.subr.bf16.mxu1 %v8803_v14  ;;  %8808 = vst [vmem:[#allocation149_spill] sm:$0xff] %v7601_v57  ;;  %v8809_v28 = vsub.s32 2, %v8804_v56  ;;  %v7612_v41 = vrot.slane %v735_v50, %v8811_v2 }
 0x227   :  { %v7606_v11 = vrot.slane %v735_v50, %v8809_v28  ;;  %8812 = vst [vmem:[#allocation151_spill] sm:$0xff] %v7612_v41 }
 0x229   :  { %8810 = vst [vmem:[#allocation150_spill] sm:$0xff] %v7606_v11 }
 0x2ba   :  { %v1129_v21 = vpop.f32.mrb[2].mxu0  ;;  %v1200_v35 = vpop.f32.mrb[34].mxu1 }
 0x2bb   :  { %v1205_v45 = vadd.f32 %v1129_v21, %v7597_v6  ;;  %v1131_v14 = vpop.f32.mrb[3].mxu0  ;;  %v1202_v32 = vpop.f32.mrb[35].mxu1  ;;  %v1207_v47 = vadd.f32 %v1200_v35, %v7606_v11 }
 0x2bc   :  { %v1206_v38 = vadd.f32 %v1131_v14, %v7601_v57  ;;  %v1208_v21 = vadd.f32 %v1202_v32, %v7612_v41  ;;  %v8815_v41 = vld [vmem:[#allocation122_spill] sm:$0xff] }
 0x2bd   :  { %v1209_v10 = vmul.f32 0.5, %v1205_v45  ;;  %v165_v45 = vld [vmem:[#allocation12 + $0x8] sm:$0xff] }
 0x2be   :  { %v1213_v12 = vmul.f32 0.5, %v1206_v38  ;;  %v1218_v6 = vmul.f32 0.5, %v1208_v21  ;;  %v8814_v21 = vld [vmem:[#allocation135_spill] sm:$0xff] }
 0x2bf   :  { %6485 = vtanh.f32 %v1209_v10 }
 0x2c0   :  { %6487 = vtanh.f32 %v1213_v12 }
 0x2c1   :  { %6489 = vtanh.f32 %v1207_v47  ;;  %v8813_v47 = vld [vmem:[#allocation121_spill] sm:$0xff] }
 0x2c2   :  { %6491 = vtanh.f32 %v1218_v6 }
 0x2c9   :  { %v6486_v28 = vpop.eup %6485 }
 0x2ca   :  { %v6488_v1 = vpop.eup %6487  ;;  %v1211_v43 = vmul.f32 0.5, %v6486_v28 }
 0x2cb   :  { %v1215_v39 = vmul.f32 0.5, %v6488_v1  ;;  %v6490_v38 = vpop.eup %6489 }
 0x2cc   :  { %v1212_v14 = vadd.f32 0.5, %v1211_v43  ;;  %v6492_v12 = vpop.eup %6491 }
 0x2cd   :  { %v1216_v10 = vadd.f32 0.5, %v1215_v39  ;;  %v1220_v56 = vmul.f32 0.5, %v6492_v12  ;;  %v8816_v39 = vld [vmem:[#allocation136_spill] sm:$0xff]  ;;  %v8819_v12 = vld [vmem:[#allocation91_spill] sm:$0xff] }
 0x2ce   :  { %v1223_v57 = vmul.f32 %v6490_v38, %v1212_v14 }
 0x2cf   :  { %v1222_v35 = vmul.f32 %v1216_v10, %v165_v45  ;;  %v1221_v43 = vadd.f32 0.5, %v1220_v56  ;;  %v8820_v56 = vld [vmem:[#allocation92_spill] sm:$0xff] }
 0x2d1   :  { %v7615_v11 = vadd.f32 %v1223_v57, %v1222_v35  ;;  %v8818_v35 = vld [vmem:[#allocation90_spill] sm:$0xff] }
 0x2d3   :  { %6493 = vtanh.f32 %v7615_v11 }
 0x2da   :  { %v1294_v50 = vpop.f32.mrb[4].mxu0  ;;  %v1365_v32 = vpop.f32.mrb[36].mxu1 }
 0x2db   :  { %v1370_v2 = vadd.f32 %v1294_v50, %v8813_v47  ;;  %v1372_v28 = vadd.f32 %v1365_v32, %v8814_v21  ;;  %v1296_v1 = vpop.f32.mrb[5].mxu0  ;;  %v1367_v6 = vpop.f32.mrb[37].mxu1  ;;  %v8823_v50 = vld [vmem:[#allocation95_spill] sm:$0xff]  ;;  %v8824_v32 = vld [vmem:[#allocation96_spill] sm:$0xff]  ;;  %v8825_v47 = vld [vmem:[#allocation97_spill] sm:$0xff] }
 0x2dc   :  { %v1371_v20 = vadd.f32 %v1296_v1, %v8815_v41  ;;  %v1373_v14 = vadd.f32 %v1367_v6, %v8816_v39  ;;  %v8821_v41 = vld [vmem:[#allocation93_spill] sm:$0xff]  ;;  %v8826_v1 = vld [vmem:[#allocation98_spill] sm:$0xff]  ;;  %v8827_v6 = vld [vmem:[#allocation99_spill] sm:$0xff] }
 0x2dd   :  { %v6494_v45 = vpop.eup %6493  ;;  %v1374_v57 = vmul.f32 0.5, %v1370_v2  ;;  %v8828_v39 = vld [vmem:[#allocation100_spill] sm:$0xff] }
 0x2de   :  { %v7622_v38 = vmul.f32 %v6494_v45, %v1221_v43  ;;  %v1378_v10 = vmul.f32 0.5, %v1371_v20  ;;  %v8822_v20 = vld [vmem:[#allocation94_spill] sm:$0xff]  ;;  %v1383_v2 = vmul.f32 0.5, %v1373_v14  ;;  %v8829_v45 = vld [vmem:[#allocation101_spill] sm:$0xff] }
 0x2df   :  { %6495 = vtanh.f32 %v1374_v57 }
 0x2e0   :  { %8817 = vst [vmem:[#allocation121_spill] sm:$0xff] %v7622_v38  ;;  %6497 = vtanh.f32 %v1378_v10  ;;  %1457 = vmatmul.mubr.f32.vlgmr.msra.gmra.mrb[6].mxu0 %v7622_v38  ;;  %1528 = vmatmul.mubr.f32.vlgmr.msra.gmra.mrb[38].mxu1 %v7622_v38 }
 0x2e1   :  { %5153 = vmatpush1.bf16.msra.mxu0 %v8818_v35  ;;  %5185 = vmatpush1.bf16.msra.mxu1 %v8819_v12  ;;  %6499 = vtanh.f32 %v1372_v28 }
 0x2e2   :  { %5155 = vmatprep.subr.bf16.mxu0 %v8820_v56  ;;  %5187 = vmatprep.subr.bf16.mxu1 %v8821_v41  ;;  %6501 = vtanh.f32 %v1383_v2  ;;  %v8837_v2 = vld [vmem:[#allocation108_spill] sm:$0xff] }
 0x2e3   :  { %1598 = vmatprep.mubr.f32.mxu0 %v8726_v3  ;;  %1669 = vmatprep.mubr.f32.mxu1 %v8726_v3 }
 0x2e5   :  { %5157 = vmatpush1.bf16.msra.mxu0 %v8822_v20  ;;  %5189 = vmatpush1.bf16.msra.mxu1 %v8823_v50  ;;  %v8832_v20 = vld [vmem:[#allocation104_spill] sm:$0xff] }
 0x2e6   :  { %5159 = vmatprep.subr.bf16.mxu0 %v8824_v32  ;;  %5191 = vmatprep.subr.bf16.mxu1 %v8825_v47  ;;  %v8830_v32 = vld [vmem:[#allocation102_spill] sm:$0xff]  ;;  %v8831_v47 = vld [vmem:[#allocation103_spill] sm:$0xff] }
 0x2e9   :  { %v6496_v21 = vpop.eup %6495  ;;  %5161 = vmatpush1.bf16.msra.mxu0 %v8826_v1  ;;  %5193 = vmatpush1.bf16.msra.mxu1 %v8827_v6  ;;  %v8833_v1 = vld [vmem:[#allocation105_spill] sm:$0xff] }
 0x2ea   :  { %v6498_v43 = vpop.eup %6497  ;;  %v1376_v28 = vmul.f32 0.5, %v6496_v21  ;;  %5163 = vmatprep.subr.bf16.mxu0 %v8828_v39  ;;  %5195 = vmatprep.subr.bf16.mxu1 %v8829_v45  ;;  %v8835_v39 = vld [vmem:[#allocation106_spill] sm:$0xff] }
 0x2eb   :  { %v1380_v57 = vmul.f32 0.5, %v6498_v43  ;;  %v6500_v38 = vpop.eup %6499  ;;  %v8836_v43 = vld [vmem:[#allocation107_spill] sm:$0xff] }
 0x2ec   :  { %v1377_v10 = vadd.f32 0.5, %v1376_v28  ;;  %v8838_v28 = vld [vmem:[#allocation109_spill] sm:$0xff] }
 0x2ed   :  { %v1381_v50 = vadd.f32 0.5, %v1380_v57  ;;  %5165 = vmatpush1.bf16.msra.mxu0 %v8830_v32  ;;  %5197 = vmatpush1.bf16.msra.mxu1 %v8831_v47  ;;  %v6502_v57 = vpop.eup %6501 }
 0x2ee   :  { %v1388_v14 = vmul.f32 %v6500_v38, %v1377_v10  ;;  %5167 = vmatprep.subr.bf16.mxu0 %v8832_v20  ;;  %5199 = vmatprep.subr.bf16.mxu1 %v8833_v1  ;;  %v8839_v38 = vld [vmem:[#allocation110_spill] sm:$0xff]  ;;  %v8840_v10 = vld [vmem:[#allocation111_spill] sm:$0xff]  ;;  %v8841_v1 = vld [vmem:[#allocation112_spill] sm:$0xff] }
 0x2ef   :  { %v1387_v21 = vmul.f32 %v1381_v50, %v7521_v27  ;;  %v8842_v27 = vld [vmem:[#allocation113_spill] sm:$0xff]  ;;  %v1385_v50 = vmul.f32 0.5, %v6502_v57  ;;  %v8849_v20 = vld [vmem:[#allocation32_spill] sm:$0xff] }
 0x2f0   :  { %v8853_v57 = vld [vmem:[#allocation69_spill] sm:$0xff] }
 0x2f1   :  { %v7645_v6 = vadd.f32 %v1388_v14, %v1387_v21  ;;  %5169 = vmatpush1.bf16.msra.mxu0 %v8835_v39  ;;  %5201 = vmatpush1.bf16.msra.mxu1 %v8836_v43  ;;  %v8843_v14 = vld [vmem:[#allocation114_spill] sm:$0xff]  ;;  %v8844_v21 = vld [vmem:[#allocation115_spill] sm:$0xff]  ;;  %v8845_v43 = vld [vmem:[#allocation116_spill] sm:$0xff] }
 0x2f2   :  { %5171 = vmatprep.subr.bf16.mxu0 %v8837_v2  ;;  %5203 = vmatprep.subr.bf16.mxu1 %v8838_v28  ;;  %v8846_v2 = vld [vmem:[#allocation117_spill] sm:$0xff]  ;;  %v1386_v28 = vadd.f32 0.5, %v1385_v50  ;;  %v8855_v50 = vld [vmem:[#allocation71_spill] sm:$0xff] }
 0x2f3   :  { %8834 = vst [vmem:[#allocation135_spill] sm:$0xff] %v7645_v6  ;;  %6503 = vtanh.f32 %v7645_v6  ;;  %v8847_v6 = vld [vmem:[#allocation118_spill] sm:$0xff] }
 0x2f5   :  { %5173 = vmatpush1.bf16.msra.mxu0 %v8839_v38  ;;  %5205 = vmatpush1.bf16.msra.mxu1 %v8840_v10  ;;  %v8848_v38 = vld [vmem:[#allocation119_spill] sm:$0xff] }
 0x2f6   :  { %5175 = vmatprep.subr.bf16.mxu0 %v8841_v1  ;;  %5207 = vmatprep.subr.bf16.mxu1 %v8842_v27  ;;  %v8850_v1 = vld [vmem:[#allocation44_spill] sm:$0xff] }
 0x2f9   :  { %5177 = vmatpush1.bf16.msra.mxu0 %v8843_v14  ;;  %5209 = vmatpush1.bf16.msra.mxu1 %v8844_v21 }
 0x2fa   :  { %5179 = vmatprep.subr.bf16.mxu0 %v8845_v43  ;;  %5211 = vmatprep.subr.bf16.mxu1 %v8846_v2 }
 0x2fd   :  { %v6504_v39 = vpop.eup %6503  ;;  %5181 = vmatpush1.bf16.msra.mxu0 %v8847_v6  ;;  %5213 = vmatpush1.bf16.msra.mxu1 %v8848_v38 }
 0x2fe   :  { %v1391_v10 = vmul.f32 %v6504_v39, %v1386_v28  ;;  %5215 = vmatprep.subr.bf16.mxu0 %v8849_v20  ;;  %5247 = vmatprep.subr.bf16.mxu1 %v8850_v1  ;;  %v8851_v39 = vld [vmem:[#allocation67_spill] sm:$0xff]  ;;  %v8852_v28 = vld [vmem:[#allocation68_spill] sm:$0xff] }
 0x300   :  { %1599 = vmatmul.mubr.f32.vlgmr.msra.gmra.mrb[6].mxu0 %v1391_v10  ;;  %1670 = vmatmul.mubr.f32.vlgmr.msra.gmra.mrb[38].mxu1 %v1391_v10 }
 0x301   :  { %5217 = vmatpush1.bf16.msra.mxu0 %v7128_v9  ;;  %5249 = vmatpush1.bf16.msra.mxu1 %v7196_v51 }
 0x302   :  { %5219 = vmatprep.subr.bf16.mxu0 %v7132_v15  ;;  %5251 = vmatprep.subr.bf16.mxu1 %v7199_v53 }
 0x303   :  { %1764 = vmatprep.mubr.f32.mxu0 %v8726_v3  ;;  %1835 = vmatprep.mubr.f32.mxu1 %v8726_v3 }
 0x305   :  { %5221 = vmatpush1.bf16.msra.mxu0 %v7134_v17  ;;  %5253 = vmatpush1.bf16.msra.mxu1 %v7203_v59 }
 0x306   :  { %5223 = vmatprep.subr.bf16.mxu0 %v7137_v24  ;;  %5255 = vmatprep.subr.bf16.mxu1 %v7207_v61 }
 0x309   :  { %5225 = vmatpush1.bf16.msra.mxu0 %v7140_v26  ;;  %5257 = vmatpush1.bf16.msra.mxu1 %v7210_v5 }
 0x30a   :  { %5227 = vmatprep.subr.bf16.mxu0 %v7143_v29  ;;  %5259 = vmatprep.subr.bf16.mxu1 %v7213_v8 }
 0x30d   :  { %5229 = vmatpush1.bf16.msra.mxu0 %v7146_v36  ;;  %5261 = vmatpush1.bf16.msra.mxu1 %v7217_v16 }
 0x30e   :  { %5231 = vmatprep.subr.bf16.mxu0 %v7149_v37  ;;  %5263 = vmatprep.subr.bf16.mxu1 %v7221_v18 }
 0x311   :  { %5233 = vmatpush1.bf16.msra.mxu0 %v7152_v44  ;;  %5265 = vmatpush1.bf16.msra.mxu1 %v7224_v25 }
 0x312   :  { %5235 = vmatprep.subr.bf16.mxu0 %v7155_v46  ;;  %5267 = vmatprep.subr.bf16.mxu1 %v7227_v19 }
 0x315   :  { %5237 = vmatpush1.bf16.msra.mxu0 %v7158_v52  ;;  %5269 = vmatpush1.bf16.msra.mxu1 %v7231_v33 }
 0x316   :  { %5239 = vmatprep.subr.bf16.mxu0 %v7161_v55  ;;  %5271 = vmatprep.subr.bf16.mxu1 %v7235_v34 }
 0x319   :  { %5241 = vmatpush1.bf16.msra.mxu0 %v7164_v60  ;;  %5273 = vmatpush1.bf16.msra.mxu1 %v7238_v42 }
 0x31a   :  { %5243 = vmatprep.subr.bf16.mxu0 %v7167_v63  ;;  %5275 = vmatprep.subr.bf16.mxu1 %v7241_v30 }
 0x31d   :  { %5245 = vmatpush1.bf16.msra.mxu0 %v7170_v7  ;;  %5277 = vmatpush1.bf16.msra.mxu1 %v7245_v0 }
 0x31e   :  { %5279 = vmatprep.subr.bf16.mxu0 %v7252_v54  ;;  %5311 = vmatprep.subr.bf16.mxu1 %v7254_v58 }
 0x320   :  { %1765 = vmatmul.mubr.f32.vlgmr.msra.gmra.mrb[8].mxu0 %v1391_v10  ;;  %1836 = vmatmul.mubr.f32.vlgmr.msra.gmra.mrb[40].mxu1 %v1391_v10  ;;  %v8854_v10 = vld [vmem:[#allocation70_spill] sm:$0xff] }
 0x321   :  { %5281 = vmatpush1.bf16.msra.mxu0 %v7256_v62  ;;  %5313 = vmatpush1.bf16.msra.mxu1 %v7259_v4  ;;  %v8875_v62 = vld [vmem:[#allocation149_spill] sm:$0xff] }
 0x322   :  { %5283 = vmatprep.subr.bf16.mxu0 %v7264_v13  ;;  %5315 = vmatprep.subr.bf16.mxu1 %v7266_v22  ;;  %v8856_v22 = vld [vmem:[#allocation72_spill] sm:$0xff] }
 0x323   :  { %1928 = vmatprep.mubr.f32.mxu0 %v8726_v3  ;;  %1999 = vmatprep.mubr.f32.mxu1 %v8726_v3  ;;  %v8874_v13 = vld [vmem:[#allocation120_spill] sm:$0xff] }
 0x325   :  { %5285 = vmatpush1.bf16.msra.mxu0 %v7268_v23  ;;  %5317 = vmatpush1.bf16.msra.mxu1 %v7271_v31  ;;  %v8857_v23 = vld [vmem:[#allocation73_spill] sm:$0xff]  ;;  %v8858_v31 = vld [vmem:[#allocation74_spill] sm:$0xff] }
 0x326   :  { %5287 = vmatprep.subr.bf16.mxu0 %v7276_v40  ;;  %5319 = vmatprep.subr.bf16.mxu1 %v7278_v48  ;;  %v8859_v40 = vld [vmem:[#allocation75_spill] sm:$0xff]  ;;  %v8860_v48 = vld [vmem:[#allocation76_spill] sm:$0xff] }
 0x329   :  { %5289 = vmatpush1.bf16.msra.mxu0 %v7280_v49  ;;  %5321 = vmatpush1.bf16.msra.mxu1 %v8851_v39  ;;  %v8861_v49 = vld [vmem:[#allocation77_spill] sm:$0xff]  ;;  %v8862_v39 = vld [vmem:[#allocation78_spill] sm:$0xff] }
 0x32a   :  { %5291 = vmatprep.subr.bf16.mxu0 %v8852_v28  ;;  %5323 = vmatprep.subr.bf16.mxu1 %v8853_v57  ;;  %v8863_v28 = vld [vmem:[#allocation79_spill] sm:$0xff]  ;;  %v8864_v57 = vld [vmem:[#allocation80_spill] sm:$0xff] }
 0x32d   :  { %5293 = vmatpush1.bf16.msra.mxu0 %v8854_v10  ;;  %5325 = vmatpush1.bf16.msra.mxu1 %v8855_v50  ;;  %v8865_v10 = vld [vmem:[#allocation81_spill] sm:$0xff]  ;;  %v8866_v50 = vld [vmem:[#allocation82_spill] sm:$0xff] }
 0x32e   :  { %5295 = vmatprep.subr.bf16.mxu0 %v8856_v22  ;;  %5327 = vmatprep.subr.bf16.mxu1 %v8857_v23  ;;  %v8867_v22 = vld [vmem:[#allocation83_spill] sm:$0xff]  ;;  %v8868_v23 = vld [vmem:[#allocation84_spill] sm:$0xff] }
 0x331   :  { %5297 = vmatpush1.bf16.msra.mxu0 %v8858_v31  ;;  %5329 = vmatpush1.bf16.msra.mxu1 %v8859_v40  ;;  %v8869_v31 = vld [vmem:[#allocation85_spill] sm:$0xff]  ;;  %v8870_v40 = vld [vmem:[#allocation86_spill] sm:$0xff] }
 0x332   :  { %5299 = vmatprep.subr.bf16.mxu0 %v8860_v48  ;;  %5331 = vmatprep.subr.bf16.mxu1 %v8861_v49  ;;  %v8871_v48 = vld [vmem:[#allocation87_spill] sm:$0xff]  ;;  %v8872_v49 = vld [vmem:[#allocation88_spill] sm:$0xff] }
 0x335   :  { %5301 = vmatpush1.bf16.msra.mxu0 %v8862_v39  ;;  %5333 = vmatpush1.bf16.msra.mxu1 %v8863_v28  ;;  %v8873_v39 = vld [vmem:[#allocation89_spill] sm:$0xff] }
 0x336   :  { %5303 = vmatprep.subr.bf16.mxu0 %v8864_v57  ;;  %5335 = vmatprep.subr.bf16.mxu1 %v8865_v10 }
 0x339   :  { %5305 = vmatpush1.bf16.msra.mxu0 %v8866_v50  ;;  %5337 = vmatpush1.bf16.msra.mxu1 %v8867_v22 }
 0x33a   :  { %5307 = vmatprep.subr.bf16.mxu0 %v8868_v23  ;;  %5339 = vmatprep.subr.bf16.mxu1 %v8869_v31  ;;  %v8876_v31 = vld [vmem:[#allocation150_spill] sm:$0xff] }
 0x33d   :  { %5309 = vmatpush1.bf16.msra.mxu0 %v8870_v40  ;;  %5341 = vmatpush1.bf16.msra.mxu1 %v8871_v48  ;;  %v8877_v48 = vld [vmem:[#allocation151_spill] sm:$0xff] }
 0x33e   :  { %5343 = vmatprep.subr.bf16.mxu0 %v8872_v49  ;;  %5375 = vmatprep.subr.bf16.mxu1 %v8873_v39 }
 0x3d3   :  { %v1600_v28 = vpop.f32.mrb[6].mxu0  ;;  %v1671_v57 = vpop.f32.mrb[38].mxu1 }
 0x3d4   :  { %v1676_v10 = vadd.f32 %v1600_v28, %v8874_v13  ;;  %v1602_v4 = vpop.f32.mrb[7].mxu0  ;;  %v1673_v50 = vpop.f32.mrb[39].mxu1  ;;  %v1678_v54 = vadd.f32 %v1671_v57, %v8876_v31 }
 0x3d5   :  { %v1677_v22 = vadd.f32 %v1602_v4, %v8875_v62  ;;  %v1679_v40 = vadd.f32 %v1673_v50, %v8877_v48  ;;  %v8879_v50 = vld [vmem:[#allocation137_spill] sm:$0xff]  ;;  %v8880_v48 = vld [vmem:[#allocation124_spill] sm:$0xff] }
 0x3d6   :  { %v1680_v58 = vmul.f32 0.5, %v1676_v10 }
 0x3d7   :  { %v1684_v23 = vmul.f32 0.5, %v1677_v22  ;;  %v1689_v49 = vmul.f32 0.5, %v1679_v40  ;;  %v8878_v40 = vld [vmem:[#allocation123_spill] sm:$0xff] }
 0x3d8   :  { %6505 = vtanh.f32 %v1680_v58 }
 0x3d9   :  { %6507 = vtanh.f32 %v1684_v23 }
 0x3da   :  { %6509 = vtanh.f32 %v1678_v54 }
 0x3db   :  { %6511 = vtanh.f32 %v1689_v49 }
 0x3e2   :  { %v6506_v0 = vpop.eup %6505 }
 0x3e3   :  { %v6508_v39 = vpop.eup %6507  ;;  %v1682_v7 = vmul.f32 0.5, %v6506_v0 }
 0x3e4   :  { %v1686_v30 = vmul.f32 0.5, %v6508_v39  ;;  %v6510_v13 = vpop.eup %6509 }
 0x3e5   :  { %v1683_v28 = vadd.f32 0.5, %v1682_v7  ;;  %v6512_v58 = vpop.eup %6511 }
 0x3e6   :  { %v1687_v63 = vadd.f32 0.5, %v1686_v30  ;;  %v1691_v54 = vmul.f32 0.5, %v6512_v58  ;;  %v8884_v58 = vld [vmem:[#allocation95_spill] sm:$0xff] }
 0x3e7   :  { %v1694_v42 = vmul.f32 %v6510_v13, %v1683_v28  ;;  %v8881_v13 = vld [vmem:[#allocation138_spill] sm:$0xff] }
 0x3e8   :  { %v1693_v4 = vmul.f32 %v1687_v63, %v7615_v11  ;;  %v1692_v7 = vadd.f32 0.5, %v1691_v54  ;;  %v8885_v54 = vld [vmem:[#allocation96_spill] sm:$0xff] }
 0x3ea   :  { %v7737_v22 = vadd.f32 %v1694_v42, %v1693_v4 }
 0x3ec   :  { %6513 = vtanh.f32 %v7737_v22 }
 0x3f3   :  { %v1766_v23 = vpop.f32.mrb[8].mxu0  ;;  %v1837_v57 = vpop.f32.mrb[40].mxu1 }
 0x3f4   :  { %v1842_v10 = vadd.f32 %v1766_v23, %v8878_v40  ;;  %v1844_v0 = vadd.f32 %v1837_v57, %v8879_v50  ;;  %v1768_v39 = vpop.f32.mrb[9].mxu0  ;;  %v1839_v49 = vpop.f32.mrb[41].mxu1  ;;  %v8886_v23 = vld [vmem:[#allocation97_spill] sm:$0xff]  ;;  %v8888_v50 = vld [vmem:[#allocation99_spill] sm:$0xff] }
 0x3f5   :  { %v1843_v30 = vadd.f32 %v1768_v39, %v8880_v48  ;;  %v1845_v28 = vadd.f32 %v1839_v49, %v8881_v13  ;;  %v8883_v48 = vld [vmem:[#allocation94_spill] sm:$0xff]  ;;  %v8889_v49 = vld [vmem:[#allocation100_spill] sm:$0xff] }
 0x3f6   :  { %v6514_v63 = vpop.eup %6513  ;;  %v1846_v42 = vmul.f32 0.5, %v1842_v10  ;;  %v8887_v10 = vld [vmem:[#allocation98_spill] sm:$0xff] }
 0x3f7   :  { %v7744_v11 = vmul.f32 %v6514_v63, %v1692_v7  ;;  %v1850_v4 = vmul.f32 0.5, %v1843_v30  ;;  %v1855_v57 = vmul.f32 0.5, %v1845_v28 }
 0x3f8   :  { %6515 = vtanh.f32 %v1846_v42  ;;  %v8890_v42 = vld [vmem:[#allocation104_spill] sm:$0xff] }
 0x3f9   :  { %8882 = vst [vmem:[#allocation122_spill] sm:$0xff] %v7744_v11  ;;  %6517 = vtanh.f32 %v1850_v4  ;;  %1929 = vmatmul.mubr.f32.vlgmr.msra.gmra.mrb[10].mxu0 %v7744_v11  ;;  %2000 = vmatmul.mubr.f32.vlgmr.msra.gmra.mrb[42].mxu1 %v7744_v11  ;;  %v8891_v4 = vld [vmem:[#allocation105_spill] sm:$0xff]  ;;  %v8892_v11 = vld [vmem:[#allocation135_spill] sm:$0xff] }
 0x3fa   :  { %5345 = vmatpush1.bf16.msra.mxu0 %v8818_v35  ;;  %5377 = vmatpush1.bf16.msra.mxu1 %v8819_v12  ;;  %6519 = vtanh.f32 %v1844_v0 }
 0x3fb   :  { %5347 = vmatprep.subr.bf16.mxu0 %v8820_v56  ;;  %5379 = vmatprep.subr.bf16.mxu1 %v8821_v41  ;;  %6521 = vtanh.f32 %v1855_v57  ;;  %v8895_v57 = vld [vmem:[#allocation108_spill] sm:$0xff] }
 0x3fc   :  { %2070 = vmatprep.mubr.f32.mxu0 %v8726_v3  ;;  %2141 = vmatprep.mubr.f32.mxu1 %v8726_v3 }
 0x3fe   :  { %5349 = vmatpush1.bf16.msra.mxu0 %v8883_v48  ;;  %5381 = vmatpush1.bf16.msra.mxu1 %v8884_v58 }
 0x3ff   :  { %5351 = vmatprep.subr.bf16.mxu0 %v8885_v54  ;;  %5383 = vmatprep.subr.bf16.mxu1 %v8886_v23 }
 0x402   :  { %v6516_v40 = vpop.eup %6515  ;;  %5353 = vmatpush1.bf16.msra.mxu0 %v8887_v10  ;;  %5385 = vmatpush1.bf16.msra.mxu1 %v8888_v50 }
 0x403   :  { %v6518_v39 = vpop.eup %6517  ;;  %v1848_v0 = vmul.f32 0.5, %v6516_v40  ;;  %5355 = vmatprep.subr.bf16.mxu0 %v8889_v49  ;;  %5387 = vmatprep.subr.bf16.mxu1 %v8829_v45  ;;  %v8893_v49 = vld [vmem:[#allocation106_spill] sm:$0xff] }
 0x404   :  { %v1852_v7 = vmul.f32 0.5, %v6518_v39  ;;  %v6520_v13 = vpop.eup %6519  ;;  %v8894_v39 = vld [vmem:[#allocation107_spill] sm:$0xff] }
 0x405   :  { %v1849_v30 = vadd.f32 0.5, %v1848_v0  ;;  %v8896_v0 = vld [vmem:[#allocation109_spill] sm:$0xff] }
 0x406   :  { %v1853_v63 = vadd.f32 0.5, %v1852_v7  ;;  %5357 = vmatpush1.bf16.msra.mxu0 %v8830_v32  ;;  %5389 = vmatpush1.bf16.msra.mxu1 %v8831_v47  ;;  %v6522_v7 = vpop.eup %6521 }
 0x407   :  { %v1860_v28 = vmul.f32 %v6520_v13, %v1849_v30  ;;  %5359 = vmatprep.subr.bf16.mxu0 %v8890_v42  ;;  %5391 = vmatprep.subr.bf16.mxu1 %v8891_v4  ;;  %v8897_v30 = vld [vmem:[#allocation110_spill] sm:$0xff]  ;;  %v8898_v13 = vld [vmem:[#allocation111_spill] sm:$0xff]  ;;  %v8899_v4 = vld [vmem:[#allocation112_spill] sm:$0xff] }
 0x408   :  { %v1859_v40 = vmul.f32 %v1853_v63, %v8892_v11  ;;  %v1857_v11 = vmul.f32 0.5, %v6522_v7  ;;  %v8900_v7 = vld [vmem:[#allocation53_spill] sm:$0xff] }
 0x40a   :  { %v7767_v50 = vadd.f32 %v1860_v28, %v1859_v40  ;;  %5361 = vmatpush1.bf16.msra.mxu0 %v8893_v49  ;;  %5393 = vmatpush1.bf16.msra.mxu1 %v8894_v39  ;;  %v1858_v63 = vadd.f32 0.5, %v1857_v11  ;;  %v8901_v11 = vld [vmem:[#allocation42_spill] sm:$0xff] }
 0x40b   :  { %5363 = vmatprep.subr.bf16.mxu0 %v8895_v57  ;;  %5395 = vmatprep.subr.bf16.mxu1 %v8896_v0 }
 0x40c   :  { %6523 = vtanh.f32 %v7767_v50 }
 0x40e   :  { %5365 = vmatpush1.bf16.msra.mxu0 %v8897_v30  ;;  %5397 = vmatpush1.bf16.msra.mxu1 %v8898_v13 }
 0x40f   :  { %5367 = vmatprep.subr.bf16.mxu0 %v8899_v4  ;;  %5399 = vmatprep.subr.bf16.mxu1 %v8842_v27 }
 0x412   :  { %5369 = vmatpush1.bf16.msra.mxu0 %v8843_v14  ;;  %5401 = vmatpush1.bf16.msra.mxu1 %v8844_v21 }
 0x413   :  { %5371 = vmatprep.subr.bf16.mxu0 %v8845_v43  ;;  %5403 = vmatprep.subr.bf16.mxu1 %v8846_v2 }
 0x416   :  { %v6524_v28 = vpop.eup %6523  ;;  %5373 = vmatpush1.bf16.msra.mxu0 %v8847_v6  ;;  %5405 = vmatpush1.bf16.msra.mxu1 %v8848_v38 }
 0x417   :  { %v1863_v40 = vmul.f32 %v6524_v28, %v1858_v63  ;;  %5407 = vmatprep.subr.bf16.mxu0 %v8849_v20  ;;  %5439 = vmatprep.subr.bf16.mxu1 %v8850_v1  ;;  %v8902_v63 = vld [vmem:[#allocation54_spill] sm:$0xff]  ;;  %v8903_v28 = vld [vmem:[#allocation43_spill] sm:$0xff] }
 0x419   :  { %2071 = vmatmul.mubr.f32.vlgmr.msra.gmra.mrb[10].mxu0 %v1863_v40  ;;  %2142 = vmatmul.mubr.f32.vlgmr.msra.gmra.mrb[42].mxu1 %v1863_v40 }
 0x41a   :  { %5409 = vmatpush1.bf16.msra.mxu0 %v7128_v9  ;;  %5441 = vmatpush1.bf16.msra.mxu1 %v7196_v51 }
 0x41b   :  { %5411 = vmatprep.subr.bf16.mxu0 %v7132_v15  ;;  %5443 = vmatprep.subr.bf16.mxu1 %v7199_v53 }
 0x41c   :  { %2236 = vmatprep.mubr.f32.mxu0 %v8726_v3  ;;  %2307 = vmatprep.mubr.f32.mxu1 %v8726_v3 }
 0x41e   :  { %5413 = vmatpush1.bf16.msra.mxu0 %v7134_v17  ;;  %5445 = vmatpush1.bf16.msra.mxu1 %v7203_v59 }
 0x41f   :  { %5415 = vmatprep.subr.bf16.mxu0 %v7137_v24  ;;  %5447 = vmatprep.subr.bf16.mxu1 %v7207_v61 }
 0x422   :  { %5417 = vmatpush1.bf16.msra.mxu0 %v7140_v26  ;;  %5449 = vmatpush1.bf16.msra.mxu1 %v7210_v5 }
 0x423   :  { %5419 = vmatprep.subr.bf16.mxu0 %v7143_v29  ;;  %5451 = vmatprep.subr.bf16.mxu1 %v7213_v8 }
 0x426   :  { %5421 = vmatpush1.bf16.msra.mxu0 %v7146_v36  ;;  %5453 = vmatpush1.bf16.msra.mxu1 %v7217_v16 }
 0x427   :  { %5423 = vmatprep.subr.bf16.mxu0 %v7149_v37  ;;  %5455 = vmatprep.subr.bf16.mxu1 %v7221_v18 }
 0x42a   :  { %5425 = vmatpush1.bf16.msra.mxu0 %v7152_v44  ;;  %5457 = vmatpush1.bf16.msra.mxu1 %v7224_v25 }
 0x42b   :  { %5427 = vmatprep.subr.bf16.mxu0 %v7155_v46  ;;  %5459 = vmatprep.subr.bf16.mxu1 %v7227_v19  ;;  %v8904_v46 = vld [vmem:[#allocation55_spill] sm:$0xff]  ;;  %v8905_v19 = vld [vmem:[#allocation56_spill] sm:$0xff] }
 0x42e   :  { %5429 = vmatpush1.bf16.msra.mxu0 %v7158_v52  ;;  %5461 = vmatpush1.bf16.msra.mxu1 %v7231_v33  ;;  %v8906_v52 = vld [vmem:[#allocation57_spill] sm:$0xff]  ;;  %v8939_v33 = vld [vmem:[#allocation120_spill] sm:$0xff] }
 0x42f   :  { %5431 = vmatprep.subr.bf16.mxu0 %v7161_v55  ;;  %5463 = vmatprep.subr.bf16.mxu1 %v7235_v34  ;;  %v8907_v55 = vld [vmem:[#allocation58_spill] sm:$0xff]  ;;  %v8908_v34 = vld [vmem:[#allocation59_spill] sm:$0xff] }
 0x432   :  { %5433 = vmatpush1.bf16.msra.mxu0 %v7164_v60  ;;  %5465 = vmatpush1.bf16.msra.mxu1 %v8900_v7  ;;  %v8909_v60 = vld [vmem:[#allocation60_spill] sm:$0xff]  ;;  %v8910_v7 = vld [vmem:[#allocation61_spill] sm:$0xff] }
 0x433   :  { %5435 = vmatprep.subr.bf16.mxu0 %v8901_v11  ;;  %5467 = vmatprep.subr.bf16.mxu1 %v8902_v63  ;;  %v8920_v63 = vld [vmem:[#allocation71_spill] sm:$0xff]  ;;  %v8921_v11 = vld [vmem:[#allocation72_spill] sm:$0xff] }
 0x436   :  { %5437 = vmatpush1.bf16.msra.mxu0 %v8903_v28  ;;  %5469 = vmatpush1.bf16.msra.mxu1 %v8904_v46  ;;  %v8911_v28 = vld [vmem:[#allocation62_spill] sm:$0xff]  ;;  %v8912_v46 = vld [vmem:[#allocation63_spill] sm:$0xff] }
 0x437   :  { %5471 = vmatprep.subr.bf16.mxu0 %v8905_v19  ;;  %5503 = vmatprep.subr.bf16.mxu1 %v8906_v52  ;;  %v8913_v19 = vld [vmem:[#allocation64_spill] sm:$0xff]  ;;  %v8914_v52 = vld [vmem:[#allocation65_spill] sm:$0xff] }
 0x439   :  { %2237 = vmatmul.mubr.f32.vlgmr.msra.gmra.mrb[12].mxu0 %v1863_v40  ;;  %2308 = vmatmul.mubr.f32.vlgmr.msra.gmra.mrb[44].mxu1 %v1863_v40  ;;  %v8915_v40 = vld [vmem:[#allocation66_spill] sm:$0xff] }
 0x43a   :  { %5473 = vmatpush1.bf16.msra.mxu0 %v8907_v55  ;;  %5505 = vmatpush1.bf16.msra.mxu1 %v8908_v34  ;;  %v8916_v55 = vld [vmem:[#allocation67_spill] sm:$0xff]  ;;  %v8917_v34 = vld [vmem:[#allocation68_spill] sm:$0xff] }
 0x43b   :  { %5475 = vmatprep.subr.bf16.mxu0 %v8909_v60  ;;  %5507 = vmatprep.subr.bf16.mxu1 %v8910_v7  ;;  %v8918_v60 = vld [vmem:[#allocation69_spill] sm:$0xff]  ;;  %v8919_v7 = vld [vmem:[#allocation70_spill] sm:$0xff] }
 0x43c   :  { %2400 = vmatprep.mubr.f32.mxu0 %v8726_v3  ;;  %2471 = vmatprep.mubr.f32.mxu1 %v8726_v3 }
 0x43e   :  { %5477 = vmatpush1.bf16.msra.mxu0 %v8911_v28  ;;  %5509 = vmatpush1.bf16.msra.mxu1 %v8912_v46  ;;  %v8922_v28 = vld [vmem:[#allocation73_spill] sm:$0xff]  ;;  %v8923_v46 = vld [vmem:[#allocation74_spill] sm:$0xff] }
 0x43f   :  { %5479 = vmatprep.subr.bf16.mxu0 %v8913_v19  ;;  %5511 = vmatprep.subr.bf16.mxu1 %v8914_v52  ;;  %v8924_v19 = vld [vmem:[#allocation75_spill] sm:$0xff]  ;;  %v8925_v52 = vld [vmem:[#allocation76_spill] sm:$0xff] }
 0x442   :  { %5481 = vmatpush1.bf16.msra.mxu0 %v8915_v40  ;;  %5513 = vmatpush1.bf16.msra.mxu1 %v8916_v55  ;;  %v8926_v40 = vld [vmem:[#allocation77_spill] sm:$0xff]  ;;  %v8927_v55 = vld [vmem:[#allocation78_spill] sm:$0xff] }
 0x443   :  { %5483 = vmatprep.subr.bf16.mxu0 %v8917_v34  ;;  %5515 = vmatprep.subr.bf16.mxu1 %v8918_v60  ;;  %v8928_v34 = vld [vmem:[#allocation79_spill] sm:$0xff]  ;;  %v8929_v60 = vld [vmem:[#allocation80_spill] sm:$0xff] }
 0x446   :  { %5485 = vmatpush1.bf16.msra.mxu0 %v8919_v7  ;;  %5517 = vmatpush1.bf16.msra.mxu1 %v8920_v63  ;;  %v8930_v7 = vld [vmem:[#allocation81_spill] sm:$0xff]  ;;  %v8931_v63 = vld [vmem:[#allocation82_spill] sm:$0xff] }
 0x447   :  { %5487 = vmatprep.subr.bf16.mxu0 %v8921_v11  ;;  %5519 = vmatprep.subr.bf16.mxu1 %v8922_v28  ;;  %v8932_v11 = vld [vmem:[#allocation83_spill] sm:$0xff]  ;;  %v8933_v28 = vld [vmem:[#allocation84_spill] sm:$0xff] }
 0x44a   :  { %5489 = vmatpush1.bf16.msra.mxu0 %v8923_v46  ;;  %5521 = vmatpush1.bf16.msra.mxu1 %v8924_v19  ;;  %v8934_v46 = vld [vmem:[#allocation85_spill] sm:$0xff]  ;;  %v8935_v19 = vld [vmem:[#allocation86_spill] sm:$0xff] }
 0x44b   :  { %5491 = vmatprep.subr.bf16.mxu0 %v8925_v52  ;;  %5523 = vmatprep.subr.bf16.mxu1 %v8926_v40  ;;  %v8936_v52 = vld [vmem:[#allocation87_spill] sm:$0xff]  ;;  %v8937_v40 = vld [vmem:[#allocation88_spill] sm:$0xff] }
 0x44e   :  { %5493 = vmatpush1.bf16.msra.mxu0 %v8927_v55  ;;  %5525 = vmatpush1.bf16.msra.mxu1 %v8928_v34  ;;  %v8938_v55 = vld [vmem:[#allocation89_spill] sm:$0xff] }
 0x44f   :  { %5495 = vmatprep.subr.bf16.mxu0 %v8929_v60  ;;  %5527 = vmatprep.subr.bf16.mxu1 %v8930_v7 }
 0x452   :  { %5497 = vmatpush1.bf16.msra.mxu0 %v8931_v63  ;;  %5529 = vmatpush1.bf16.msra.mxu1 %v8932_v11 }
 0x453   :  { %5499 = vmatprep.subr.bf16.mxu0 %v8933_v28  ;;  %5531 = vmatprep.subr.bf16.mxu1 %v8934_v46 }
 0x456   :  { %5501 = vmatpush1.bf16.msra.mxu0 %v8935_v19  ;;  %5533 = vmatpush1.bf16.msra.mxu1 %v8936_v52  ;;  %v8940_v52 = vld [vmem:[#allocation151_spill] sm:$0xff] }
 0x457   :  { %5535 = vmatprep.subr.bf16.mxu0 %v8937_v40  ;;  %5567 = vmatprep.subr.bf16.mxu1 %v8938_v55 }
 0x4ec   :  { %v2072_v34 = vpop.f32.mrb[10].mxu0  ;;  %v2143_v60 = vpop.f32.mrb[42].mxu1 }
 0x4ed   :  { %v2148_v7 = vadd.f32 %v2072_v34, %v8939_v33  ;;  %v2074_v25 = vpop.f32.mrb[11].mxu0  ;;  %v2145_v63 = vpop.f32.mrb[43].mxu1  ;;  %v2150_v46 = vadd.f32 %v2143_v60, %v8876_v31 }
 0x4ee   :  { %v2149_v11 = vadd.f32 %v2074_v25, %v8875_v62  ;;  %v2151_v19 = vadd.f32 %v2145_v63, %v8940_v52  ;;  %v8943_v52 = vld [vmem:[#allocation126_spill] sm:$0xff] }
 0x4ef   :  { %v2152_v44 = vmul.f32 0.5, %v2148_v7 }
 0x4f0   :  { %v2156_v28 = vmul.f32 0.5, %v2149_v11  ;;  %v2161_v40 = vmul.f32 0.5, %v2151_v19  ;;  %v8941_v19 = vld [vmem:[#allocation125_spill] sm:$0xff] }
 0x4f1   :  { %6525 = vtanh.f32 %v2152_v44 }
 0x4f2   :  { %6527 = vtanh.f32 %v2156_v28  ;;  %v8942_v28 = vld [vmem:[#allocation139_spill] sm:$0xff] }
 0x4f3   :  { %6529 = vtanh.f32 %v2150_v46 }
 0x4f4   :  { %6531 = vtanh.f32 %v2161_v40 }
 0x4fb   :  { %v6526_v18 = vpop.eup %6525 }
 0x4fc   :  { %v6528_v55 = vpop.eup %6527  ;;  %v2154_v37 = vmul.f32 0.5, %v6526_v18 }
 0x4fd   :  { %v2158_v16 = vmul.f32 0.5, %v6528_v55  ;;  %v6530_v33 = vpop.eup %6529 }
 0x4fe   :  { %v2155_v34 = vadd.f32 0.5, %v2154_v37  ;;  %v6532_v44 = vpop.eup %6531 }
 0x4ff   :  { %v2159_v36 = vadd.f32 0.5, %v2158_v16  ;;  %v2163_v46 = vmul.f32 0.5, %v6532_v44 }
 0x500   :  { %v2166_v8 = vmul.f32 %v6530_v33, %v2155_v34  ;;  %v8944_v33 = vld [vmem:[#allocation140_spill] sm:$0xff] }
 0x501   :  { %v2165_v25 = vmul.f32 %v2159_v36, %v7737_v22  ;;  %v2164_v37 = vadd.f32 0.5, %v2163_v46  ;;  %v8946_v46 = vld [vmem:[#allocation99_spill] sm:$0xff] }
 0x503   :  { %v7859_v7 = vadd.f32 %v2166_v8, %v2165_v25 }
 0x505   :  { %6533 = vtanh.f32 %v7859_v7 }
 0x50c   :  { %v2238_v60 = vpop.f32.mrb[12].mxu0  ;;  %v2309_v11 = vpop.f32.mrb[44].mxu1 }
 0x50d   :  { %v2314_v63 = vadd.f32 %v2238_v60, %v8941_v19  ;;  %v2316_v18 = vadd.f32 %v2309_v11, %v8942_v28  ;;  %v2240_v55 = vpop.f32.mrb[13].mxu0  ;;  %v2311_v40 = vpop.f32.mrb[45].mxu1  ;;  %v8947_v19 = vld [vmem:[#allocation100_spill] sm:$0xff] }
 0x50e   :  { %v2315_v16 = vadd.f32 %v2240_v55, %v8943_v52  ;;  %v2317_v34 = vadd.f32 %v2311_v40, %v8944_v33 }
 0x50f   :  { %v6534_v36 = vpop.eup %6533  ;;  %v2318_v8 = vmul.f32 0.5, %v2314_v63 }
 0x510   :  { %v7866_v22 = vmul.f32 %v6534_v36, %v2164_v37  ;;  %v2322_v25 = vmul.f32 0.5, %v2315_v16  ;;  %v2327_v52 = vmul.f32 0.5, %v2317_v34  ;;  %v8948_v37 = vld [vmem:[#allocation105_spill] sm:$0xff] }
 0x511   :  { %6535 = vtanh.f32 %v2318_v8 }
 0x512   :  { %8945 = vst [vmem:[#allocation136_spill] sm:$0xff] %v7866_v22  ;;  %6537 = vtanh.f32 %v2322_v25  ;;  %2401 = vmatmul.mubr.f32.vlgmr.msra.gmra.mrb[14].mxu0 %v7866_v22  ;;  %2472 = vmatmul.mubr.f32.vlgmr.msra.gmra.mrb[46].mxu1 %v7866_v22  ;;  %v8963_v22 = vld [vmem:[#allocation53_spill] sm:$0xff] }
 0x513   :  { %5537 = vmatpush1.bf16.msra.mxu0 %v8818_v35  ;;  %5569 = vmatpush1.bf16.msra.mxu1 %v8819_v12  ;;  %6539 = vtanh.f32 %v2316_v18 }
 0x514   :  { %5539 = vmatprep.subr.bf16.mxu0 %v8820_v56  ;;  %5571 = vmatprep.subr.bf16.mxu1 %v8821_v41  ;;  %6541 = vtanh.f32 %v2327_v52  ;;  %v8949_v52 = vld [vmem:[#allocation46_spill] sm:$0xff] }
 0x515   :  { %2542 = vmatprep.mubr.f32.mxu0 %v8726_v3  ;;  %2613 = vmatprep.mubr.f32.mxu1 %v8726_v3 }
 0x517   :  { %5541 = vmatpush1.bf16.msra.mxu0 %v8883_v48  ;;  %5573 = vmatpush1.bf16.msra.mxu1 %v8884_v58 }
 0x518   :  { %5543 = vmatprep.subr.bf16.mxu0 %v8885_v54  ;;  %5575 = vmatprep.subr.bf16.mxu1 %v8886_v23 }
 0x51b   :  { %v6536_v44 = vpop.eup %6535  ;;  %5545 = vmatpush1.bf16.msra.mxu0 %v8887_v10  ;;  %5577 = vmatpush1.bf16.msra.mxu1 %v8946_v46 }
 0x51c   :  { %v6538_v60 = vpop.eup %6537  ;;  %v2320_v11 = vmul.f32 0.5, %v6536_v44  ;;  %5547 = vmatprep.subr.bf16.mxu0 %v8947_v19  ;;  %5579 = vmatprep.subr.bf16.mxu1 %v8829_v45  ;;  %v8950_v44 = vld [vmem:[#allocation35_spill] sm:$0xff] }
 0x51d   :  { %v2324_v63 = vmul.f32 0.5, %v6538_v60  ;;  %v6540_v18 = vpop.eup %6539  ;;  %v8951_v60 = vld [vmem:[#allocation47_spill] sm:$0xff] }
 0x51e   :  { %v2321_v28 = vadd.f32 0.5, %v2320_v11  ;;  %v6542_v34 = vpop.eup %6541  ;;  %v8952_v11 = vld [vmem:[#allocation36_spill] sm:$0xff] }
 0x51f   :  { %v2325_v55 = vadd.f32 0.5, %v2324_v63  ;;  %5549 = vmatpush1.bf16.msra.mxu0 %v8830_v32  ;;  %5581 = vmatpush1.bf16.msra.mxu1 %v8831_v47  ;;  %v8953_v63 = vld [vmem:[#allocation48_spill] sm:$0xff] }
 0x520   :  { %v2332_v40 = vmul.f32 %v6540_v18, %v2321_v28  ;;  %5551 = vmatprep.subr.bf16.mxu0 %v8890_v42  ;;  %5583 = vmatprep.subr.bf16.mxu1 %v8948_v37  ;;  %v8954_v28 = vld [vmem:[#allocation37_spill] sm:$0xff] }
 0x521   :  { %v2331_v16 = vmul.f32 %v2325_v55, %v7767_v50  ;;  %v2329_v50 = vmul.f32 0.5, %v6542_v34  ;;  %v8955_v18 = vld [vmem:[#allocation49_spill] sm:$0xff]  ;;  %v8956_v55 = vld [vmem:[#allocation38_spill] sm:$0xff]  ;;  %v8959_v34 = vld [vmem:[#allocation51_spill] sm:$0xff] }
 0x523   :  { %v7889_v33 = vadd.f32 %v2332_v40, %v2331_v16  ;;  %5553 = vmatpush1.bf16.msra.mxu0 %v8893_v49  ;;  %5585 = vmatpush1.bf16.msra.mxu1 %v8894_v39  ;;  %v2330_v36 = vadd.f32 0.5, %v2329_v50  ;;  %v8957_v40 = vld [vmem:[#allocation50_spill] sm:$0xff]  ;;  %v8958_v16 = vld [vmem:[#allocation39_spill] sm:$0xff]  ;;  %v8960_v50 = vld [vmem:[#allocation40_spill] sm:$0xff] }
 0x524   :  { %5555 = vmatprep.subr.bf16.mxu0 %v8895_v57  ;;  %5587 = vmatprep.subr.bf16.mxu1 %v8896_v0 }
 0x525   :  { %6543 = vtanh.f32 %v7889_v33 }
 0x527   :  { %5557 = vmatpush1.bf16.msra.mxu0 %v8897_v30  ;;  %5589 = vmatpush1.bf16.msra.mxu1 %v8898_v13 }
 0x528   :  { %5559 = vmatprep.subr.bf16.mxu0 %v8899_v4  ;;  %5591 = vmatprep.subr.bf16.mxu1 %v8842_v27 }
 0x52b   :  { %5561 = vmatpush1.bf16.msra.mxu0 %v8843_v14  ;;  %5593 = vmatpush1.bf16.msra.mxu1 %v8844_v21 }
 0x52c   :  { %5563 = vmatprep.subr.bf16.mxu0 %v8845_v43  ;;  %5595 = vmatprep.subr.bf16.mxu1 %v8846_v2 }
 0x52f   :  { %v6544_v8 = vpop.eup %6543  ;;  %5565 = vmatpush1.bf16.msra.mxu0 %v8847_v6  ;;  %5597 = vmatpush1.bf16.msra.mxu1 %v8848_v38 }
 0x530   :  { %v2335_v25 = vmul.f32 %v6544_v8, %v2330_v36  ;;  %5599 = vmatprep.subr.bf16.mxu0 %v8849_v20  ;;  %5631 = vmatprep.subr.bf16.mxu1 %v8850_v1  ;;  %v8961_v36 = vld [vmem:[#allocation52_spill] sm:$0xff]  ;;  %v8962_v8 = vld [vmem:[#allocation41_spill] sm:$0xff] }
 0x532   :  { %2543 = vmatmul.mubr.f32.vlgmr.msra.gmra.mrb[14].mxu0 %v2335_v25  ;;  %2614 = vmatmul.mubr.f32.vlgmr.msra.gmra.mrb[46].mxu1 %v2335_v25 }
 0x533   :  { %5601 = vmatpush1.bf16.msra.mxu0 %v7128_v9  ;;  %5633 = vmatpush1.bf16.msra.mxu1 %v7196_v51 }
 0x534   :  { %5603 = vmatprep.subr.bf16.mxu0 %v7132_v15  ;;  %5635 = vmatprep.subr.bf16.mxu1 %v7199_v53 }
 0x535   :  { %2708 = vmatprep.mubr.f32.mxu0 %v8726_v3  ;;  %2779 = vmatprep.mubr.f32.mxu1 %v8726_v3 }
 0x537   :  { %5605 = vmatpush1.bf16.msra.mxu0 %v7134_v17  ;;  %5637 = vmatpush1.bf16.msra.mxu1 %v7203_v59 }
 0x538   :  { %5607 = vmatprep.subr.bf16.mxu0 %v7137_v24  ;;  %5639 = vmatprep.subr.bf16.mxu1 %v7207_v61 }
 0x53b   :  { %5609 = vmatpush1.bf16.msra.mxu0 %v7140_v26  ;;  %5641 = vmatpush1.bf16.msra.mxu1 %v7210_v5 }
 0x53c   :  { %5611 = vmatprep.subr.bf16.mxu0 %v7143_v29  ;;  %5643 = vmatprep.subr.bf16.mxu1 %v8949_v52 }
 0x53f   :  { %5613 = vmatpush1.bf16.msra.mxu0 %v8950_v44  ;;  %5645 = vmatpush1.bf16.msra.mxu1 %v8951_v60 }
 0x540   :  { %5615 = vmatprep.subr.bf16.mxu0 %v8952_v11  ;;  %5647 = vmatprep.subr.bf16.mxu1 %v8953_v63  ;;  %v8964_v63 = vld [vmem:[#allocation42_spill] sm:$0xff] }
 0x543   :  { %5617 = vmatpush1.bf16.msra.mxu0 %v8954_v28  ;;  %5649 = vmatpush1.bf16.msra.mxu1 %v8955_v18  ;;  %v8965_v28 = vld [vmem:[#allocation54_spill] sm:$0xff]  ;;  %v8966_v18 = vld [vmem:[#allocation43_spill] sm:$0xff] }
 0x544   :  { %5619 = vmatprep.subr.bf16.mxu0 %v8956_v55  ;;  %5651 = vmatprep.subr.bf16.mxu1 %v8957_v40  ;;  %v8967_v55 = vld [vmem:[#allocation55_spill] sm:$0xff]  ;;  %v8968_v40 = vld [vmem:[#allocation56_spill] sm:$0xff] }
 0x547   :  { %5621 = vmatpush1.bf16.msra.mxu0 %v8958_v16  ;;  %5653 = vmatpush1.bf16.msra.mxu1 %v8959_v34  ;;  %v8969_v16 = vld [vmem:[#allocation57_spill] sm:$0xff]  ;;  %v9002_v34 = vld [vmem:[#allocation120_spill] sm:$0xff] }
 0x548   :  { %5623 = vmatprep.subr.bf16.mxu0 %v8960_v50  ;;  %5655 = vmatprep.subr.bf16.mxu1 %v8961_v36  ;;  %v8970_v50 = vld [vmem:[#allocation58_spill] sm:$0xff]  ;;  %v8971_v36 = vld [vmem:[#allocation59_spill] sm:$0xff] }
 0x54b   :  { %5625 = vmatpush1.bf16.msra.mxu0 %v8962_v8  ;;  %5657 = vmatpush1.bf16.msra.mxu1 %v8963_v22  ;;  %v8972_v8 = vld [vmem:[#allocation60_spill] sm:$0xff]  ;;  %v8973_v22 = vld [vmem:[#allocation61_spill] sm:$0xff] }
 0x54c   :  { %5627 = vmatprep.subr.bf16.mxu0 %v8964_v63  ;;  %5659 = vmatprep.subr.bf16.mxu1 %v8965_v28  ;;  %v8983_v28 = vld [vmem:[#allocation71_spill] sm:$0xff]  ;;  %v8984_v63 = vld [vmem:[#allocation72_spill] sm:$0xff] }
 0x54f   :  { %5629 = vmatpush1.bf16.msra.mxu0 %v8966_v18  ;;  %5661 = vmatpush1.bf16.msra.mxu1 %v8967_v55  ;;  %v8974_v18 = vld [vmem:[#allocation62_spill] sm:$0xff]  ;;  %v8975_v55 = vld [vmem:[#allocation63_spill] sm:$0xff] }
 0x550   :  { %5663 = vmatprep.subr.bf16.mxu0 %v8968_v40  ;;  %5695 = vmatprep.subr.bf16.mxu1 %v8969_v16  ;;  %v8976_v40 = vld [vmem:[#allocation64_spill] sm:$0xff]  ;;  %v8977_v16 = vld [vmem:[#allocation65_spill] sm:$0xff] }
 0x552   :  { %2709 = vmatmul.mubr.f32.vlgmr.msra.gmra.mrb[16].mxu0 %v2335_v25  ;;  %2780 = vmatmul.mubr.f32.vlgmr.msra.gmra.mrb[48].mxu1 %v2335_v25  ;;  %v8978_v25 = vld [vmem:[#allocation66_spill] sm:$0xff] }
 0x553   :  { %5665 = vmatpush1.bf16.msra.mxu0 %v8970_v50  ;;  %5697 = vmatpush1.bf16.msra.mxu1 %v8971_v36  ;;  %v8979_v50 = vld [vmem:[#allocation67_spill] sm:$0xff]  ;;  %v8980_v36 = vld [vmem:[#allocation68_spill] sm:$0xff] }
 0x554   :  { %5667 = vmatprep.subr.bf16.mxu0 %v8972_v8  ;;  %5699 = vmatprep.subr.bf16.mxu1 %v8973_v22  ;;  %v8981_v8 = vld [vmem:[#allocation69_spill] sm:$0xff]  ;;  %v8982_v22 = vld [vmem:[#allocation70_spill] sm:$0xff] }
 0x555   :  { %2872 = vmatprep.mubr.f32.mxu0 %v8726_v3  ;;  %2943 = vmatprep.mubr.f32.mxu1 %v8726_v3 }
 0x557   :  { %5669 = vmatpush1.bf16.msra.mxu0 %v8974_v18  ;;  %5701 = vmatpush1.bf16.msra.mxu1 %v8975_v55  ;;  %v8985_v18 = vld [vmem:[#allocation73_spill] sm:$0xff]  ;;  %v8986_v55 = vld [vmem:[#allocation74_spill] sm:$0xff] }
 0x558   :  { %5671 = vmatprep.subr.bf16.mxu0 %v8976_v40  ;;  %5703 = vmatprep.subr.bf16.mxu1 %v8977_v16  ;;  %v8987_v40 = vld [vmem:[#allocation75_spill] sm:$0xff]  ;;  %v8988_v16 = vld [vmem:[#allocation76_spill] sm:$0xff] }
 0x55b   :  { %5673 = vmatpush1.bf16.msra.mxu0 %v8978_v25  ;;  %5705 = vmatpush1.bf16.msra.mxu1 %v8979_v50  ;;  %v8989_v25 = vld [vmem:[#allocation77_spill] sm:$0xff]  ;;  %v8990_v50 = vld [vmem:[#allocation78_spill] sm:$0xff] }
 0x55c   :  { %5675 = vmatprep.subr.bf16.mxu0 %v8980_v36  ;;  %5707 = vmatprep.subr.bf16.mxu1 %v8981_v8  ;;  %v8991_v36 = vld [vmem:[#allocation79_spill] sm:$0xff]  ;;  %v8992_v8 = vld [vmem:[#allocation80_spill] sm:$0xff] }
 0x55f   :  { %5677 = vmatpush1.bf16.msra.mxu0 %v8982_v22  ;;  %5709 = vmatpush1.bf16.msra.mxu1 %v8983_v28  ;;  %v8993_v22 = vld [vmem:[#allocation81_spill] sm:$0xff]  ;;  %v8994_v28 = vld [vmem:[#allocation82_spill] sm:$0xff] }
 0x560   :  { %5679 = vmatprep.subr.bf16.mxu0 %v8984_v63  ;;  %5711 = vmatprep.subr.bf16.mxu1 %v8985_v18  ;;  %v8995_v63 = vld [vmem:[#allocation83_spill] sm:$0xff]  ;;  %v8996_v18 = vld [vmem:[#allocation84_spill] sm:$0xff] }
 0x563   :  { %5681 = vmatpush1.bf16.msra.mxu0 %v8986_v55  ;;  %5713 = vmatpush1.bf16.msra.mxu1 %v8987_v40  ;;  %v8997_v55 = vld [vmem:[#allocation85_spill] sm:$0xff]  ;;  %v8998_v40 = vld [vmem:[#allocation86_spill] sm:$0xff] }
 0x564   :  { %5683 = vmatprep.subr.bf16.mxu0 %v8988_v16  ;;  %5715 = vmatprep.subr.bf16.mxu1 %v8989_v25  ;;  %v8999_v16 = vld [vmem:[#allocation87_spill] sm:$0xff]  ;;  %v9000_v25 = vld [vmem:[#allocation88_spill] sm:$0xff] }
 0x567   :  { %5685 = vmatpush1.bf16.msra.mxu0 %v8990_v50  ;;  %5717 = vmatpush1.bf16.msra.mxu1 %v8991_v36  ;;  %v9001_v50 = vld [vmem:[#allocation89_spill] sm:$0xff] }
 0x568   :  { %5687 = vmatprep.subr.bf16.mxu0 %v8992_v8  ;;  %5719 = vmatprep.subr.bf16.mxu1 %v8993_v22 }
 0x56b   :  { %5689 = vmatpush1.bf16.msra.mxu0 %v8994_v28  ;;  %5721 = vmatpush1.bf16.msra.mxu1 %v8995_v63 }
 0x56c   :  { %5691 = vmatprep.subr.bf16.mxu0 %v8996_v18  ;;  %5723 = vmatprep.subr.bf16.mxu1 %v8997_v55 }
 0x56f   :  { %5693 = vmatpush1.bf16.msra.mxu0 %v8998_v40  ;;  %5725 = vmatpush1.bf16.msra.mxu1 %v8999_v16  ;;  %v9003_v16 = vld [vmem:[#allocation151_spill] sm:$0xff] }
 0x570   :  { %5727 = vmatprep.subr.bf16.mxu0 %v9000_v25  ;;  %5759 = vmatprep.subr.bf16.mxu1 %v9001_v50 }
 0x605   :  { %v2544_v36 = vpop.f32.mrb[14].mxu0  ;;  %v2615_v8 = vpop.f32.mrb[46].mxu1 }
 0x606   :  { %v2620_v22 = vadd.f32 %v2544_v36, %v9002_v34  ;;  %v2546_v11 = vpop.f32.mrb[15].mxu0  ;;  %v2617_v28 = vpop.f32.mrb[47].mxu1  ;;  %v2622_v55 = vadd.f32 %v2615_v8, %v8876_v31  ;;  %v9005_v8 = vld [vmem:[#allocation141_spill] sm:$0xff] }
 0x607   :  { %v2621_v63 = vadd.f32 %v2546_v11, %v8875_v62  ;;  %v2623_v40 = vadd.f32 %v2617_v28, %v9003_v16  ;;  %v9006_v16 = vld [vmem:[#allocation128_spill] sm:$0xff] }
 0x608   :  { %v2624_v60 = vmul.f32 0.5, %v2620_v22 }
 0x609   :  { %v2628_v18 = vmul.f32 0.5, %v2621_v63  ;;  %v2633_v25 = vmul.f32 0.5, %v2623_v40 }
 0x60a   :  { %6545 = vtanh.f32 %v2624_v60 }
 0x60b   :  { %6547 = vtanh.f32 %v2628_v18 }
 0x60c   :  { %6549 = vtanh.f32 %v2622_v55  ;;  %v9004_v55 = vld [vmem:[#allocation127_spill] sm:$0xff] }
 0x60d   :  { %6551 = vtanh.f32 %v2633_v25 }
 0x614   :  { %v6546_v44 = vpop.eup %6545 }
 0x615   :  { %v6548_v50 = vpop.eup %6547  ;;  %v2626_v52 = vmul.f32 0.5, %v6546_v44 }
 0x616   :  { %v2630_v29 = vmul.f32 0.5, %v6548_v50  ;;  %v6550_v34 = vpop.eup %6549 }
 0x617   :  { %v2627_v36 = vadd.f32 0.5, %v2626_v52  ;;  %v6552_v60 = vpop.eup %6551 }
 0x618   :  { %v2631_v5 = vadd.f32 0.5, %v2630_v29  ;;  %v2635_v63 = vmul.f32 0.5, %v6552_v60 }
 0x619   :  { %v2638_v26 = vmul.f32 %v6550_v34, %v2627_v36  ;;  %v9007_v34 = vld [vmem:[#allocation142_spill] sm:$0xff] }
 0x61a   :  { %v2637_v22 = vmul.f32 %v2631_v5, %v7859_v7  ;;  %v2636_v52 = vadd.f32 0.5, %v2635_v63 }
 0x61c   :  { %v7981_v11 = vadd.f32 %v2638_v26, %v2637_v22 }
 0x61e   :  { %6553 = vtanh.f32 %v7981_v11 }
 0x625   :  { %v2710_v18 = vpop.f32.mrb[16].mxu0  ;;  %v2781_v28 = vpop.f32.mrb[48].mxu1 }
 0x626   :  { %v2786_v40 = vadd.f32 %v2710_v18, %v9004_v55  ;;  %v2788_v44 = vadd.f32 %v2781_v28, %v9005_v8  ;;  %v2712_v50 = vpop.f32.mrb[17].mxu0  ;;  %v2783_v25 = vpop.f32.mrb[49].mxu1 }
 0x627   :  { %v2787_v29 = vadd.f32 %v2712_v50, %v9006_v16  ;;  %v2789_v36 = vadd.f32 %v2783_v25, %v9007_v34 }
 0x628   :  { %v6554_v5 = vpop.eup %6553  ;;  %v2790_v26 = vmul.f32 0.5, %v2786_v40 }
 0x629   :  { %v7988_v7 = vmul.f32 %v6554_v5, %v2636_v52  ;;  %v2794_v22 = vmul.f32 0.5, %v2787_v29  ;;  %v2799_v16 = vmul.f32 0.5, %v2789_v36  ;;  %v9009_v5 = vld [vmem:[#allocation33_spill] sm:$0xff] }
 0x62a   :  { %6555 = vtanh.f32 %v2790_v26  ;;  %v9010_v26 = vld [vmem:[#allocation45_spill] sm:$0xff] }
 0x62b   :  { %9008 = vst [vmem:[#allocation90_spill] sm:$0xff] %v7988_v7  ;;  %6557 = vtanh.f32 %v2794_v22  ;;  %2873 = vmatmul.mubr.f32.vlgmr.msra.gmra.mrb[18].mxu0 %v7988_v7  ;;  %2944 = vmatmul.mubr.f32.vlgmr.msra.gmra.mrb[50].mxu1 %v7988_v7  ;;  %v9011_v22 = vld [vmem:[#allocation34_spill] sm:$0xff]  ;;  %v9026_v7 = vld [vmem:[#allocation53_spill] sm:$0xff] }
 0x62c   :  { %5729 = vmatpush1.bf16.msra.mxu0 %v8818_v35  ;;  %5761 = vmatpush1.bf16.msra.mxu1 %v8819_v12  ;;  %6559 = vtanh.f32 %v2788_v44 }
 0x62d   :  { %5731 = vmatprep.subr.bf16.mxu0 %v8820_v56  ;;  %5763 = vmatprep.subr.bf16.mxu1 %v8821_v41  ;;  %6561 = vtanh.f32 %v2799_v16  ;;  %v9012_v16 = vld [vmem:[#allocation46_spill] sm:$0xff] }
 0x62e   :  { %3014 = vmatprep.mubr.f32.mxu0 %v8726_v3  ;;  %3085 = vmatprep.mubr.f32.mxu1 %v8726_v3 }
 0x630   :  { %5733 = vmatpush1.bf16.msra.mxu0 %v8883_v48  ;;  %5765 = vmatpush1.bf16.msra.mxu1 %v8884_v58 }
 0x631   :  { %5735 = vmatprep.subr.bf16.mxu0 %v8885_v54  ;;  %5767 = vmatprep.subr.bf16.mxu1 %v8886_v23 }
 0x634   :  { %v6556_v60 = vpop.eup %6555  ;;  %5737 = vmatpush1.bf16.msra.mxu0 %v8887_v10  ;;  %5769 = vmatpush1.bf16.msra.mxu1 %v8946_v46 }
 0x635   :  { %v6558_v63 = vpop.eup %6557  ;;  %v2792_v18 = vmul.f32 0.5, %v6556_v60  ;;  %5739 = vmatprep.subr.bf16.mxu0 %v8947_v19  ;;  %5771 = vmatprep.subr.bf16.mxu1 %v8829_v45  ;;  %v9013_v60 = vld [vmem:[#allocation35_spill] sm:$0xff] }
 0x636   :  { %v2796_v28 = vmul.f32 0.5, %v6558_v63  ;;  %v6560_v40 = vpop.eup %6559  ;;  %v9014_v63 = vld [vmem:[#allocation47_spill] sm:$0xff] }
 0x637   :  { %v2793_v55 = vadd.f32 0.5, %v2792_v18  ;;  %v6562_v52 = vpop.eup %6561  ;;  %v9015_v18 = vld [vmem:[#allocation36_spill] sm:$0xff] }
 0x638   :  { %v2797_v8 = vadd.f32 0.5, %v2796_v28  ;;  %5741 = vmatpush1.bf16.msra.mxu0 %v8830_v32  ;;  %5773 = vmatpush1.bf16.msra.mxu1 %v8831_v47  ;;  %v9016_v28 = vld [vmem:[#allocation48_spill] sm:$0xff] }
 0x639   :  { %v2804_v44 = vmul.f32 %v6560_v40, %v2793_v55  ;;  %5743 = vmatprep.subr.bf16.mxu0 %v8890_v42  ;;  %5775 = vmatprep.subr.bf16.mxu1 %v8948_v37  ;;  %v9017_v55 = vld [vmem:[#allocation37_spill] sm:$0xff] }
 0x63a   :  { %v2803_v50 = vmul.f32 %v2797_v8, %v7889_v33  ;;  %v2801_v33 = vmul.f32 0.5, %v6562_v52  ;;  %v9018_v40 = vld [vmem:[#allocation49_spill] sm:$0xff]  ;;  %v9019_v8 = vld [vmem:[#allocation38_spill] sm:$0xff]  ;;  %v9022_v52 = vld [vmem:[#allocation51_spill] sm:$0xff] }
 0x63c   :  { %v8011_v25 = vadd.f32 %v2804_v44, %v2803_v50  ;;  %5745 = vmatpush1.bf16.msra.mxu0 %v8893_v49  ;;  %5777 = vmatpush1.bf16.msra.mxu1 %v8894_v39  ;;  %v2802_v29 = vadd.f32 0.5, %v2801_v33  ;;  %v9020_v44 = vld [vmem:[#allocation50_spill] sm:$0xff]  ;;  %v9021_v50 = vld [vmem:[#allocation39_spill] sm:$0xff]  ;;  %v9023_v33 = vld [vmem:[#allocation40_spill] sm:$0xff] }
 0x63d   :  { %5747 = vmatprep.subr.bf16.mxu0 %v8895_v57  ;;  %5779 = vmatprep.subr.bf16.mxu1 %v8896_v0 }
 0x63e   :  { %6563 = vtanh.f32 %v8011_v25 }
 0x640   :  { %5749 = vmatpush1.bf16.msra.mxu0 %v8897_v30  ;;  %5781 = vmatpush1.bf16.msra.mxu1 %v8898_v13 }
 0x641   :  { %5751 = vmatprep.subr.bf16.mxu0 %v8899_v4  ;;  %5783 = vmatprep.subr.bf16.mxu1 %v8842_v27 }
 0x644   :  { %5753 = vmatpush1.bf16.msra.mxu0 %v8843_v14  ;;  %5785 = vmatpush1.bf16.msra.mxu1 %v8844_v21 }
 0x645   :  { %5755 = vmatprep.subr.bf16.mxu0 %v8845_v43  ;;  %5787 = vmatprep.subr.bf16.mxu1 %v8846_v2 }
 0x648   :  { %v6564_v34 = vpop.eup %6563  ;;  %5757 = vmatpush1.bf16.msra.mxu0 %v8847_v6  ;;  %5789 = vmatpush1.bf16.msra.mxu1 %v8848_v38 }
 0x649   :  { %v2807_v36 = vmul.f32 %v6564_v34, %v2802_v29  ;;  %5791 = vmatprep.subr.bf16.mxu0 %v8849_v20  ;;  %5823 = vmatprep.subr.bf16.mxu1 %v8850_v1  ;;  %v9024_v29 = vld [vmem:[#allocation52_spill] sm:$0xff]  ;;  %v9025_v34 = vld [vmem:[#allocation41_spill] sm:$0xff] }
 0x64b   :  { %3015 = vmatmul.mubr.f32.vlgmr.msra.gmra.mrb[18].mxu0 %v2807_v36  ;;  %3086 = vmatmul.mubr.f32.vlgmr.msra.gmra.mrb[50].mxu1 %v2807_v36 }
 0x64c   :  { %5793 = vmatpush1.bf16.msra.mxu0 %v7128_v9  ;;  %5825 = vmatpush1.bf16.msra.mxu1 %v7196_v51 }
 0x64d   :  { %5795 = vmatprep.subr.bf16.mxu0 %v7132_v15  ;;  %5827 = vmatprep.subr.bf16.mxu1 %v7199_v53 }
 0x64e   :  { %3180 = vmatprep.mubr.f32.mxu0 %v8726_v3  ;;  %3251 = vmatprep.mubr.f32.mxu1 %v8726_v3 }
 0x650   :  { %5797 = vmatpush1.bf16.msra.mxu0 %v7134_v17  ;;  %5829 = vmatpush1.bf16.msra.mxu1 %v7203_v59 }
 0x651   :  { %5799 = vmatprep.subr.bf16.mxu0 %v7137_v24  ;;  %5831 = vmatprep.subr.bf16.mxu1 %v7207_v61 }
 0x654   :  { %5801 = vmatpush1.bf16.msra.mxu0 %v9009_v5  ;;  %5833 = vmatpush1.bf16.msra.mxu1 %v9010_v26 }
 0x655   :  { %5803 = vmatprep.subr.bf16.mxu0 %v9011_v22  ;;  %5835 = vmatprep.subr.bf16.mxu1 %v9012_v16 }
 0x658   :  { %5805 = vmatpush1.bf16.msra.mxu0 %v9013_v60  ;;  %5837 = vmatpush1.bf16.msra.mxu1 %v9014_v63 }
 0x659   :  { %5807 = vmatprep.subr.bf16.mxu0 %v9015_v18  ;;  %5839 = vmatprep.subr.bf16.mxu1 %v9016_v28  ;;  %v9027_v28 = vld [vmem:[#allocation42_spill] sm:$0xff] }
 0x65c   :  { %5809 = vmatpush1.bf16.msra.mxu0 %v9017_v55  ;;  %5841 = vmatpush1.bf16.msra.mxu1 %v9018_v40  ;;  %v9028_v55 = vld [vmem:[#allocation54_spill] sm:$0xff]  ;;  %v9029_v40 = vld [vmem:[#allocation43_spill] sm:$0xff] }
 0x65d   :  { %5811 = vmatprep.subr.bf16.mxu0 %v9019_v8  ;;  %5843 = vmatprep.subr.bf16.mxu1 %v9020_v44  ;;  %v9030_v8 = vld [vmem:[#allocation55_spill] sm:$0xff]  ;;  %v9031_v44 = vld [vmem:[#allocation56_spill] sm:$0xff] }
 0x660   :  { %5813 = vmatpush1.bf16.msra.mxu0 %v9021_v50  ;;  %5845 = vmatpush1.bf16.msra.mxu1 %v9022_v52  ;;  %v9032_v50 = vld [vmem:[#allocation57_spill] sm:$0xff]  ;;  %v9065_v52 = vld [vmem:[#allocation120_spill] sm:$0xff] }
 0x661   :  { %5815 = vmatprep.subr.bf16.mxu0 %v9023_v33  ;;  %5847 = vmatprep.subr.bf16.mxu1 %v9024_v29  ;;  %v9033_v33 = vld [vmem:[#allocation58_spill] sm:$0xff]  ;;  %v9034_v29 = vld [vmem:[#allocation59_spill] sm:$0xff] }
 0x664   :  { %5817 = vmatpush1.bf16.msra.mxu0 %v9025_v34  ;;  %5849 = vmatpush1.bf16.msra.mxu1 %v9026_v7  ;;  %v9035_v34 = vld [vmem:[#allocation60_spill] sm:$0xff]  ;;  %v9036_v7 = vld [vmem:[#allocation61_spill] sm:$0xff] }
 0x665   :  { %5819 = vmatprep.subr.bf16.mxu0 %v9027_v28  ;;  %5851 = vmatprep.subr.bf16.mxu1 %v9028_v55  ;;  %v9046_v55 = vld [vmem:[#allocation71_spill] sm:$0xff]  ;;  %v9047_v28 = vld [vmem:[#allocation72_spill] sm:$0xff] }
 0x668   :  { %5821 = vmatpush1.bf16.msra.mxu0 %v9029_v40  ;;  %5853 = vmatpush1.bf16.msra.mxu1 %v9030_v8  ;;  %v9037_v40 = vld [vmem:[#allocation62_spill] sm:$0xff]  ;;  %v9038_v8 = vld [vmem:[#allocation63_spill] sm:$0xff] }
 0x669   :  { %5855 = vmatprep.subr.bf16.mxu0 %v9031_v44  ;;  %5887 = vmatprep.subr.bf16.mxu1 %v9032_v50  ;;  %v9039_v44 = vld [vmem:[#allocation64_spill] sm:$0xff]  ;;  %v9040_v50 = vld [vmem:[#allocation65_spill] sm:$0xff] }
 0x66b   :  { %3181 = vmatmul.mubr.f32.vlgmr.msra.gmra.mrb[20].mxu0 %v2807_v36  ;;  %3252 = vmatmul.mubr.f32.vlgmr.msra.gmra.mrb[52].mxu1 %v2807_v36  ;;  %v9041_v36 = vld [vmem:[#allocation66_spill] sm:$0xff] }
 0x66c   :  { %5857 = vmatpush1.bf16.msra.mxu0 %v9033_v33  ;;  %5889 = vmatpush1.bf16.msra.mxu1 %v9034_v29  ;;  %v9042_v33 = vld [vmem:[#allocation67_spill] sm:$0xff]  ;;  %v9043_v29 = vld [vmem:[#allocation68_spill] sm:$0xff] }
 0x66d   :  { %5859 = vmatprep.subr.bf16.mxu0 %v9035_v34  ;;  %5891 = vmatprep.subr.bf16.mxu1 %v9036_v7  ;;  %v9044_v34 = vld [vmem:[#allocation69_spill] sm:$0xff]  ;;  %v9045_v7 = vld [vmem:[#allocation70_spill] sm:$0xff] }
 0x66e   :  { %3344 = vmatprep.mubr.f32.mxu0 %v8726_v3  ;;  %3415 = vmatprep.mubr.f32.mxu1 %v8726_v3 }
 0x670   :  { %5861 = vmatpush1.bf16.msra.mxu0 %v9037_v40  ;;  %5893 = vmatpush1.bf16.msra.mxu1 %v9038_v8  ;;  %v9048_v40 = vld [vmem:[#allocation73_spill] sm:$0xff]  ;;  %v9049_v8 = vld [vmem:[#allocation74_spill] sm:$0xff] }
 0x671   :  { %5863 = vmatprep.subr.bf16.mxu0 %v9039_v44  ;;  %5895 = vmatprep.subr.bf16.mxu1 %v9040_v50  ;;  %v9050_v44 = vld [vmem:[#allocation75_spill] sm:$0xff]  ;;  %v9051_v50 = vld [vmem:[#allocation76_spill] sm:$0xff] }
 0x674   :  { %5865 = vmatpush1.bf16.msra.mxu0 %v9041_v36  ;;  %5897 = vmatpush1.bf16.msra.mxu1 %v9042_v33  ;;  %v9052_v36 = vld [vmem:[#allocation77_spill] sm:$0xff]  ;;  %v9053_v33 = vld [vmem:[#allocation78_spill] sm:$0xff] }
 0x675   :  { %5867 = vmatprep.subr.bf16.mxu0 %v9043_v29  ;;  %5899 = vmatprep.subr.bf16.mxu1 %v9044_v34  ;;  %v9054_v29 = vld [vmem:[#allocation79_spill] sm:$0xff]  ;;  %v9055_v34 = vld [vmem:[#allocation80_spill] sm:$0xff] }
 0x678   :  { %5869 = vmatpush1.bf16.msra.mxu0 %v9045_v7  ;;  %5901 = vmatpush1.bf16.msra.mxu1 %v9046_v55  ;;  %v9056_v7 = vld [vmem:[#allocation81_spill] sm:$0xff]  ;;  %v9057_v55 = vld [vmem:[#allocation82_spill] sm:$0xff] }
 0x679   :  { %5871 = vmatprep.subr.bf16.mxu0 %v9047_v28  ;;  %5903 = vmatprep.subr.bf16.mxu1 %v9048_v40  ;;  %v9058_v28 = vld [vmem:[#allocation83_spill] sm:$0xff]  ;;  %v9059_v40 = vld [vmem:[#allocation84_spill] sm:$0xff] }
 0x67c   :  { %5873 = vmatpush1.bf16.msra.mxu0 %v9049_v8  ;;  %5905 = vmatpush1.bf16.msra.mxu1 %v9050_v44  ;;  %v9060_v8 = vld [vmem:[#allocation85_spill] sm:$0xff]  ;;  %v9061_v44 = vld [vmem:[#allocation86_spill] sm:$0xff] }
 0x67d   :  { %5875 = vmatprep.subr.bf16.mxu0 %v9051_v50  ;;  %5907 = vmatprep.subr.bf16.mxu1 %v9052_v36  ;;  %v9062_v50 = vld [vmem:[#allocation87_spill] sm:$0xff]  ;;  %v9063_v36 = vld [vmem:[#allocation88_spill] sm:$0xff] }
 0x680   :  { %5877 = vmatpush1.bf16.msra.mxu0 %v9053_v33  ;;  %5909 = vmatpush1.bf16.msra.mxu1 %v9054_v29  ;;  %v9064_v33 = vld [vmem:[#allocation89_spill] sm:$0xff] }
 0x681   :  { %5879 = vmatprep.subr.bf16.mxu0 %v9055_v34  ;;  %5911 = vmatprep.subr.bf16.mxu1 %v9056_v7 }
 0x684   :  { %5881 = vmatpush1.bf16.msra.mxu0 %v9057_v55  ;;  %5913 = vmatpush1.bf16.msra.mxu1 %v9058_v28 }
 0x685   :  { %5883 = vmatprep.subr.bf16.mxu0 %v9059_v40  ;;  %5915 = vmatprep.subr.bf16.mxu1 %v9060_v8 }
 0x688   :  { %5885 = vmatpush1.bf16.msra.mxu0 %v9061_v44  ;;  %5917 = vmatpush1.bf16.msra.mxu1 %v9062_v50  ;;  %v9066_v50 = vld [vmem:[#allocation151_spill] sm:$0xff] }
 0x689   :  { %5919 = vmatprep.subr.bf16.mxu0 %v9063_v36  ;;  %5951 = vmatprep.subr.bf16.mxu1 %v9064_v33 }
 0x71e   :  { %v3016_v29 = vpop.f32.mrb[18].mxu0  ;;  %v3087_v34 = vpop.f32.mrb[50].mxu1 }
 0x71f   :  { %v3092_v7 = vadd.f32 %v3016_v29, %v9065_v52  ;;  %v3018_v18 = vpop.f32.mrb[19].mxu0  ;;  %v3089_v55 = vpop.f32.mrb[51].mxu1  ;;  %v3094_v8 = vadd.f32 %v3087_v34, %v8876_v31  ;;  %v9068_v34 = vld [vmem:[#allocation143_spill] sm:$0xff] }
 0x720   :  { %v3093_v28 = vadd.f32 %v3018_v18, %v8875_v62  ;;  %v3095_v44 = vadd.f32 %v3089_v55, %v9066_v50  ;;  %v9069_v50 = vld [vmem:[#allocation130_spill] sm:$0xff] }
 0x721   :  { %v3096_v63 = vmul.f32 0.5, %v3092_v7 }
 0x722   :  { %v3100_v40 = vmul.f32 0.5, %v3093_v28  ;;  %v3105_v36 = vmul.f32 0.5, %v3095_v44 }
 0x723   :  { %6565 = vtanh.f32 %v3096_v63 }
 0x724   :  { %6567 = vtanh.f32 %v3100_v40 }
 0x725   :  { %6569 = vtanh.f32 %v3094_v8  ;;  %v9067_v8 = vld [vmem:[#allocation129_spill] sm:$0xff] }
 0x726   :  { %6571 = vtanh.f32 %v3105_v36 }
 0x72d   :  { %v6566_v60 = vpop.eup %6565 }
 0x72e   :  { %v6568_v33 = vpop.eup %6567  ;;  %v3098_v16 = vmul.f32 0.5, %v6566_v60 }
 0x72f   :  { %v3102_v22 = vmul.f32 0.5, %v6568_v33  ;;  %v6570_v52 = vpop.eup %6569 }
 0x730   :  { %v3099_v29 = vadd.f32 0.5, %v3098_v16  ;;  %v6572_v63 = vpop.eup %6571 }
 0x731   :  { %v3103_v26 = vadd.f32 0.5, %v3102_v22  ;;  %v3107_v28 = vmul.f32 0.5, %v6572_v63 }
 0x732   :  { %v3110_v5 = vmul.f32 %v6570_v52, %v3099_v29  ;;  %v9070_v52 = vld [vmem:[#allocation144_spill] sm:$0xff] }
 0x733   :  { %v3109_v7 = vmul.f32 %v3103_v26, %v7981_v11  ;;  %v3108_v16 = vadd.f32 0.5, %v3107_v28 }
 0x735   :  { %v8103_v18 = vadd.f32 %v3110_v5, %v3109_v7 }
 0x737   :  { %6573 = vtanh.f32 %v8103_v18 }
 0x73e   :  { %v3182_v40 = vpop.f32.mrb[20].mxu0  ;;  %v3253_v55 = vpop.f32.mrb[52].mxu1 }
 0x73f   :  { %v3258_v44 = vadd.f32 %v3182_v40, %v9067_v8  ;;  %v3260_v60 = vadd.f32 %v3253_v55, %v9068_v34  ;;  %v3184_v33 = vpop.f32.mrb[21].mxu0  ;;  %v3255_v36 = vpop.f32.mrb[53].mxu1 }
 0x740   :  { %v3259_v22 = vadd.f32 %v3184_v33, %v9069_v50  ;;  %v3261_v29 = vadd.f32 %v3255_v36, %v9070_v52 }
 0x741   :  { %v6574_v11 = vpop.eup %6573  ;;  %v3262_v5 = vmul.f32 0.5, %v3258_v44 }
 0x742   :  { %v8110_v26 = vmul.f32 %v6574_v11, %v3108_v16  ;;  %v3266_v7 = vmul.f32 0.5, %v3259_v22  ;;  %v3271_v50 = vmul.f32 0.5, %v3261_v29  ;;  %v9072_v11 = vld [vmem:[#allocation33_spill] sm:$0xff] }
 0x743   :  { %6575 = vtanh.f32 %v3262_v5  ;;  %v9073_v5 = vld [vmem:[#allocation45_spill] sm:$0xff] }
 0x744   :  { %9071 = vst [vmem:[#allocation91_spill] sm:$0xff] %v8110_v26  ;;  %6577 = vtanh.f32 %v3266_v7  ;;  %3345 = vmatmul.mubr.f32.vlgmr.msra.gmra.mrb[22].mxu0 %v8110_v26  ;;  %3416 = vmatmul.mubr.f32.vlgmr.msra.gmra.mrb[54].mxu1 %v8110_v26  ;;  %v9074_v7 = vld [vmem:[#allocation34_spill] sm:$0xff]  ;;  %v9089_v26 = vld [vmem:[#allocation53_spill] sm:$0xff] }
 0x745   :  { %5921 = vmatpush1.bf16.msra.mxu0 %v8818_v35  ;;  %5953 = vmatpush1.bf16.msra.mxu1 %v8819_v12  ;;  %6579 = vtanh.f32 %v3260_v60 }
 0x746   :  { %5923 = vmatprep.subr.bf16.mxu0 %v8820_v56  ;;  %5955 = vmatprep.subr.bf16.mxu1 %v8821_v41  ;;  %6581 = vtanh.f32 %v3271_v50  ;;  %v9075_v50 = vld [vmem:[#allocation46_spill] sm:$0xff] }
 0x747   :  { %3486 = vmatprep.mubr.f32.mxu0 %v8726_v3  ;;  %3557 = vmatprep.mubr.f32.mxu1 %v8726_v3 }
 0x749   :  { %5925 = vmatpush1.bf16.msra.mxu0 %v8883_v48  ;;  %5957 = vmatpush1.bf16.msra.mxu1 %v8884_v58 }
 0x74a   :  { %5927 = vmatprep.subr.bf16.mxu0 %v8885_v54  ;;  %5959 = vmatprep.subr.bf16.mxu1 %v8886_v23 }
 0x74d   :  { %v6576_v63 = vpop.eup %6575  ;;  %5929 = vmatpush1.bf16.msra.mxu0 %v8887_v10  ;;  %5961 = vmatpush1.bf16.msra.mxu1 %v8946_v46 }
 0x74e   :  { %v6578_v28 = vpop.eup %6577  ;;  %v3264_v40 = vmul.f32 0.5, %v6576_v63  ;;  %5931 = vmatprep.subr.bf16.mxu0 %v8947_v19  ;;  %5963 = vmatprep.subr.bf16.mxu1 %v8829_v45  ;;  %v9076_v63 = vld [vmem:[#allocation35_spill] sm:$0xff] }
 0x74f   :  { %v3268_v55 = vmul.f32 0.5, %v6578_v28  ;;  %v6580_v44 = vpop.eup %6579  ;;  %v9077_v28 = vld [vmem:[#allocation47_spill] sm:$0xff] }
 0x750   :  { %v3265_v8 = vadd.f32 0.5, %v3264_v40  ;;  %v6582_v16 = vpop.eup %6581  ;;  %v9078_v40 = vld [vmem:[#allocation36_spill] sm:$0xff] }
 0x751   :  { %v3269_v34 = vadd.f32 0.5, %v3268_v55  ;;  %5933 = vmatpush1.bf16.msra.mxu0 %v8830_v32  ;;  %5965 = vmatpush1.bf16.msra.mxu1 %v8831_v47  ;;  %v9079_v55 = vld [vmem:[#allocation48_spill] sm:$0xff] }
 0x752   :  { %v3276_v60 = vmul.f32 %v6580_v44, %v3265_v8  ;;  %5935 = vmatprep.subr.bf16.mxu0 %v8890_v42  ;;  %5967 = vmatprep.subr.bf16.mxu1 %v8948_v37  ;;  %v9080_v8 = vld [vmem:[#allocation37_spill] sm:$0xff] }
 0x753   :  { %v3275_v33 = vmul.f32 %v3269_v34, %v8011_v25  ;;  %v3273_v25 = vmul.f32 0.5, %v6582_v16  ;;  %v9081_v44 = vld [vmem:[#allocation49_spill] sm:$0xff]  ;;  %v9082_v34 = vld [vmem:[#allocation38_spill] sm:$0xff]  ;;  %v9085_v16 = vld [vmem:[#allocation51_spill] sm:$0xff] }
 0x755   :  { %v8133_v36 = vadd.f32 %v3276_v60, %v3275_v33  ;;  %5937 = vmatpush1.bf16.msra.mxu0 %v8893_v49  ;;  %5969 = vmatpush1.bf16.msra.mxu1 %v8894_v39  ;;  %v3274_v22 = vadd.f32 0.5, %v3273_v25  ;;  %v9083_v60 = vld [vmem:[#allocation50_spill] sm:$0xff]  ;;  %v9084_v33 = vld [vmem:[#allocation39_spill] sm:$0xff]  ;;  %v9086_v25 = vld [vmem:[#allocation40_spill] sm:$0xff] }
 0x756   :  { %5939 = vmatprep.subr.bf16.mxu0 %v8895_v57  ;;  %5971 = vmatprep.subr.bf16.mxu1 %v8896_v0 }
 0x757   :  { %6583 = vtanh.f32 %v8133_v36 }
 0x759   :  { %5941 = vmatpush1.bf16.msra.mxu0 %v8897_v30  ;;  %5973 = vmatpush1.bf16.msra.mxu1 %v8898_v13 }
 0x75a   :  { %5943 = vmatprep.subr.bf16.mxu0 %v8899_v4  ;;  %5975 = vmatprep.subr.bf16.mxu1 %v8842_v27 }
 0x75d   :  { %5945 = vmatpush1.bf16.msra.mxu0 %v8843_v14  ;;  %5977 = vmatpush1.bf16.msra.mxu1 %v8844_v21 }
 0x75e   :  { %5947 = vmatprep.subr.bf16.mxu0 %v8845_v43  ;;  %5979 = vmatprep.subr.bf16.mxu1 %v8846_v2 }
 0x761   :  { %v6584_v52 = vpop.eup %6583  ;;  %5949 = vmatpush1.bf16.msra.mxu0 %v8847_v6  ;;  %5981 = vmatpush1.bf16.msra.mxu1 %v8848_v38 }
 0x762   :  { %v3279_v29 = vmul.f32 %v6584_v52, %v3274_v22  ;;  %5983 = vmatprep.subr.bf16.mxu0 %v8849_v20  ;;  %6015 = vmatprep.subr.bf16.mxu1 %v8850_v1  ;;  %v9087_v22 = vld [vmem:[#allocation52_spill] sm:$0xff]  ;;  %v9088_v52 = vld [vmem:[#allocation41_spill] sm:$0xff] }
 0x764   :  { %3487 = vmatmul.mubr.f32.vlgmr.msra.gmra.mrb[22].mxu0 %v3279_v29  ;;  %3558 = vmatmul.mubr.f32.vlgmr.msra.gmra.mrb[54].mxu1 %v3279_v29 }
 0x765   :  { %5985 = vmatpush1.bf16.msra.mxu0 %v7128_v9  ;;  %6017 = vmatpush1.bf16.msra.mxu1 %v7196_v51 }
 0x766   :  { %5987 = vmatprep.subr.bf16.mxu0 %v7132_v15  ;;  %6019 = vmatprep.subr.bf16.mxu1 %v7199_v53 }
 0x767   :  { %3652 = vmatprep.mubr.f32.mxu0 %v8726_v3  ;;  %3723 = vmatprep.mubr.f32.mxu1 %v8726_v3 }
 0x769   :  { %5989 = vmatpush1.bf16.msra.mxu0 %v7134_v17  ;;  %6021 = vmatpush1.bf16.msra.mxu1 %v7203_v59 }
 0x76a   :  { %5991 = vmatprep.subr.bf16.mxu0 %v7137_v24  ;;  %6023 = vmatprep.subr.bf16.mxu1 %v7207_v61 }
 0x76d   :  { %5993 = vmatpush1.bf16.msra.mxu0 %v9072_v11  ;;  %6025 = vmatpush1.bf16.msra.mxu1 %v9073_v5 }
 0x76e   :  { %5995 = vmatprep.subr.bf16.mxu0 %v9074_v7  ;;  %6027 = vmatprep.subr.bf16.mxu1 %v9075_v50 }
 0x771   :  { %5997 = vmatpush1.bf16.msra.mxu0 %v9076_v63  ;;  %6029 = vmatpush1.bf16.msra.mxu1 %v9077_v28 }
 0x772   :  { %5999 = vmatprep.subr.bf16.mxu0 %v9078_v40  ;;  %6031 = vmatprep.subr.bf16.mxu1 %v9079_v55  ;;  %v9090_v55 = vld [vmem:[#allocation42_spill] sm:$0xff] }
 0x775   :  { %6001 = vmatpush1.bf16.msra.mxu0 %v9080_v8  ;;  %6033 = vmatpush1.bf16.msra.mxu1 %v9081_v44  ;;  %v9091_v8 = vld [vmem:[#allocation54_spill] sm:$0xff]  ;;  %v9092_v44 = vld [vmem:[#allocation43_spill] sm:$0xff] }
 0x776   :  { %6003 = vmatprep.subr.bf16.mxu0 %v9082_v34  ;;  %6035 = vmatprep.subr.bf16.mxu1 %v9083_v60  ;;  %v9093_v34 = vld [vmem:[#allocation55_spill] sm:$0xff]  ;;  %v9094_v60 = vld [vmem:[#allocation56_spill] sm:$0xff] }
 0x779   :  { %6005 = vmatpush1.bf16.msra.mxu0 %v9084_v33  ;;  %6037 = vmatpush1.bf16.msra.mxu1 %v9085_v16  ;;  %v9095_v33 = vld [vmem:[#allocation57_spill] sm:$0xff]  ;;  %v9128_v16 = vld [vmem:[#allocation120_spill] sm:$0xff] }
 0x77a   :  { %6007 = vmatprep.subr.bf16.mxu0 %v9086_v25  ;;  %6039 = vmatprep.subr.bf16.mxu1 %v9087_v22  ;;  %v9096_v25 = vld [vmem:[#allocation58_spill] sm:$0xff]  ;;  %v9097_v22 = vld [vmem:[#allocation59_spill] sm:$0xff] }
 0x77d   :  { %6009 = vmatpush1.bf16.msra.mxu0 %v9088_v52  ;;  %6041 = vmatpush1.bf16.msra.mxu1 %v9089_v26  ;;  %v9098_v52 = vld [vmem:[#allocation60_spill] sm:$0xff]  ;;  %v9099_v26 = vld [vmem:[#allocation61_spill] sm:$0xff] }
 0x77e   :  { %6011 = vmatprep.subr.bf16.mxu0 %v9090_v55  ;;  %6043 = vmatprep.subr.bf16.mxu1 %v9091_v8  ;;  %v9109_v8 = vld [vmem:[#allocation71_spill] sm:$0xff]  ;;  %v9110_v55 = vld [vmem:[#allocation72_spill] sm:$0xff] }
 0x781   :  { %6013 = vmatpush1.bf16.msra.mxu0 %v9092_v44  ;;  %6045 = vmatpush1.bf16.msra.mxu1 %v9093_v34  ;;  %v9100_v44 = vld [vmem:[#allocation62_spill] sm:$0xff]  ;;  %v9101_v34 = vld [vmem:[#allocation63_spill] sm:$0xff] }
 0x782   :  { %6047 = vmatprep.subr.bf16.mxu0 %v9094_v60  ;;  %6079 = vmatprep.subr.bf16.mxu1 %v9095_v33  ;;  %v9102_v60 = vld [vmem:[#allocation64_spill] sm:$0xff]  ;;  %v9103_v33 = vld [vmem:[#allocation65_spill] sm:$0xff] }
 0x784   :  { %3653 = vmatmul.mubr.f32.vlgmr.msra.gmra.mrb[24].mxu0 %v3279_v29  ;;  %3724 = vmatmul.mubr.f32.vlgmr.msra.gmra.mrb[56].mxu1 %v3279_v29  ;;  %v9104_v29 = vld [vmem:[#allocation66_spill] sm:$0xff] }
 0x785   :  { %6049 = vmatpush1.bf16.msra.mxu0 %v9096_v25  ;;  %6081 = vmatpush1.bf16.msra.mxu1 %v9097_v22  ;;  %v9105_v25 = vld [vmem:[#allocation67_spill] sm:$0xff]  ;;  %v9106_v22 = vld [vmem:[#allocation68_spill] sm:$0xff] }
 0x786   :  { %6051 = vmatprep.subr.bf16.mxu0 %v9098_v52  ;;  %6083 = vmatprep.subr.bf16.mxu1 %v9099_v26  ;;  %v9107_v52 = vld [vmem:[#allocation69_spill] sm:$0xff]  ;;  %v9108_v26 = vld [vmem:[#allocation70_spill] sm:$0xff] }
 0x787   :  { %3816 = vmatprep.mubr.f32.mxu0 %v8726_v3  ;;  %3887 = vmatprep.mubr.f32.mxu1 %v8726_v3 }
 0x789   :  { %6053 = vmatpush1.bf16.msra.mxu0 %v9100_v44  ;;  %6085 = vmatpush1.bf16.msra.mxu1 %v9101_v34  ;;  %v9111_v44 = vld [vmem:[#allocation73_spill] sm:$0xff]  ;;  %v9112_v34 = vld [vmem:[#allocation74_spill] sm:$0xff] }
 0x78a   :  { %6055 = vmatprep.subr.bf16.mxu0 %v9102_v60  ;;  %6087 = vmatprep.subr.bf16.mxu1 %v9103_v33  ;;  %v9113_v60 = vld [vmem:[#allocation75_spill] sm:$0xff]  ;;  %v9114_v33 = vld [vmem:[#allocation76_spill] sm:$0xff] }
 0x78d   :  { %6057 = vmatpush1.bf16.msra.mxu0 %v9104_v29  ;;  %6089 = vmatpush1.bf16.msra.mxu1 %v9105_v25  ;;  %v9115_v29 = vld [vmem:[#allocation77_spill] sm:$0xff]  ;;  %v9116_v25 = vld [vmem:[#allocation78_spill] sm:$0xff] }
 0x78e   :  { %6059 = vmatprep.subr.bf16.mxu0 %v9106_v22  ;;  %6091 = vmatprep.subr.bf16.mxu1 %v9107_v52  ;;  %v9117_v22 = vld [vmem:[#allocation79_spill] sm:$0xff]  ;;  %v9118_v52 = vld [vmem:[#allocation80_spill] sm:$0xff] }
 0x791   :  { %6061 = vmatpush1.bf16.msra.mxu0 %v9108_v26  ;;  %6093 = vmatpush1.bf16.msra.mxu1 %v9109_v8  ;;  %v9119_v26 = vld [vmem:[#allocation81_spill] sm:$0xff]  ;;  %v9120_v8 = vld [vmem:[#allocation82_spill] sm:$0xff] }
 0x792   :  { %6063 = vmatprep.subr.bf16.mxu0 %v9110_v55  ;;  %6095 = vmatprep.subr.bf16.mxu1 %v9111_v44  ;;  %v9121_v55 = vld [vmem:[#allocation83_spill] sm:$0xff]  ;;  %v9122_v44 = vld [vmem:[#allocation84_spill] sm:$0xff] }
 0x795   :  { %6065 = vmatpush1.bf16.msra.mxu0 %v9112_v34  ;;  %6097 = vmatpush1.bf16.msra.mxu1 %v9113_v60  ;;  %v9123_v34 = vld [vmem:[#allocation85_spill] sm:$0xff]  ;;  %v9124_v60 = vld [vmem:[#allocation86_spill] sm:$0xff] }
 0x796   :  { %6067 = vmatprep.subr.bf16.mxu0 %v9114_v33  ;;  %6099 = vmatprep.subr.bf16.mxu1 %v9115_v29  ;;  %v9125_v33 = vld [vmem:[#allocation87_spill] sm:$0xff]  ;;  %v9126_v29 = vld [vmem:[#allocation88_spill] sm:$0xff] }
 0x799   :  { %6069 = vmatpush1.bf16.msra.mxu0 %v9116_v25  ;;  %6101 = vmatpush1.bf16.msra.mxu1 %v9117_v22  ;;  %v9127_v25 = vld [vmem:[#allocation89_spill] sm:$0xff] }
 0x79a   :  { %6071 = vmatprep.subr.bf16.mxu0 %v9118_v52  ;;  %6103 = vmatprep.subr.bf16.mxu1 %v9119_v26 }
 0x79d   :  { %6073 = vmatpush1.bf16.msra.mxu0 %v9120_v8  ;;  %6105 = vmatpush1.bf16.msra.mxu1 %v9121_v55 }
 0x79e   :  { %6075 = vmatprep.subr.bf16.mxu0 %v9122_v44  ;;  %6107 = vmatprep.subr.bf16.mxu1 %v9123_v34 }
 0x7a1   :  { %6077 = vmatpush1.bf16.msra.mxu0 %v9124_v60  ;;  %6109 = vmatpush1.bf16.msra.mxu1 %v9125_v33  ;;  %v9129_v33 = vld [vmem:[#allocation151_spill] sm:$0xff] }
 0x7a2   :  { %6111 = vmatprep.subr.bf16.mxu0 %v9126_v29  ;;  %6143 = vmatprep.subr.bf16.mxu1 %v9127_v25 }
 0x837   :  { %v3488_v22 = vpop.f32.mrb[22].mxu0  ;;  %v3559_v52 = vpop.f32.mrb[54].mxu1 }
 0x838   :  { %v3564_v26 = vadd.f32 %v3488_v22, %v9128_v16  ;;  %v3490_v40 = vpop.f32.mrb[23].mxu0  ;;  %v3561_v8 = vpop.f32.mrb[55].mxu1  ;;  %v3566_v34 = vadd.f32 %v3559_v52, %v8876_v31  ;;  %v9131_v52 = vld [vmem:[#allocation145_spill] sm:$0xff] }
 0x839   :  { %v3565_v55 = vadd.f32 %v3490_v40, %v8875_v62  ;;  %v3567_v60 = vadd.f32 %v3561_v8, %v9129_v33  ;;  %v9132_v33 = vld [vmem:[#allocation132_spill] sm:$0xff] }
 0x83a   :  { %v3568_v28 = vmul.f32 0.5, %v3564_v26 }
 0x83b   :  { %v3572_v44 = vmul.f32 0.5, %v3565_v55  ;;  %v3577_v29 = vmul.f32 0.5, %v3567_v60 }
 0x83c   :  { %6585 = vtanh.f32 %v3568_v28 }
 0x83d   :  { %6587 = vtanh.f32 %v3572_v44 }
 0x83e   :  { %6589 = vtanh.f32 %v3566_v34  ;;  %v9130_v34 = vld [vmem:[#allocation131_spill] sm:$0xff] }
 0x83f   :  { %6591 = vtanh.f32 %v3577_v29 }
 0x846   :  { %v6586_v63 = vpop.eup %6585 }
 0x847   :  { %v6588_v25 = vpop.eup %6587  ;;  %v3570_v50 = vmul.f32 0.5, %v6586_v63 }
 0x848   :  { %v3574_v7 = vmul.f32 0.5, %v6588_v25  ;;  %v6590_v16 = vpop.eup %6589 }
 0x849   :  { %v3571_v22 = vadd.f32 0.5, %v3570_v50  ;;  %v6592_v28 = vpop.eup %6591 }
 0x84a   :  { %v3575_v5 = vadd.f32 0.5, %v3574_v7  ;;  %v3579_v55 = vmul.f32 0.5, %v6592_v28 }
 0x84b   :  { %v3582_v11 = vmul.f32 %v6590_v16, %v3571_v22  ;;  %v9133_v16 = vld [vmem:[#allocation146_spill] sm:$0xff] }
 0x84c   :  { %v3581_v26 = vmul.f32 %v3575_v5, %v8103_v18  ;;  %v3580_v50 = vadd.f32 0.5, %v3579_v55 }
 0x84e   :  { %v8225_v40 = vadd.f32 %v3582_v11, %v3581_v26 }
 0x850   :  { %6593 = vtanh.f32 %v8225_v40 }
 0x857   :  { %v3654_v44 = vpop.f32.mrb[24].mxu0  ;;  %v3725_v8 = vpop.f32.mrb[56].mxu1 }
 0x858   :  { %v3730_v60 = vadd.f32 %v3654_v44, %v9130_v34  ;;  %v3732_v63 = vadd.f32 %v3725_v8, %v9131_v52  ;;  %v3656_v25 = vpop.f32.mrb[25].mxu0  ;;  %v3727_v29 = vpop.f32.mrb[57].mxu1 }
 0x859   :  { %v3731_v7 = vadd.f32 %v3656_v25, %v9132_v33  ;;  %v3733_v22 = vadd.f32 %v3727_v29, %v9133_v16 }
 0x85a   :  { %v6594_v18 = vpop.eup %6593  ;;  %v3734_v11 = vmul.f32 0.5, %v3730_v60 }
 0x85b   :  { %v8232_v5 = vmul.f32 %v6594_v18, %v3580_v50  ;;  %v3738_v26 = vmul.f32 0.5, %v3731_v7  ;;  %v3743_v33 = vmul.f32 0.5, %v3733_v22  ;;  %v9140_v18 = vld [vmem:[#allocation36_spill] sm:$0xff] }
 0x85c   :  { %6595 = vtanh.f32 %v3734_v11  ;;  %v9145_v11 = vld [vmem:[#allocation50_spill] sm:$0xff] }
 0x85d   :  { %6597 = vtanh.f32 %v3738_v26  ;;  %3817 = vmatmul.mubr.f32.vlgmr.msra.gmra.mrb[26].mxu0 %v8232_v5  ;;  %3888 = vmatmul.mubr.f32.vlgmr.msra.gmra.mrb[58].mxu1 %v8232_v5  ;;  %v9146_v26 = vld [vmem:[#allocation39_spill] sm:$0xff] }
 0x85e   :  { %6113 = vmatpush1.bf16.msra.mxu0 %v8818_v35  ;;  %6145 = vmatpush1.bf16.msra.mxu1 %v8819_v12  ;;  %6599 = vtanh.f32 %v3732_v63 }
 0x85f   :  { %6115 = vmatprep.subr.bf16.mxu0 %v8820_v56  ;;  %6147 = vmatprep.subr.bf16.mxu1 %v8821_v41  ;;  %6601 = vtanh.f32 %v3743_v33  ;;  %v9147_v33 = vld [vmem:[#allocation51_spill] sm:$0xff] }
 0x860   :  { %3958 = vmatprep.mubr.f32.mxu0 %v8726_v3  ;;  %4029 = vmatprep.mubr.f32.mxu1 %v8726_v3 }
 0x862   :  { %6117 = vmatpush1.bf16.msra.mxu0 %v8883_v48  ;;  %6149 = vmatpush1.bf16.msra.mxu1 %v8884_v58 }
 0x863   :  { %6119 = vmatprep.subr.bf16.mxu0 %v8885_v54  ;;  %6151 = vmatprep.subr.bf16.mxu1 %v8886_v23 }
 0x866   :  { %v6596_v28 = vpop.eup %6595  ;;  %6121 = vmatpush1.bf16.msra.mxu0 %v8887_v10  ;;  %6153 = vmatpush1.bf16.msra.mxu1 %v8946_v46 }
 0x867   :  { %v6598_v55 = vpop.eup %6597  ;;  %v3736_v44 = vmul.f32 0.5, %v6596_v28  ;;  %6123 = vmatprep.subr.bf16.mxu0 %v8947_v19  ;;  %6155 = vmatprep.subr.bf16.mxu1 %v8829_v45  ;;  %v9148_v28 = vld [vmem:[#allocation40_spill] sm:$0xff] }
 0x868   :  { %v3740_v8 = vmul.f32 0.5, %v6598_v55  ;;  %v6600_v60 = vpop.eup %6599  ;;  %v9149_v55 = vld [vmem:[#allocation52_spill] sm:$0xff] }
 0x869   :  { %v3737_v34 = vadd.f32 0.5, %v3736_v44  ;;  %v6602_v50 = vpop.eup %6601  ;;  %v9150_v44 = vld [vmem:[#allocation41_spill] sm:$0xff] }
 0x86a   :  { %v3741_v52 = vadd.f32 0.5, %v3740_v8  ;;  %6125 = vmatpush1.bf16.msra.mxu0 %v8830_v32  ;;  %6157 = vmatpush1.bf16.msra.mxu1 %v8831_v47  ;;  %v9151_v8 = vld [vmem:[#allocation53_spill] sm:$0xff] }
 0x86b   :  { %v3748_v63 = vmul.f32 %v6600_v60, %v3737_v34  ;;  %6127 = vmatprep.subr.bf16.mxu0 %v8890_v42  ;;  %6159 = vmatprep.subr.bf16.mxu1 %v8948_v37  ;;  %v9152_v34 = vld [vmem:[#allocation42_spill] sm:$0xff] }
 0x86c   :  { %v3747_v25 = vmul.f32 %v3741_v52, %v8133_v36  ;;  %v3745_v36 = vmul.f32 0.5, %v6602_v50  ;;  %v9153_v60 = vld [vmem:[#allocation54_spill] sm:$0xff]  ;;  %v9154_v52 = vld [vmem:[#allocation43_spill] sm:$0xff]  ;;  %v9157_v50 = vld [vmem:[#allocation57_spill] sm:$0xff] }
 0x86e   :  { %v8255_v29 = vadd.f32 %v3748_v63, %v3747_v25  ;;  %6129 = vmatpush1.bf16.msra.mxu0 %v8893_v49  ;;  %6161 = vmatpush1.bf16.msra.mxu1 %v8894_v39  ;;  %v3746_v7 = vadd.f32 0.5, %v3745_v36  ;;  %v9155_v63 = vld [vmem:[#allocation55_spill] sm:$0xff]  ;;  %v9156_v25 = vld [vmem:[#allocation56_spill] sm:$0xff]  ;;  %v9158_v36 = vld [vmem:[#allocation58_spill] sm:$0xff] }
 0x86f   :  { %6131 = vmatprep.subr.bf16.mxu0 %v8895_v57  ;;  %6163 = vmatprep.subr.bf16.mxu1 %v8896_v0 }
 0x870   :  { %6603 = vtanh.f32 %v8255_v29 }
 0x872   :  { %6133 = vmatpush1.bf16.msra.mxu0 %v8897_v30  ;;  %6165 = vmatpush1.bf16.msra.mxu1 %v8898_v13 }
 0x873   :  { %6135 = vmatprep.subr.bf16.mxu0 %v8899_v4  ;;  %6167 = vmatprep.subr.bf16.mxu1 %v8842_v27 }
 0x876   :  { %6137 = vmatpush1.bf16.msra.mxu0 %v8843_v14  ;;  %6169 = vmatpush1.bf16.msra.mxu1 %v8844_v21 }
 0x877   :  { %6139 = vmatprep.subr.bf16.mxu0 %v8845_v43  ;;  %6171 = vmatprep.subr.bf16.mxu1 %v8846_v2 }
 0x87a   :  { %v6604_v16 = vpop.eup %6603  ;;  %6141 = vmatpush1.bf16.msra.mxu0 %v8847_v6  ;;  %6173 = vmatpush1.bf16.msra.mxu1 %v8848_v38 }
 0x87b   :  { %v3751_v22 = vmul.f32 %v6604_v16, %v3746_v7  ;;  %6175 = vmatprep.subr.bf16.mxu0 %v8849_v20  ;;  %6207 = vmatprep.subr.bf16.mxu1 %v8850_v1  ;;  %v9134_v20 = vld [vmem:[#allocation33_spill] sm:$0xff]  ;;  %v9139_v1 = vld [vmem:[#allocation47_spill] sm:$0xff]  ;;  %v9160_v16 = vld [vmem:[#allocation60_spill] sm:$0xff] }
 0x87c   :  { %v9159_v7 = vld [vmem:[#allocation59_spill] sm:$0xff] }
 0x87d   :  { %3959 = vmatmul.mubr.f32.vlgmr.msra.gmra.mrb[26].mxu0 %v3751_v22  ;;  %4030 = vmatmul.mubr.f32.vlgmr.msra.gmra.mrb[58].mxu1 %v3751_v22 }
 0x87e   :  { %6177 = vmatpush1.bf16.msra.mxu0 %v7128_v9  ;;  %6209 = vmatpush1.bf16.msra.mxu1 %v7196_v51  ;;  %v9135_v9 = vld [vmem:[#allocation45_spill] sm:$0xff]  ;;  %v9136_v51 = vld [vmem:[#allocation34_spill] sm:$0xff] }
 0x87f   :  { %6179 = vmatprep.subr.bf16.mxu0 %v7132_v15  ;;  %6211 = vmatprep.subr.bf16.mxu1 %v7199_v53  ;;  %v9137_v15 = vld [vmem:[#allocation46_spill] sm:$0xff]  ;;  %v9138_v53 = vld [vmem:[#allocation35_spill] sm:$0xff] }
 0x880   :  { %4124 = vmatprep.mubr.f32.mxu0 %v8726_v3  ;;  %4195 = vmatprep.mubr.f32.mxu1 %v8726_v3 }
 0x882   :  { %6181 = vmatpush1.bf16.msra.mxu0 %v7134_v17  ;;  %6213 = vmatpush1.bf16.msra.mxu1 %v7203_v59  ;;  %v9141_v17 = vld [vmem:[#allocation48_spill] sm:$0xff]  ;;  %v9142_v59 = vld [vmem:[#allocation37_spill] sm:$0xff] }
 0x883   :  { %6183 = vmatprep.subr.bf16.mxu0 %v7137_v24  ;;  %6215 = vmatprep.subr.bf16.mxu1 %v7207_v61  ;;  %v9143_v24 = vld [vmem:[#allocation49_spill] sm:$0xff]  ;;  %v9144_v61 = vld [vmem:[#allocation38_spill] sm:$0xff] }
 0x886   :  { %6185 = vmatpush1.bf16.msra.mxu0 %v9134_v20  ;;  %6217 = vmatpush1.bf16.msra.mxu1 %v9135_v9  ;;  %v9161_v20 = vld [vmem:[#allocation61_spill] sm:$0xff]  ;;  %v9162_v9 = vld [vmem:[#allocation62_spill] sm:$0xff] }
 0x887   :  { %6187 = vmatprep.subr.bf16.mxu0 %v9136_v51  ;;  %6219 = vmatprep.subr.bf16.mxu1 %v9137_v15  ;;  %v9163_v51 = vld [vmem:[#allocation63_spill] sm:$0xff]  ;;  %v9164_v15 = vld [vmem:[#allocation64_spill] sm:$0xff] }
 0x88a   :  { %6189 = vmatpush1.bf16.msra.mxu0 %v9138_v53  ;;  %6221 = vmatpush1.bf16.msra.mxu1 %v9139_v1  ;;  %v9165_v53 = vld [vmem:[#allocation65_spill] sm:$0xff]  ;;  %v9167_v1 = vld [vmem:[#allocation67_spill] sm:$0xff] }
 0x88b   :  { %6191 = vmatprep.subr.bf16.mxu0 %v9140_v18  ;;  %6223 = vmatprep.subr.bf16.mxu1 %v9141_v17  ;;  %v9168_v18 = vld [vmem:[#allocation68_spill] sm:$0xff]  ;;  %v9169_v17 = vld [vmem:[#allocation69_spill] sm:$0xff] }
 0x88e   :  { %6193 = vmatpush1.bf16.msra.mxu0 %v9142_v59  ;;  %6225 = vmatpush1.bf16.msra.mxu1 %v9143_v24  ;;  %v9170_v59 = vld [vmem:[#allocation70_spill] sm:$0xff]  ;;  %v9171_v24 = vld [vmem:[#allocation71_spill] sm:$0xff] }
 0x88f   :  { %6195 = vmatprep.subr.bf16.mxu0 %v9144_v61  ;;  %6227 = vmatprep.subr.bf16.mxu1 %v9145_v11  ;;  %v9172_v61 = vld [vmem:[#allocation72_spill] sm:$0xff]  ;;  %v9173_v11 = vld [vmem:[#allocation73_spill] sm:$0xff] }
 0x892   :  { %6197 = vmatpush1.bf16.msra.mxu0 %v9146_v26  ;;  %6229 = vmatpush1.bf16.msra.mxu1 %v9147_v33  ;;  %v9174_v26 = vld [vmem:[#allocation74_spill] sm:$0xff]  ;;  %v9175_v33 = vld [vmem:[#allocation75_spill] sm:$0xff] }
 0x893   :  { %6199 = vmatprep.subr.bf16.mxu0 %v9148_v28  ;;  %6231 = vmatprep.subr.bf16.mxu1 %v9149_v55  ;;  %v9176_v28 = vld [vmem:[#allocation76_spill] sm:$0xff]  ;;  %v9177_v55 = vld [vmem:[#allocation77_spill] sm:$0xff] }
 0x896   :  { %6201 = vmatpush1.bf16.msra.mxu0 %v9150_v44  ;;  %6233 = vmatpush1.bf16.msra.mxu1 %v9151_v8  ;;  %v9178_v44 = vld [vmem:[#allocation78_spill] sm:$0xff]  ;;  %v9179_v8 = vld [vmem:[#allocation79_spill] sm:$0xff] }
 0x897   :  { %6203 = vmatprep.subr.bf16.mxu0 %v9152_v34  ;;  %6235 = vmatprep.subr.bf16.mxu1 %v9153_v60  ;;  %v9180_v34 = vld [vmem:[#allocation80_spill] sm:$0xff]  ;;  %v9181_v60 = vld [vmem:[#allocation81_spill] sm:$0xff] }
 0x89a   :  { %6205 = vmatpush1.bf16.msra.mxu0 %v9154_v52  ;;  %6237 = vmatpush1.bf16.msra.mxu1 %v9155_v63  ;;  %v9182_v52 = vld [vmem:[#allocation82_spill] sm:$0xff]  ;;  %v9183_v63 = vld [vmem:[#allocation83_spill] sm:$0xff] }
 0x89b   :  { %6239 = vmatprep.subr.bf16.mxu0 %v9156_v25  ;;  %6271 = vmatprep.subr.bf16.mxu1 %v9157_v50  ;;  %v9184_v25 = vld [vmem:[#allocation84_spill] sm:$0xff]  ;;  %v9185_v50 = vld [vmem:[#allocation85_spill] sm:$0xff] }
 0x89d   :  { %4125 = vmatmul.mubr.f32.vlgmr.msra.gmra.mrb[28].mxu0 %v3751_v22  ;;  %4196 = vmatmul.mubr.f32.vlgmr.msra.gmra.mrb[60].mxu1 %v3751_v22  ;;  %v9166_v22 = vld [vmem:[#allocation66_spill] sm:$0xff] }
 0x89e   :  { %6241 = vmatpush1.bf16.msra.mxu0 %v9158_v36  ;;  %6273 = vmatpush1.bf16.msra.mxu1 %v9159_v7  ;;  %v9186_v36 = vld [vmem:[#allocation86_spill] sm:$0xff]  ;;  %v9187_v7 = vld [vmem:[#allocation87_spill] sm:$0xff] }
 0x89f   :  { %6243 = vmatprep.subr.bf16.mxu0 %v9160_v16  ;;  %6275 = vmatprep.subr.bf16.mxu1 %v9161_v20  ;;  %v9188_v16 = vld [vmem:[#allocation88_spill] sm:$0xff]  ;;  %v9189_v20 = vld [vmem:[#allocation89_spill] sm:$0xff] }
 0x8a0   :  { %4288 = vmatprep.mubr.f32.mxu0 %v8726_v3  ;;  %4359 = vmatprep.mubr.f32.mxu1 %v8726_v3 }
 0x8a2   :  { %6245 = vmatpush1.bf16.msra.mxu0 %v9162_v9  ;;  %6277 = vmatpush1.bf16.msra.mxu1 %v9163_v51 }
 0x8a3   :  { %6247 = vmatprep.subr.bf16.mxu0 %v9164_v15  ;;  %6279 = vmatprep.subr.bf16.mxu1 %v9165_v53  ;;  %v9190_v15 = vld [vmem:[#allocation120_spill] sm:$0xff] }
 0x8a6   :  { %6249 = vmatpush1.bf16.msra.mxu0 %v9166_v22  ;;  %6281 = vmatpush1.bf16.msra.mxu1 %v9167_v1 }
 0x8a7   :  { %6251 = vmatprep.subr.bf16.mxu0 %v9168_v18  ;;  %6283 = vmatprep.subr.bf16.mxu1 %v9169_v17 }
 0x8aa   :  { %6253 = vmatpush1.bf16.msra.mxu0 %v9170_v59  ;;  %6285 = vmatpush1.bf16.msra.mxu1 %v9171_v24 }
 0x8ab   :  { %6255 = vmatprep.subr.bf16.mxu0 %v9172_v61  ;;  %6287 = vmatprep.subr.bf16.mxu1 %v9173_v11  ;;  %v9191_v61 = vld [vmem:[#allocation151_spill] sm:$0xff] }
 0x8ae   :  { %6257 = vmatpush1.bf16.msra.mxu0 %v9174_v26  ;;  %6289 = vmatpush1.bf16.msra.mxu1 %v9175_v33 }
 0x8af   :  { %6259 = vmatprep.subr.bf16.mxu0 %v9176_v28  ;;  %6291 = vmatprep.subr.bf16.mxu1 %v9177_v55 }
 0x8b2   :  { %6261 = vmatpush1.bf16.msra.mxu0 %v9178_v44  ;;  %6293 = vmatpush1.bf16.msra.mxu1 %v9179_v8 }
 0x8b3   :  { %6263 = vmatprep.subr.bf16.mxu0 %v9180_v34  ;;  %6295 = vmatprep.subr.bf16.mxu1 %v9181_v60 }
 0x8b6   :  { %6265 = vmatpush1.bf16.msra.mxu0 %v9182_v52  ;;  %6297 = vmatpush1.bf16.msra.mxu1 %v9183_v63 }
 0x8b7   :  { %6267 = vmatprep.subr.bf16.mxu0 %v9184_v25  ;;  %6299 = vmatprep.subr.bf16.mxu1 %v9185_v50 }
 0x8ba   :  { %6269 = vmatpush1.bf16.msra.mxu0 %v9186_v36  ;;  %6301 = vmatpush1.bf16.msra.mxu1 %v9187_v7 }
 0x8bb   :  { %6303 = vmatprep.subr.bf16.mxu0 %v9188_v16  ;;  %6335 = vmatprep.subr.bf16.mxu1 %v9189_v20  ;;  %v9192_v20 = vld [vmem:[#allocation133_spill] sm:$0xff] }
 0x950   :  { %v3960_v9 = vpop.f32.mrb[26].mxu0  ;;  %v4031_v51 = vpop.f32.mrb[58].mxu1 }
 0x951   :  { %v4036_v53 = vadd.f32 %v3960_v9, %v9190_v15  ;;  %v3962_v22 = vpop.f32.mrb[27].mxu0  ;;  %v4033_v1 = vpop.f32.mrb[59].mxu1  ;;  %v4038_v24 = vadd.f32 %v4031_v51, %v8876_v31  ;;  %v9193_v51 = vld [vmem:[#allocation147_spill] sm:$0xff] }
 0x952   :  { %v4037_v18 = vadd.f32 %v3962_v22, %v8875_v62  ;;  %v4039_v11 = vadd.f32 %v4033_v1, %v9191_v61 }
 0x953   :  { %v4040_v17 = vmul.f32 0.5, %v4036_v53 }
 0x954   :  { %v4044_v59 = vmul.f32 0.5, %v4037_v18  ;;  %v4049_v26 = vmul.f32 0.5, %v4039_v11 }
 0x955   :  { %6605 = vtanh.f32 %v4040_v17  ;;  %v9194_v17 = vld [vmem:[#allocation134_spill] sm:$0xff] }
 0x956   :  { %6607 = vtanh.f32 %v4044_v59 }
 0x957   :  { %6609 = vtanh.f32 %v4038_v24  ;;  %v9195_v24 = vld [vmem:[#allocation148_spill] sm:$0xff] }
 0x958   :  { %6611 = vtanh.f32 %v4049_v26 }
 0x95f   :  { %v6606_v33 = vpop.eup %6605 }
 0x960   :  { %v6608_v28 = vpop.eup %6607  ;;  %v4042_v55 = vmul.f32 0.5, %v6606_v33 }
 0x961   :  { %v4046_v44 = vmul.f32 0.5, %v6608_v28  ;;  %v6610_v34 = vpop.eup %6609 }
 0x962   :  { %v4043_v8 = vadd.f32 0.5, %v4042_v55  ;;  %v6612_v50 = vpop.eup %6611 }
 0x963   :  { %v4047_v60 = vadd.f32 0.5, %v4046_v44  ;;  %v4051_v36 = vmul.f32 0.5, %v6612_v50 }
 0x964   :  { %v4054_v52 = vmul.f32 %v6610_v34, %v4043_v8 }
 0x965   :  { %v4053_v63 = vmul.f32 %v4047_v60, %v8225_v40  ;;  %v4052_v18 = vadd.f32 0.5, %v4051_v36 }
 0x967   :  { %v8347_v25 = vadd.f32 %v4054_v52, %v4053_v63 }
 0x969   :  { %6613 = vtanh.f32 %v8347_v25 }
 0x970   :  { %v4126_v7 = vpop.f32.mrb[28].mxu0  ;;  %v4197_v16 = vpop.f32.mrb[60].mxu1 }
 0x971   :  { %v4202_v9 = vadd.f32 %v4126_v7, %v9192_v20  ;;  %v4204_v53 = vadd.f32 %v4197_v16, %v9193_v51  ;;  %v4128_v22 = vpop.f32.mrb[29].mxu0  ;;  %v4199_v1 = vpop.f32.mrb[61].mxu1 }
 0x972   :  { %v4203_v59 = vadd.f32 %v4128_v22, %v9194_v17  ;;  %v4205_v11 = vadd.f32 %v4199_v1, %v9195_v24 }
 0x973   :  { %v6614_v40 = vpop.eup %6613  ;;  %v4206_v26 = vmul.f32 0.5, %v4202_v9 }
 0x974   :  { %v8354_v33 = vmul.f32 %v6614_v40, %v4052_v18  ;;  %v4210_v28 = vmul.f32 0.5, %v4203_v59 }
 0x975   :  { %6615 = vtanh.f32 %v4206_v26 }
 0x976   :  { %6617 = vtanh.f32 %v4210_v28  ;;  %4289 = vmatmul.mubr.f32.vlgmr.msra.gmra.mrb[30].mxu0 %v8354_v33  ;;  %4360 = vmatmul.mubr.f32.vlgmr.msra.gmra.mrb[62].mxu1 %v8354_v33 }
 0x977   :  { %6305 = vmatpush1.bf16.msra.mxu0 %v8818_v35  ;;  %6337 = vmatpush1.bf16.msra.mxu1 %v8819_v12  ;;  %6619 = vtanh.f32 %v4204_v53  ;;  %v4215_v35 = vmul.f32 0.5, %v4205_v11 }
 0x978   :  { %6307 = vmatprep.subr.bf16.mxu0 %v8820_v56  ;;  %6339 = vmatprep.subr.bf16.mxu1 %v8821_v41 }
 0x979   :  { %4430 = vmatprep.mubr.f32.mxu0 %v8726_v3  ;;  %4501 = vmatprep.mubr.f32.mxu1 %v8726_v3  ;;  %6621 = vtanh.f32 %v4215_v35 }
 0x97b   :  { %6309 = vmatpush1.bf16.msra.mxu0 %v8883_v48  ;;  %6341 = vmatpush1.bf16.msra.mxu1 %v8884_v58 }
 0x97c   :  { %6311 = vmatprep.subr.bf16.mxu0 %v8885_v54  ;;  %6343 = vmatprep.subr.bf16.mxu1 %v8886_v23 }
 0x97f   :  { %v6616_v55 = vpop.eup %6615  ;;  %6313 = vmatpush1.bf16.msra.mxu0 %v8887_v10  ;;  %6345 = vmatpush1.bf16.msra.mxu1 %v8946_v46 }
 0x980   :  { %v6618_v12 = vpop.eup %6617  ;;  %v4208_v56 = vmul.f32 0.5, %v6616_v55  ;;  %6315 = vmatprep.subr.bf16.mxu0 %v8947_v19  ;;  %6347 = vmatprep.subr.bf16.mxu1 %v8829_v45  ;;  %v6467_v45 = vld [vmem:[#allocation19] sm:$0xff]   ;;  %v9200_v19 = vld [vmem:[#allocation91_spill] sm:$0xff] }
 0x981   :  { %v4212_v3 = vmul.f32 0.5, %v6618_v12  ;;  %v6620_v48 = vpop.eup %6619 }
 0x982   :  { %v4209_v41 = vadd.f32 0.5, %v4208_v56 }
 0x983   :  { %v4213_v58 = vadd.f32 0.5, %v4212_v3  ;;  %6317 = vmatpush1.bf16.msra.mxu0 %v8830_v32  ;;  %6349 = vmatpush1.bf16.msra.mxu1 %v8831_v47  ;;  %v6622_v32 = vpop.eup %6621 }
 0x984   :  { %v4220_v54 = vmul.f32 %v6620_v48, %v4209_v41  ;;  %6319 = vmatprep.subr.bf16.mxu0 %v8890_v42  ;;  %6351 = vmatprep.subr.bf16.mxu1 %v8948_v37  ;;  %v4217_v47 = vmul.f32 0.5, %v6622_v32  ;;  %v4546_v37 = vpack.c.bf16 %v8232_v5, %v9200_v19 }
 0x985   :  { %v4219_v23 = vmul.f32 %v4213_v58, %v8255_v29 }
 0x987   :  { %v4221_v10 = vadd.f32 %v4220_v54, %v4219_v23  ;;  %6321 = vmatpush1.bf16.msra.mxu0 %v8893_v49  ;;  %6353 = vmatpush1.bf16.msra.mxu1 %v8894_v39  ;;  %v4218_v49 = vadd.f32 0.5, %v4217_v47 }
 0x988   :  { %6323 = vmatprep.subr.bf16.mxu0 %v8895_v57  ;;  %6355 = vmatprep.subr.bf16.mxu1 %v8896_v0  ;;  %v9197_v57 = vld [vmem:[#allocation122_spill] sm:$0xff] }
 0x989   :  { %6623 = vtanh.f32 %v4221_v10  ;;  %4698 = vst [vmem:[#allocation24] sm:$0xff] %v4221_v10 }
 0x98b   :  { %6325 = vmatpush1.bf16.msra.mxu0 %v8897_v30  ;;  %6357 = vmatpush1.bf16.msra.mxu1 %v8898_v13  ;;  %v9198_v30 = vld [vmem:[#allocation136_spill] sm:$0xff]  ;;  %v9199_v13 = vld [vmem:[#allocation90_spill] sm:$0xff] }
 0x98c   :  { %6327 = vmatprep.subr.bf16.mxu0 %v8899_v4  ;;  %6359 = vmatprep.subr.bf16.mxu1 %v8842_v27  ;;  %v6468_v4 = vld [vmem:[#allocation19 + $0x8] sm:$0xff]   ;;  %v4545_v46 = vpack.c.bf16 %v9199_v13, %v9198_v30 }
 0x98d   :  { %v9196_v27 = vld [vmem:[#allocation121_spill] sm:$0xff] }
 0x98e   :  { %v4544_v0 = vpack.c.bf16 %v9197_v57, %v9196_v27 }
 0x98f   :  { %6329 = vmatpush1.bf16.msra.mxu0 %v8843_v14  ;;  %6361 = vmatpush1.bf16.msra.mxu1 %v8844_v21  ;;  %v6473_v14 = vld [vmem:[#allocation19 + $0x30] sm:$0xff]   ;;  %v6474_v21 = vld [vmem:[#allocation19 + $0x38] sm:$0xff]  }
 0x990   :  { %6331 = vmatprep.subr.bf16.mxu0 %v8845_v43  ;;  %6363 = vmatprep.subr.bf16.mxu1 %v8846_v2  ;;  %v6469_v43 = vld [vmem:[#allocation19 + $0x10] sm:$0xff]   ;;  %v6470_v2 = vld [vmem:[#allocation19 + $0x18] sm:$0xff]  }
 0x993   :  { %v6624_v42 = vpop.eup %6623  ;;  %6333 = vmatpush1.bf16.msra.mxu0 %v8847_v6  ;;  %6365 = vmatpush1.bf16.msra.mxu1 %v8848_v38  ;;  %v6471_v6 = vld [vmem:[#allocation19 + $0x20] sm:$0xff]   ;;  %v6472_v38 = vld [vmem:[#allocation19 + $0x28] sm:$0xff]  }
 0x994   :  { %v4223_v39 = vmul.f32 %v6624_v42, %v4218_v49  ;;  %4806 = vmatprep.subr.bf16.mxu0 %v6467_v45 }
 0x996   :  { %4695 = vst [vmem:[#allocation22] sm:$0xff] %v4223_v39  ;;  %4431 = vmatmul.mubr.f32.vlgmr.msra.gmra.mrb[30].mxu0 %v4223_v39  ;;  %4502 = vmatmul.mubr.f32.vlgmr.msra.gmra.mrb[62].mxu1 %v4223_v39 }
 0x997   :  { %4807 = vmatpush3.bf16.msra.mxu0 %v6467_v45  ;;  %4822 = vmatprep.mubr.bf16.mxu0 %v4544_v0 }
 0x998   :  { %4808 = vmatprep.subr.bf16.mxu0 %v6468_v4 }
 0x99b   :  { %4809 = vmatpush3.bf16.msra.mxu0 %v6468_v4 }
 0x99c   :  { %4810 = vmatprep.subr.bf16.mxu0 %v6469_v43 }
 0x99f   :  { %4811 = vmatpush3.bf16.msra.mxu0 %v6469_v43 }
 0x9a0   :  { %4812 = vmatprep.subr.bf16.mxu0 %v6470_v2 }
 0x9a3   :  { %4813 = vmatpush3.bf16.msra.mxu0 %v6470_v2 }
 0x9a4   :  { %4814 = vmatprep.subr.bf16.mxu0 %v6471_v6 }
 0x9a7   :  { %4815 = vmatpush3.bf16.msra.mxu0 %v6471_v6 }
 0x9a8   :  { %4816 = vmatprep.subr.bf16.mxu0 %v6472_v38 }
 0x9ab   :  { %4817 = vmatpush3.bf16.msra.mxu0 %v6472_v38 }
 0x9ac   :  { %4818 = vmatprep.subr.bf16.mxu0 %v6473_v14 }
 0x9af   :  { %4819 = vmatpush3.bf16.msra.mxu0 %v6473_v14 }
 0x9b0   :  { %4820 = vmatprep.subr.bf16.mxu0 %v6474_v21 }
 0x9b3   :  { %4821 = vmatpush3.bf16.msra.mxu0 %v6474_v21 }
 0x9b6   :  { %4823 = vmatmul.mubr.bf16.vlgmr.msra.gmra.mrb[32].mxu0 %v4545_v46 }
 0x9b7   :  { %4826 = vmatprep.mubr.bf16.mxu0 %v4546_v37 }
 0xa69   :  { %v4432_v29 = vpop.f32.mrb[30].mxu0  ;;  %v4503_v44 = vpop.f32.mrb[62].mxu1 }
 0xa6a   :  { %v4508_v8 = vadd.f32 %v4432_v29, %v9190_v15  ;;  %v4434_v34 = vpop.f32.mrb[31].mxu0  ;;  %v4505_v60 = vpop.f32.mrb[63].mxu1  ;;  %v4510_v36 = vadd.f32 %v4503_v44, %v8876_v31 }
 0xa6b   :  { %v4509_v52 = vadd.f32 %v4434_v34, %v8875_v62  ;;  %v4511_v7 = vadd.f32 %v4505_v60, %v9191_v61  ;;  %v4785_v61 = vld [vmem:[%s8461_s10] ss:$0 sm:$0xff]  ;;  %s6909_s10 = smov [#allocation22]  }
 0xa6c   :  { %v4512_v63 = vmul.f32 0.5, %v4508_v8  ;;  %s4718_s14 = sshll.u32 %s6909_s10, 4  ;;  %s4719_s14 = int_to_ptr.vmem [resolvable:$true] %s4718_s14 }
 0xa6d   :  { %v4516_v50 = vmul.f32 0.5, %v4509_v52  ;;  %v4521_v5 = vmul.f32 0.5, %v4511_v7  ;;  %s6811_s6 = scalar_lea.vmem %s4719_s14, 256  ;;  %p6816_p9 = scmp.lt.s32.totalorder %s4719_s14, %s4719_s14 }
 0xa6e   :  { %6625 = vtanh.f32 %v4512_v63  ;;  %p6812_p8 = scmp.ne.s32.totalorder %s4719_s14, %s6811_s6  ;;  %p6817_p10 = scmp.lt.s32.totalorder %s6811_s6, %s6811_s6 }
 0xa6f   :  { %6627 = vtanh.f32 %v4516_v50 }
 0xa70   :  { %6629 = vtanh.f32 %v4510_v36  ;;  %p6818_p11 = por %p6817_p10, %p6816_p9 }
 0xa71   :  { %6631 = vtanh.f32 %v4521_v5 }
 0xa72   :  { %p6819_p12 = pnand %p6818_p11, %p6812_p8 }
 0xa78   :  { %v6626_v16 = vpop.eup %6625 }
 0xa79   :  { %v6628_v20 = vpop.eup %6627  ;;  %v4514_v9 = vmul.f32 0.5, %v6626_v16 }
 0xa7a   :  { %v4518_v51 = vmul.f32 0.5, %v6628_v20  ;;  %v6630_v53 = vpop.eup %6629 }
 0xa7b   :  { %v4515_v15 = vadd.f32 0.5, %v4514_v9  ;;  %v6632_v31 = vpop.eup %6631 }
 0xa7c   :  { %v4519_v22 = vadd.f32 0.5, %v4518_v51  ;;  %v4523_v17 = vmul.f32 0.5, %v6632_v31 }
 0xa7d   :  { %v4526_v1 = vmul.f32 %v6630_v53, %v4515_v15 }
 0xa7e   :  { %v4525_v62 = vmul.f32 %v4519_v22, %v8347_v25  ;;  %v4524_v40 = vadd.f32 0.5, %v4523_v17 }
 0xa80   :  { %v4527_v18 = vadd.f32 %v4526_v1, %v4525_v62 }
 0xa82   :  { %6633 = vtanh.f32 %v4527_v18  ;;  %4700 = vst [vmem:[#allocation24 + $0x8] sm:$0xff] %v4527_v18 }
 0xa89   :  { %v4824_v59 = vpop.f32.mrb[32].mxu0 }
 0xa8a   :  { %v4662_v24 = vadd.f32 %v4824_v59, %v4785_v61  ;;  %v4653_v11 = vpop.f32.mrb[33].mxu0 }
 0xa8b   :  { %v4654_v26 = vadd.f32 %v4785_v61, %v4653_v11  ;;  %v4825_v28 = vpop.f32.mrb[34].mxu0 }
 0xa8c   :  { %v6634_v35 = vpop.eup %6633  ;;  %4686 = vst [vmem:[#allocation21 + $0x10] sm:$0xff] %v4662_v24  ;;  %v4665_v55 = vadd.f32 %v4825_v28, %v4785_v61  ;;  %v4656_v12 = vpop.f32.mrb[35].mxu0 }
 0xa8d   :  { %4684 = vst [vmem:[#allocation21] sm:$0xff] %v4654_v26  ;;  %v4657_v25 = vadd.f32 %v4785_v61, %v4656_v12  ;;  %v4529_v56 = vmul.f32 %v6634_v35, %v4524_v40 }
 0xa8e   :  { %4687 = vst [vmem:[#allocation21 + $0x18] sm:$0xff] %v4665_v55 }
 0xa8f   :  { %4685 = vst [vmem:[#allocation21 + $0x8] sm:$0xff] %v4657_v25  ;;  %v4547_v3 = vpack.c.bf16 %v4529_v56, %v8354_v33  ;;  %4697 = vst [vmem:[#allocation22 + $0x8] sm:$0xff] %v4529_v56 }
 0xa91   :  { %4827 = vmatmul.mubr.bf16.gmra.mrb[36].mxu0 %v4547_v3 }
 0xa92   :  { %6822 = shalt.err (!%p6819_p12)
}
 0xa93   :  { %s6823_s4 = scalar_lea.hbm %s8463_s12, 256 }
 0xa94   :  { %p6824_p13 = scmp.ne.s32.totalorder %s8463_s12, %s6823_s4  ;;  %p6827_p0 = scmp.lt.u32.totalorder %s6823_s4, %s8463_s12 }
 0xa96   :  { %p6829_p1 = pnand %p6827_p0, %p6824_p13 }
 0xa98   :  { %6832 = shalt.err (!%p6829_p1)
}
 0xa99   :  { %4724 = dma.vmem_to_hbm [thread:$0]  %s4719_s14, 256, %s8463_s12, [#allocation23], %s6893_s20, %s6893_s20, %s6894_s21  }
 0xa9a   :  { %s6910_s16 = smov [#allocation24]  }
 0xa9b   :  { %s4730_s23 = sshll.u32 %s6910_s16, 4  ;;  %s4731_s23 = int_to_ptr.vmem [resolvable:$true] %s4730_s23 }
 0xa9c   :  { %s6833_s27 = scalar_lea.vmem %s4731_s23, 256  ;;  %p6838_p3 = scmp.lt.s32.totalorder %s4731_s23, %s4731_s23 }
 0xa9d   :  { %p6834_p2 = scmp.ne.s32.totalorder %s4731_s23, %s6833_s27  ;;  %p6839_p4 = scmp.lt.s32.totalorder %s6833_s27, %s6833_s27 }
 0xa9f   :  { %p6840_p5 = por %p6839_p4, %p6838_p3 }
 0xaa1   :  { %p6841_p6 = pnand %p6840_p5, %p6834_p2 }
 0xaa3   :  { %6844 = shalt.err (!%p6841_p6)
}
 0xaa4   :  { %s6845_s28 = scalar_lea.hbm %s8464_s13, 256 }
 0xaa5   :  { %p6846_p7 = scmp.ne.s32.totalorder %s8464_s13, %s6845_s28  ;;  %p6849_p8 = scmp.lt.u32.totalorder %s6845_s28, %s8464_s13 }
 0xaa7   :  { %p6851_p9 = pnand %p6849_p8, %p6846_p7 }
 0xaa9   :  { %6854 = shalt.err (!%p6851_p9)
}
 0xaaa   :  { %4736 = dma.vmem_to_hbm [thread:$0]  %s4731_s23, 256, %s8464_s13, [#allocation23], %s6893_s20, %s6893_s20, %s6894_s21  }
 0xaab   :  { %s6911_s24 = smov [#allocation21]  }
 0xaac   :  { %s4706_s8 = sshll.u32 %s6911_s24, 4  ;;  %s4707_s8 = int_to_ptr.vmem [resolvable:$true] %s4706_s8 }
 0xaad   :  { %s6855_s30 = scalar_lea.vmem %s4707_s8, 1024  ;;  %p6860_p11 = scmp.lt.s32.totalorder %s4707_s8, %s4707_s8 }
 0xaae   :  { %p6856_p10 = scmp.ne.s32.totalorder %s4707_s8, %s6855_s30  ;;  %p6861_p12 = scmp.lt.s32.totalorder %s6855_s30, %s6855_s30 }
 0xab0   :  { %p6862_p13 = por %p6861_p12, %p6860_p11 }
 0xab2   :  { %p6863_p0 = pnand %p6862_p13, %p6856_p10 }
 0xb64   :  { %v4828_v33 = vpop.f32.mrb[36].mxu0 }
 0xb65   :  { %v4678_v41 = vadd.f32 %v4828_v33, %v4785_v61  ;;  %v4669_v48 = vpop.f32.mrb[37].mxu0 }
 0xb66   :  { %v4670_v58 = vadd.f32 %v4785_v61, %v4669_v48  ;;  %v4829_v54 = vpop.f32.mrb[38].mxu0 }
 0xb67   :  { %4690 = vst [vmem:[#allocation21 + $0x30] sm:$0xff] %v4678_v41  ;;  %v4681_v23 = vadd.f32 %v4829_v54, %v4785_v61  ;;  %v4672_v10 = vpop.f32.mrb[39].mxu0 }
 0xb68   :  { %4688 = vst [vmem:[#allocation21 + $0x20] sm:$0xff] %v4670_v58  ;;  %v4673_v32 = vadd.f32 %v4785_v61, %v4672_v10 }
 0xb69   :  { %4691 = vst [vmem:[#allocation21 + $0x38] sm:$0xff] %v4681_v23 }
 0xb6a   :  { %4689 = vst [vmem:[#allocation21 + $0x28] sm:$0xff] %v4673_v32 }
 0xb6b   :  { %6866 = shalt.err (!%p6863_p0)
}
 0xb6c   :  { %s6867_s14 = scalar_lea.hbm %s8462_s11, 1024 }
 0xb6d   :  { %p6868_p1 = scmp.ne.s32.totalorder %s8462_s11, %s6867_s14  ;;  %p6871_p2 = scmp.lt.u32.totalorder %s6867_s14, %s8462_s11 }
 0xb6f   :  { %p6873_p3 = pnand %p6871_p2, %p6868_p1 }
 0xb71   :  { %6876 = shalt.err (!%p6873_p3)
}
 0xb72   :  { %4712 = dma.vmem_to_hbm [thread:$0]  %s4707_s8, 1024, %s8462_s11, [#allocation9], %s6893_s20, %s6893_s20, %s6894_s21  }
 0xb73   :  { %6887 = dma.done.wait [#allocation9], 1024  }
 0xb74   :  { %6888 = vsyncadd [#allocation9], 4294966272 }
 0xb75   :  { %6889 = dma.done.wait [#allocation23], 512  }
 0xb76   :  { %6890 = vsyncadd [#allocation23], 4294966784 }
 0xb77   :  { %4746 = vsyncpa [#allocation8], 1 }
 0xb78   :  { %4747 = vsyncpa [#allocation11], 1 }
 0xb79   :  { %4748 = vsyncpa [#allocation14], 1 }
 0xb7a   :  { %4749 = vsyncpa [#allocation17], 1 }
 0xb7b   :  { %4750 = vsyncpa [#allocation20], 1 }
 0xb7c   :  { %4751 = vsyncpa [#allocation9], 1 }
 0xb7d   :  { %4752 = vsyncpa [#allocation23], 1 }

</bundles_post_ra>
